<compile_context>
chip_gen: v7x
topology: tpu7x:2x2x1
jax: 0.10.0
libtpu: 0.0.40
codegen_flags: <defaults>
</compile_context>

<pallas_src>
import numpy as np
import jax
import jax.numpy as jnp
from jax.experimental import pallas as pl
from jax.experimental.pallas import tpu as pltpu

# ---- small, module-consistent hyper-parameters ------------------------------
B = 2                 # batch
K_IN = 4              # input one-hot channels
LIN = 8               # linear_size of the input map
M1 = LIN - 1          # spatial size after conv1 (7)
MAP = LIN - 2         # map_size (6)
P = MAP * MAP         # pixels after the conv block (36)
K_OUT = 16            # conv output kernels (even)
K_HALF = K_OUT // 2   # conv1 output kernels
N_FEAT = 32           # OheNet.n_features
PIX_HID = 64          # pixel residual hidden dim
PIX_NRES = 2          # pixel residual layers
FEAT_HID = 32         # feature residual hidden dim
FEAT_NRES = 2         # feature residual layers
EPS = 1e-5            # LayerNorm eps (PyTorch default)

NPIX1 = M1 * M1       # 49
LANES1 = B * NPIX1    # 98  conv1-output lane extent
LANES2 = B * P        # 72  conv2-output lane extent

# ---- parameter-slab layout ---------------------------------------------------
# One (rows, 128) f32 slab holds every parameter of every critic; all block starts are
# 8-row aligned so the kernel only takes cheap static slices.
O_PVEC = 0             # 8 rows: pg0, pbeta0, pg1, pbeta1, pb1_0, pb1_1, pb2_0, pb2_1
O_PW1 = (8, 48)        # (P, PIX_HID) per pixel layer (36 rows, padded to 40)
O_PW2 = (88, 152)      # (PIX_HID, P) per pixel layer (64 rows)
O_FCOL = 216           # 32 rows; cols [fg0,fbeta0,fg1,fbeta1,fb1_0,fb1_1,fb2_0,fb2_1,lw,lb@row0]
O_FW1 = (248, 280)     # (FEAT_HID, N_FEAT) per feature layer
O_FW2 = (312, 344)     # (N_FEAT, FEAT_HID) per feature layer
CRIT_ROWS = 376        # rows of one critic's private section


def slab_layout(n):
    """Row offsets of the critic-stacked sections + start of the private sections."""
    w1 = 0                       # (n*K_HALF, 4*K_IN+1)     conv1 weight|bias, critic-stacked
    w2 = w1 + n * K_HALF         # (n*K_OUT, 4*n*K_HALF+1)  block-diag conv2 taps | stacked bias
    pw = w2 + n * K_OUT          # (n*N_FEAT, n*K_OUT)      block-diag feature projection
    pos = pw + n * N_FEAT        # (n*N_FEAT, B*P)          positional bias (batch-tiled)
    crit0 = pos + n * N_FEAT
    rows = crit0 + n * CRIT_ROWS
    return dict(w1=w1, w2=w2, pw=pw, pos=pos, crit0=crit0, rows=rows)


# =============================================================================
# Pallas kernel: one un-gridded call == both critics, full batch.
# =============================================================================
def ohe_critic_kernel(patch1_ref, s2_ref, slab_ref, v_ref, xp_scr, f_scr):
    f32 = jnp.float32
    n = v_ref.shape[0]                       # number of critics (static)
    L = slab_layout(n)
    kh = n * K_HALF

    # ---- conv1 (critics stacked on sublanes; bias folded via the ones-row) ---
    w1a = slab_ref[L["w1"]:L["w1"] + n * K_HALF, 0:4 * K_IN + 1]          # (8n, 17)
    h1 = jnp.maximum(
        jnp.dot(w1a, patch1_ref[...], preferred_element_type=f32), 0.0)   # (8n, 98)
    h1b = h1.astype(jnp.bfloat16)

    # ---- conv2: accumulate block-diag per-tap matmuls over SHARED gathers ----
    acc = slab_ref[L["w2"]:L["w2"] + n * K_OUT, 4 * kh:4 * kh + 1]        # (16n, 1) bias
    for t in range(4):
        tap = jnp.dot(h1b, s2_ref[t], preferred_element_type=f32)         # (8n, 72)
        w2t = slab_ref[L["w2"]:L["w2"] + n * K_OUT, t * kh:(t + 1) * kh]  # (16n, 8n)
        acc = acc + jnp.dot(w2t, tap, preferred_element_type=f32)
    h2 = jnp.maximum(acc, 0.0)                                             # (16n, 72)

    # ---- projection to features + positional bias (still critic-stacked) -----
    pw = slab_ref[L["pw"]:L["pw"] + n * N_FEAT, 0:n * K_OUT]               # (32n, 16n)
    proj = (jnp.dot(pw, h2, preferred_element_type=f32)
            + slab_ref[L["pos"]:L["pos"] + n * N_FEAT, 0:LANES2])          # (32n, 72)

    # ---- refold (critic*feature, batch*pixel) -> (critic*batch*feature, pixel)
    # via static-offset scratch stores (no in-kernel concatenates).
    for c in range(n):
        for b in range(B):
            xp_scr[(c * B + b) * N_FEAT:(c * B + b + 1) * N_FEAT, :] = (
                proj[c * N_FEAT:(c + 1) * N_FEAT, b * P:(b + 1) * P])

    # ---- per-critic pixel / feature residual blocks + value head -------------
    for c in range(n):
        base = L["crit0"] + c * CRIT_ROWS
        xp = xp_scr[c * B * N_FEAT:(c + 1) * B * N_FEAT, :]                # (64, 36)

        # pixel residual block (rows = (batch, feature), lanes = pixels)
        for l in range(PIX_NRES):
            r = base + O_PVEC
            g   = slab_ref[r + 2 * l    :r + 2 * l + 1, 0:P]
            be  = slab_ref[r + 2 * l + 1:r + 2 * l + 2, 0:P]
            pb1 = slab_ref[r + 4 + l    :r + 5 + l,     0:PIX_HID]
            pb2 = slab_ref[r + 6 + l    :r + 7 + l,     0:P]
            w1 = slab_ref[base + O_PW1[l]:base + O_PW1[l] + P, 0:PIX_HID]  # (36, 64)
            w2 = slab_ref[base + O_PW2[l]:base + O_PW2[l] + PIX_HID, 0:P]  # (64, 36)
            mu = jnp.mean(xp, axis=1, keepdims=True)
            var = jnp.mean((xp - mu) ** 2, axis=1, keepdims=True)
            xn = (xp - mu) * jax.lax.rsqrt(var + EPS) * g + be
            h = jnp.maximum(
                jnp.dot(xn, w1, preferred_element_type=f32) + pb1, 0.0)    # (64, 64)
            xp = xp + jnp.dot(h, w2, preferred_element_type=f32) + pb2

        # feature-wise max pool over pixels, refolded to (F, B) columns via scratch
        pooled = jnp.max(xp, axis=1, keepdims=True)                        # (64, 1)
        for b in range(B):
            f_scr[c * N_FEAT:(c + 1) * N_FEAT, b:b + 1] = (
                pooled[b * N_FEAT:(b + 1) * N_FEAT, :])
        f = f_scr[c * N_FEAT:(c + 1) * N_FEAT, :]                          # (32, B)

        # feature residual block (column oriented: features on sublanes)
        fc = base + O_FCOL
        for l in range(FEAT_NRES):
            fg    = slab_ref[fc:fc + N_FEAT, 2 * l    :2 * l + 1]
            fbeta = slab_ref[fc:fc + N_FEAT, 2 * l + 1:2 * l + 2]
            fb1   = slab_ref[fc:fc + N_FEAT, 4 + l:5 + l]
            fb2   = slab_ref[fc:fc + N_FEAT, 6 + l:7 + l]
            w1 = slab_ref[base + O_FW1[l]:base + O_FW1[l] + FEAT_HID, 0:N_FEAT]
            w2 = slab_ref[base + O_FW2[l]:base + O_FW2[l] + N_FEAT, 0:FEAT_HID]
            mu = jnp.mean(f, axis=0, keepdims=True)
            var = jnp.mean((f - mu) ** 2, axis=0, keepdims=True)
            fn = (f - mu) * jax.lax.rsqrt(var + EPS) * fg + fbeta
            h = jnp.maximum(
                jnp.dot(w1, fn, preferred_element_type=f32) + fb1, 0.0)    # (32, B)
            f = f + jnp.dot(w2, h, preferred_element_type=f32) + fb2

        # scalar value head: broadcast-mul + sublane sum (avoids an M=1 dot)
        lw = slab_ref[fc:fc + N_FEAT, 8:9]
        lb = slab_ref[fc:fc + 1, 9:10]
        v_ref[c:c + 1, :] = jnp.sum(f * lw, axis=0, keepdims=True) + lb    # (1, B)


# =============================================================================
# Wrapper-side layout plumbing (host / XLA): im2col of the input, selection
# matrices, parameter slab packing.  No compute is hoisted out of the kernel.
# =============================================================================
def _build_patch1_aug(state):
    """conv1 im2col + a ones-row (bias fold): (4*K_IN+1, B*49)."""
    state = state.astype(jnp.float32)
    taps = [state[:, :, di:di + M1, dj:dj + M1].reshape(B, K_IN, NPIX1)
            for di in (0, 1) for dj in (0, 1)]
    p1 = jnp.stack(taps, axis=1).reshape(B, 4 * K_IN, NPIX1)               # (B, 16, 49)
    p1 = jnp.transpose(p1, (1, 0, 2)).reshape(4 * K_IN, LANES1)
    return jnp.concatenate([p1, jnp.ones((1, LANES1), jnp.float32)], axis=0)


def _build_conv2_selection():
    """0/1 matrices mapping conv1-output lanes (b*49 + 7x7 pixel) to conv2 im2col
    lanes (b*36 + 6x6 pixel), one block-diagonal matrix per 2x2 tap.  Exact in bf16."""
    s2 = np.zeros((4, LANES1, LANES2), np.float32)
    for t, (di, dj) in enumerate(((0, 0), (0, 1), (1, 0), (1, 1))):
        for b in range(B):
            for i in range(MAP):
                for j in range(MAP):
                    q = b * NPIX1 + (i + di) * M1 + (j + dj)
                    p = b * P + i * MAP + j
                    s2[t, q, p] = 1.0
    return jnp.asarray(s2, dtype=jnp.bfloat16)


def init_basic_critic_params(key):
    """Deterministic synthetic parameters, PyTorch-default-style uniform init."""
    def u(k, shape, fan_in):
        s = 1.0 / np.sqrt(fan_in)
        return jax.random.uniform(k, shape, jnp.float32, -s, s)

    ks = jax.random.split(key, 12)
    raw = dict(
        c1w=u(ks[0], (2, 2, K_IN, K_HALF), K_IN * 4),
        c1b=u(ks[1], (1, K_HALF), K_IN * 4),
        c2w=u(ks[2], (2, 2, K_HALF, K_OUT), K_HALF * 4),
        c2b=u(ks[3], (1, K_OUT), K_HALF * 4),
        pwc=u(ks[4], (K_OUT, N_FEAT), K_OUT + 2),
        pwx=u(ks[5], (1, N_FEAT), K_OUT + 2),
        pwy=u(ks[6], (1, N_FEAT), K_OUT + 2),
        pbb=u(ks[7], (1, N_FEAT), K_OUT + 2),
    )
    kp = jax.random.split(ks[8], 4)
    raw.update(
        pg=jnp.ones((PIX_NRES, P, 1), jnp.float32),
        pbeta=jnp.zeros((PIX_NRES, P, 1), jnp.float32),
        pw1=u(kp[0], (PIX_NRES, PIX_HID, P), P),
        pb1=u(kp[1], (PIX_NRES, PIX_HID, 1), P),
        pw2=u(kp[2], (PIX_NRES, P, PIX_HID), PIX_HID),
        pb2=u(kp[3], (PIX_NRES, P, 1), PIX_HID),
    )
    kf = jax.random.split(ks[9], 4)
    raw.update(
        fg=jnp.ones((FEAT_NRES, 1, N_FEAT), jnp.float32),
        fbeta=jnp.zeros((FEAT_NRES, 1, N_FEAT), jnp.float32),
        fw1=u(kf[0], (FEAT_NRES, N_FEAT, FEAT_HID), N_FEAT),
        fb1=u(kf[1], (FEAT_NRES, 1, FEAT_HID), N_FEAT),
        fw2=u(kf[2], (FEAT_NRES, FEAT_HID, N_FEAT), FEAT_HID),
        fb2=u(kf[3], (FEAT_NRES, 1, N_FEAT), FEAT_HID),
        lw=u(ks[10], (N_FEAT, 1), N_FEAT),
        lb=u(ks[11], (1, 1), N_FEAT),
    )
    return raw


def _block_diag(mats):
    r, c = mats[0].shape
    out = jnp.zeros((len(mats) * r, len(mats) * c), jnp.float32)
    for i, m in enumerate(mats):
        out = out.at[i * r:(i + 1) * r, i * c:(i + 1) * c].set(m)
    return out


def pack_slab(raws):
    """Pack every critic's parameters into ONE (rows, 128) f32 slab (single DMA)."""
    n = len(raws)
    L = slab_layout(n)
    slab = jnp.zeros((L["rows"], 128), jnp.float32)

    def put(s, r0, mat):
        mat = jnp.asarray(mat, jnp.float32)
        return s.at[r0:r0 + mat.shape[0], :mat.shape[1]].set(mat)

    # conv1: per-critic (K_HALF, 4*K_IN | bias) stacked on sublanes (shared RHS patch1)
    w1a = []
    for raw in raws:
        w1m = jnp.transpose(raw["c1w"], (3, 0, 1, 2)).reshape(K_HALF, 4 * K_IN)
        w1a.append(jnp.concatenate([w1m, raw["c1b"].T], axis=1))
    slab = put(slab, L["w1"], jnp.concatenate(w1a, axis=0))

    # conv2: per-tap block-diagonal weights + stacked bias in the last column
    w2_taps = []
    for raw in raws:
        w2m = jnp.transpose(raw["c2w"], (3, 0, 1, 2)).reshape(K_OUT, 4 * K_HALF)
        w2_taps.append([w2m[:, t * K_HALF:(t + 1) * K_HALF] for t in range(4)])
    w2bd = jnp.concatenate(
        [_block_diag([w2_taps[c][t] for c in range(n)]) for t in range(4)], axis=1)
    b2s = jnp.concatenate([raw["c2b"].T for raw in raws], axis=0)
    slab = put(slab, L["w2"], jnp.concatenate([w2bd, b2s], axis=1))

    # feature projection: block-diagonal (n*F, n*K_OUT)
    slab = put(slab, L["pw"], _block_diag([raw["pwc"].T for raw in raws]))

    # positional bias: per-critic (F, P), tiled over batch lanes, stacked on sublanes
    lin = jnp.asarray(np.linspace(-1.0, 1.0, MAP), jnp.float32)
    xg = jnp.repeat(lin, MAP)
    yg = jnp.tile(lin, MAP)
    pos_rows = []
    for raw in raws:
        pos_pf = xg[:, None] * raw["pwx"] + yg[:, None] * raw["pwy"] + raw["pbb"]  # (P, F)
        pos_rows.append(jnp.concatenate([pos_pf.T] * B, axis=1))                   # (F, B*P)
    slab = put(slab, L["pos"], jnp.concatenate(pos_rows, axis=0))

    # per-critic private sections: pixel + feature residual blocks + value head
    for c, raw in enumerate(raws):
        base = L["crit0"] + c * CRIT_ROWS
        pvec = jnp.zeros((8, 128), jnp.float32)
        for l in range(PIX_NRES):
            pvec = pvec.at[2 * l, :P].set(raw["pg"][l, :, 0])
            pvec = pvec.at[2 * l + 1, :P].set(raw["pbeta"][l, :, 0])
            pvec = pvec.at[4 + l, :PIX_HID].set(raw["pb1"][l, :, 0])
            pvec = pvec.at[6 + l, :P].set(raw["pb2"][l, :, 0])
        slab = slab.at[base + O_PVEC:base + O_PVEC + 8, :].set(pvec)
        for l in range(PIX_NRES):
            slab = put(slab, base + O_PW1[l], raw["pw1"][l].T)      # (P, PIX_HID)
            slab = put(slab, base + O_PW2[l], raw["pw2"][l].T)      # (PIX_HID, P)
        fcol = jnp.zeros((N_FEAT, 128), jnp.float32)
        for l in range(FEAT_NRES):
            fcol = fcol.at[:, 2 * l].set(raw["fg"][l, 0, :])
            fcol = fcol.at[:, 2 * l + 1].set(raw["fbeta"][l, 0, :])
            fcol = fcol.at[:, 4 + l].set(raw["fb1"][l, 0, :])
            fcol = fcol.at[:, 6 + l].set(raw["fb2"][l, 0, :])
        fcol = fcol.at[:, 8].set(raw["lw"][:, 0])
        fcol = fcol.at[0, 9].set(raw["lb"][0, 0])
        slab = slab.at[base + O_FCOL:base + O_FCOL + N_FEAT, :].set(fcol)
        for l in range(FEAT_NRES):
            slab = put(slab, base + O_FW1[l], raw["fw1"][l].T)      # (FEAT_HID, F)
            slab = put(slab, base + O_FW2[l], raw["fw2"][l].T)      # (F, FEAT_HID)
    return slab


@jax.jit
def ohe_critic_forward(slab, s2, state):
    """All critics in one un-gridded pallas_call; returns values of shape (n_critics, B)."""
    n = slab.shape[0] // slab_layout(1)["rows"]
    assert slab.shape[0] == slab_layout(n)["rows"]
    patch1 = _build_patch1_aug(state)
    vmem = pltpu.MemorySpace.VMEM
    return pl.pallas_call(
        ohe_critic_kernel,
        out_shape=jax.ShapeDtypeStruct((n, B), jnp.float32),
        in_specs=[pl.BlockSpec(memory_space=vmem),     # patch1 (shared)
                  pl.BlockSpec(memory_space=vmem),     # selection matrices (shared, bf16)
                  pl.BlockSpec(memory_space=vmem)],    # packed parameter slab (one DMA)
        out_specs=pl.BlockSpec(memory_space=vmem),
        scratch_shapes=[
            pltpu.VMEM((n * B * N_FEAT, P), jnp.float32),   # pixel-block activations
            pltpu.VMEM((n * N_FEAT, B), jnp.float32),       # pooled features (F, B) per critic
        ],
    )(patch1, s2, slab)


class OheCritic:
    """Twin critic; forward mirrors the PyTorch OheCritic semantics."""

    def __init__(self, key, twin=True, target=False):
        self.twin = twin
        self.target = target
        n = 2 if twin else 1
        keys = jax.random.split(key, n)
        raws = [init_basic_critic_params(k) for k in keys]
        self.slab = pack_slab(raws)
        self.s2 = _build_conv2_selection()

    def __call__(self, state_nchw):
        out = ohe_critic_forward(self.slab, self.s2, state_nchw)   # (n_critics, B)
        v1 = out[0:1, :].T                                         # (B, 1)
        if not self.twin:
            return v1
        v2 = out[1:2, :].T
        if self.target:
            return jnp.minimum(v1, v2)
        return v1, v2


if __name__ == "__main__":
    key = jax.random.PRNGKey(0)
    pkey, xkey = jax.random.split(key)

    # input: (batch, n_channels, linear_size, linear_size); map_size = linear_size - 2
    state = jax.random.uniform(xkey, (B, K_IN, LIN, LIN), jnp.float32)

    critic = OheCritic(pkey, twin=True, target=False)
    v1, v2 = critic(state)
    jax.block_until_ready((v1, v2))
    assert v1.shape == (B, 1) and v2.shape == (B, 1)
    assert v1.dtype == jnp.float32 and v2.dtype == jnp.float32
    assert bool(jnp.all(jnp.isfinite(v1))) and bool(jnp.all(jnp.isfinite(v2)))

    # target mode: element-wise minimum of the two critics
    vmin = jnp.minimum(v1, v2)
    jax.block_until_ready(vmin)
    assert vmin.shape == (B, 1)

    print("KERNEL_OK")
</pallas_src>

<mosaic_0001>
module attributes {stable_mosaic.version = 11 : i64} {
  func.func @ohe_critic_kernel(%arg0: memref<17x98xf32, #tpu.memory_space<vmem>>, %arg1: memref<4x98x72xbf16, #tpu.memory_space<vmem>>, %arg2: memref<928x128xf32, #tpu.memory_space<vmem>>, %arg3: memref<2x2xf32, #tpu.memory_space<vmem>>, %arg4: memref<128x36xf32, #tpu.memory_space<vmem>>, %arg5: memref<64x2xf32, #tpu.memory_space<vmem>>) attributes {dimension_semantics = [], scalar_prefetch = 0 : i64, scratch_operands = 2 : i64, tpu.core_type = #tpu.core_type<tc>} {
    %c0 = arith.constant 0 : index
    %c0_0 = arith.constant 0 : index
    %0 = vector.load %arg2[%c0, %c0_0] : memref<928x128xf32, #tpu.memory_space<vmem>>, vector<16x17xf32>
    %c0_1 = arith.constant 0 : index
    %c0_2 = arith.constant 0 : index
    %1 = vector.load %arg0[%c0_1, %c0_2] : memref<17x98xf32, #tpu.memory_space<vmem>>, vector<17x98xf32>
    %cst = arith.constant dense<0.000000e+00> : vector<16x98xf32>
    %2 = tpu.matmul %0, %1, %cst {dimension_numbers = #tpu.dot_dimension_numbers<[1], [0], [0], [1], [0, 0, 1, 1], [], []>} : vector<16x17xf32>, vector<17x98xf32>, vector<16x98xf32> -> vector<16x98xf32>
    %cst_3 = arith.constant 0.000000e+00 : f32
    %3 = vector.broadcast %cst_3 : f32 to vector<16x98xf32>
    %4 = arith.maximumf %2, %3 : vector<16x98xf32>
    %5 = arith.truncf %4 : vector<16x98xf32> to vector<16x98xbf16>
    %c16 = arith.constant 16 : index
    %c64 = arith.constant 64 : index
    %6 = vector.load %arg2[%c16, %c64] : memref<928x128xf32, #tpu.memory_space<vmem>>, vector<32x1xf32>
    %c0_4 = arith.constant 0 : index
    %c0_5 = arith.constant 0 : index
    %c0_6 = arith.constant 0 : index
    %7 = vector.load %arg1[%c0_4, %c0_5, %c0_6] : memref<4x98x72xbf16, #tpu.memory_space<vmem>>, vector<1x98x72xbf16>
    %8 = vector.shape_cast %7 : vector<1x98x72xbf16> to vector<98x72xbf16>
    %cst_7 = arith.constant dense<0.000000e+00> : vector<16x72xf32>
    %9 = tpu.matmul %5, %8, %cst_7 {dimension_numbers = #tpu.dot_dimension_numbers<[1], [0], [0], [1], [0, 0, 1, 1], [], []>} : vector<16x98xbf16>, vector<98x72xbf16>, vector<16x72xf32> -> vector<16x72xf32>
    %c16_8 = arith.constant 16 : index
    %c0_9 = arith.constant 0 : index
    %10 = vector.load %arg2[%c16_8, %c0_9] : memref<928x128xf32, #tpu.memory_space<vmem>>, vector<32x16xf32>
    %cst_10 = arith.constant dense<0.000000e+00> : vector<32x72xf32>
    %11 = tpu.matmul %10, %9, %cst_10 {dimension_numbers = #tpu.dot_dimension_numbers<[1], [0], [0], [1], [0, 0, 1, 1], [], []>} : vector<32x16xf32>, vector<16x72xf32>, vector<32x72xf32> -> vector<32x72xf32>
    %12 = vector.broadcast %6 : vector<32x1xf32> to vector<32x72xf32>
    %13 = arith.addf %12, %11 : vector<32x72xf32>
    %c1 = arith.constant 1 : index
    %c0_11 = arith.constant 0 : index
    %c0_12 = arith.constant 0 : index
    %14 = vector.load %arg1[%c1, %c0_11, %c0_12] : memref<4x98x72xbf16, #tpu.memory_space<vmem>>, vector<1x98x72xbf16>
    %15 = vector.shape_cast %14 : vector<1x98x72xbf16> to vector<98x72xbf16>
    %cst_13 = arith.constant dense<0.000000e+00> : vector<16x72xf32>
    %16 = tpu.matmul %5, %15, %cst_13 {dimension_numbers = #tpu.dot_dimension_numbers<[1], [0], [0], [1], [0, 0, 1, 1], [], []>} : vector<16x98xbf16>, vector<98x72xbf16>, vector<16x72xf32> -> vector<16x72xf32>
    %c16_14 = arith.constant 16 : index
    %c16_15 = arith.constant 16 : index
    %17 = vector.load %arg2[%c16_14, %c16_15] : memref<928x128xf32, #tpu.memory_space<vmem>>, vector<32x16xf32>
    %cst_16 = arith.constant dense<0.000000e+00> : vector<32x72xf32>
    %18 = tpu.matmul %17, %16, %cst_16 {dimension_numbers = #tpu.dot_dimension_numbers<[1], [0], [0], [1], [0, 0, 1, 1], [], []>} : vector<32x16xf32>, vector<16x72xf32>, vector<32x72xf32> -> vector<32x72xf32>
    %19 = arith.addf %13, %18 : vector<32x72xf32>
    %c2 = arith.constant 2 : index
    %c0_17 = arith.constant 0 : index
    %c0_18 = arith.constant 0 : index
    %20 = vector.load %arg1[%c2, %c0_17, %c0_18] : memref<4x98x72xbf16, #tpu.memory_space<vmem>>, vector<1x98x72xbf16>
    %21 = vector.shape_cast %20 : vector<1x98x72xbf16> to vector<98x72xbf16>
    %cst_19 = arith.constant dense<0.000000e+00> : vector<16x72xf32>
    %22 = tpu.matmul %5, %21, %cst_19 {dimension_numbers = #tpu.dot_dimension_numbers<[1], [0], [0], [1], [0, 0, 1, 1], [], []>} : vector<16x98xbf16>, vector<98x72xbf16>, vector<16x72xf32> -> vector<16x72xf32>
    %c16_20 = arith.constant 16 : index
    %c32 = arith.constant 32 : index
    %23 = vector.load %arg2[%c16_20, %c32] : memref<928x128xf32, #tpu.memory_space<vmem>>, vector<32x16xf32>
    %cst_21 = arith.constant dense<0.000000e+00> : vector<32x72xf32>
    %24 = tpu.matmul %23, %22, %cst_21 {dimension_numbers = #tpu.dot_dimension_numbers<[1], [0], [0], [1], [0, 0, 1, 1], [], []>} : vector<32x16xf32>, vector<16x72xf32>, vector<32x72xf32> -> vector<32x72xf32>
    %25 = arith.addf %19, %24 : vector<32x72xf32>
    %c3 = arith.constant 3 : index
    %c0_22 = arith.constant 0 : index
    %c0_23 = arith.constant 0 : index
    %26 = vector.load %arg1[%c3, %c0_22, %c0_23] : memref<4x98x72xbf16, #tpu.memory_space<vmem>>, vector<1x98x72xbf16>
    %27 = vector.shape_cast %26 : vector<1x98x72xbf16> to vector<98x72xbf16>
    %cst_24 = arith.constant dense<0.000000e+00> : vector<16x72xf32>
    %28 = tpu.matmul %5, %27, %cst_24 {dimension_numbers = #tpu.dot_dimension_numbers<[1], [0], [0], [1], [0, 0, 1, 1], [], []>} : vector<16x98xbf16>, vector<98x72xbf16>, vector<16x72xf32> -> vector<16x72xf32>
    %c16_25 = arith.constant 16 : index
    %c48 = arith.constant 48 : index
    %29 = vector.load %arg2[%c16_25, %c48] : memref<928x128xf32, #tpu.memory_space<vmem>>, vector<32x16xf32>
    %cst_26 = arith.constant dense<0.000000e+00> : vector<32x72xf32>
    %30 = tpu.matmul %29, %28, %cst_26 {dimension_numbers = #tpu.dot_dimension_numbers<[1], [0], [0], [1], [0, 0, 1, 1], [], []>} : vector<32x16xf32>, vector<16x72xf32>, vector<32x72xf32> -> vector<32x72xf32>
    %31 = arith.addf %25, %30 : vector<32x72xf32>
    %cst_27 = arith.constant 0.000000e+00 : f32
    %32 = vector.broadcast %cst_27 : f32 to vector<32x72xf32>
    %33 = arith.maximumf %31, %32 : vector<32x72xf32>
    %c48_28 = arith.constant 48 : index
    %c0_29 = arith.constant 0 : index
    %34 = vector.load %arg2[%c48_28, %c0_29] : memref<928x128xf32, #tpu.memory_space<vmem>>, vector<64x32xf32>
    %cst_30 = arith.constant dense<0.000000e+00> : vector<64x72xf32>
    %35 = tpu.matmul %34, %33, %cst_30 {dimension_numbers = #tpu.dot_dimension_numbers<[1], [0], [0], [1], [0, 0, 1, 1], [], []>} : vector<64x32xf32>, vector<32x72xf32>, vector<64x72xf32> -> vector<64x72xf32>
    %c112 = arith.constant 112 : index
    %c0_31 = arith.constant 0 : index
    %36 = vector.load %arg2[%c112, %c0_31] : memref<928x128xf32, #tpu.memory_space<vmem>>, vector<64x72xf32>
    %37 = arith.addf %35, %36 : vector<64x72xf32>
    %38 = vector.extract_strided_slice %37 {offsets = [0, 0], sizes = [32, 36], strides = [1, 1]} : vector<64x72xf32> to vector<32x36xf32>
    %c0_32 = arith.constant 0 : index
    %c0_33 = arith.constant 0 : index
    %39 = vector.load %arg4[%c0_32, %c0_33] : memref<128x36xf32, #tpu.memory_space<vmem>>, vector<32x36xf32>
    tpu.vector_store %arg4[%c0_32, %c0_33], %38 {strides = array<i32>} : memref<128x36xf32, #tpu.memory_space<vmem>>, vector<32x36xf32>,
    %40 = vector.extract_strided_slice %37 {offsets = [0, 36], sizes = [32, 36], strides = [1, 1]} : vector<64x72xf32> to vector<32x36xf32>
    %c32_34 = arith.constant 32 : index
    %c0_35 = arith.constant 0 : index
    %41 = vector.load %arg4[%c32_34, %c0_35] : memref<128x36xf32, #tpu.memory_space<vmem>>, vector<32x36xf32>
    tpu.vector_store %arg4[%c32_34, %c0_35], %40 {strides = array<i32>} : memref<128x36xf32, #tpu.memory_space<vmem>>, vector<32x36xf32>,
    %42 = vector.extract_strided_slice %37 {offsets = [32, 0], sizes = [32, 36], strides = [1, 1]} : vector<64x72xf32> to vector<32x36xf32>
    %c64_36 = arith.constant 64 : index
    %c0_37 = arith.constant 0 : index
    %43 = vector.load %arg4[%c64_36, %c0_37] : memref<128x36xf32, #tpu.memory_space<vmem>>, vector<32x36xf32>
    tpu.vector_store %arg4[%c64_36, %c0_37], %42 {strides = array<i32>} : memref<128x36xf32, #tpu.memory_space<vmem>>, vector<32x36xf32>,
    %44 = vector.extract_strided_slice %37 {offsets = [32, 36], sizes = [32, 36], strides = [1, 1]} : vector<64x72xf32> to vector<32x36xf32>
    %c96 = arith.constant 96 : index
    %c0_38 = arith.constant 0 : index
    %45 = vector.load %arg4[%c96, %c0_38] : memref<128x36xf32, #tpu.memory_space<vmem>>, vector<32x36xf32>
    tpu.vector_store %arg4[%c96, %c0_38], %44 {strides = array<i32>} : memref<128x36xf32, #tpu.memory_space<vmem>>, vector<32x36xf32>,
    %c0_39 = arith.constant 0 : index
    %c0_40 = arith.constant 0 : index
    %46 = vector.load %arg4[%c0_39, %c0_40] : memref<128x36xf32, #tpu.memory_space<vmem>>, vector<64x36xf32>
    %c176 = arith.constant 176 : index
    %c0_41 = arith.constant 0 : index
    %47 = vector.load %arg2[%c176, %c0_41] : memref<928x128xf32, #tpu.memory_space<vmem>>, vector<1x36xf32>
    %c177 = arith.constant 177 : index
    %c0_42 = arith.constant 0 : index
    %48 = vector.load %arg2[%c177, %c0_42] : memref<928x128xf32, #tpu.memory_space<vmem>>, vector<1x36xf32>
    %c180 = arith.constant 180 : index
    %c0_43 = arith.constant 0 : index
    %49 = vector.load %arg2[%c180, %c0_43] : memref<928x128xf32, #tpu.memory_space<vmem>>, vector<1x64xf32>
    %c182 = arith.constant 182 : index
    %c0_44 = arith.constant 0 : index
    %50 = vector.load %arg2[%c182, %c0_44] : memref<928x128xf32, #tpu.memory_space<vmem>>, vector<1x36xf32>
    %c184 = arith.constant 184 : index
    %c0_45 = arith.constant 0 : index
    %51 = vector.load %arg2[%c184, %c0_45] : memref<928x128xf32, #tpu.memory_space<vmem>>, vector<36x64xf32>
    %c264 = arith.constant 264 : index
    %c0_46 = arith.constant 0 : index
    %52 = vector.load %arg2[%c264, %c0_46] : memref<928x128xf32, #tpu.memory_space<vmem>>, vector<64x36xf32>
    %cst_47 = arith.constant dense<0.000000e+00> : vector<64xf32>
    %53 = vector.multi_reduction <add>, %46, %cst_47 [1] : vector<64x36xf32> to vector<64xf32>
    %54 = vector.shape_cast %53 : vector<64xf32> to vector<64x1xf32>
    %cst_48 = arith.constant 3.600000e+01 : f32
    %55 = vector.broadcast %cst_48 : f32 to vector<64x1xf32>
    %56 = arith.divf %54, %55 : vector<64x1xf32>
    %57 = vector.broadcast %56 : vector<64x1xf32> to vector<64x36xf32>
    %58 = arith.subf %46, %57 : vector<64x36xf32>
    %59 = arith.mulf %58, %58 : vector<64x36xf32>
    %cst_49 = arith.constant dense<0.000000e+00> : vector<64xf32>
    %60 = vector.multi_reduction <add>, %59, %cst_49 [1] : vector<64x36xf32> to vector<64xf32>
    %61 = vector.shape_cast %60 : vector<64xf32> to vector<64x1xf32>
    %cst_50 = arith.constant 3.600000e+01 : f32
    %62 = vector.broadcast %cst_50 : f32 to vector<64x1xf32>
    %63 = arith.divf %61, %62 : vector<64x1xf32>
    %64 = vector.broadcast %56 : vector<64x1xf32> to vector<64x36xf32>
    %65 = arith.subf %46, %64 : vector<64x36xf32>
    %cst_51 = arith.constant 9.99999974E-6 : f32
    %66 = vector.broadcast %cst_51 : f32 to vector<64x1xf32>
    %67 = arith.addf %63, %66 : vector<64x1xf32>
    %68 = math.rsqrt %67 : vector<64x1xf32>
    %69 = vector.broadcast %68 : vector<64x1xf32> to vector<64x36xf32>
    %70 = arith.mulf %65, %69 : vector<64x36xf32>
    %71 = vector.broadcast %47 : vector<1x36xf32> to vector<64x36xf32>
    %72 = arith.mulf %70, %71 : vector<64x36xf32>
    %73 = vector.broadcast %48 : vector<1x36xf32> to vector<64x36xf32>
    %74 = arith.addf %72, %73 : vector<64x36xf32>
    %cst_52 = arith.constant dense<0.000000e+00> : vector<64x64xf32>
    %75 = tpu.matmul %74, %51, %cst_52 {dimension_numbers = #tpu.dot_dimension_numbers<[1], [0], [0], [1], [0, 0, 1, 1], [], []>} : vector<64x36xf32>, vector<36x64xf32>, vector<64x64xf32> -> vector<64x64xf32>
    %76 = vector.broadcast %49 : vector<1x64xf32> to vector<64x64xf32>
    %77 = arith.addf %75, %76 : vector<64x64xf32>
    %cst_53 = arith.constant 0.000000e+00 : f32
    %78 = vector.broadcast %cst_53 : f32 to vector<64x64xf32>
    %79 = arith.maximumf %77, %78 : vector<64x64xf32>
    %cst_54 = arith.constant dense<0.000000e+00> : vector<64x36xf32>
    %80 = tpu.matmul %79, %52, %cst_54 {dimension_numbers = #tpu.dot_dimension_numbers<[1], [0], [0], [1], [0, 0, 1, 1], [], []>} : vector<64x64xf32>, vector<64x36xf32>, vector<64x36xf32> -> vector<64x36xf32>
    %81 = arith.addf %46, %80 : vector<64x36xf32>
    %82 = vector.broadcast %50 : vector<1x36xf32> to vector<64x36xf32>
    %83 = arith.addf %81, %82 : vector<64x36xf32>
    %c178 = arith.constant 178 : index
    %c0_55 = arith.constant 0 : index
    %84 = vector.load %arg2[%c178, %c0_55] : memref<928x128xf32, #tpu.memory_space<vmem>>, vector<1x36xf32>
    %c179 = arith.constant 179 : index
    %c0_56 = arith.constant 0 : index
    %85 = vector.load %arg2[%c179, %c0_56] : memref<928x128xf32, #tpu.memory_space<vmem>>, vector<1x36xf32>
    %c181 = arith.constant 181 : index
    %c0_57 = arith.constant 0 : index
    %86 = vector.load %arg2[%c181, %c0_57] : memref<928x128xf32, #tpu.memory_space<vmem>>, vector<1x64xf32>
    %c183 = arith.constant 183 : index
    %c0_58 = arith.constant 0 : index
    %87 = vector.load %arg2[%c183, %c0_58] : memref<928x128xf32, #tpu.memory_space<vmem>>, vector<1x36xf32>
    %c224 = arith.constant 224 : index
    %c0_59 = arith.constant 0 : index
    %88 = vector.load %arg2[%c224, %c0_59] : memref<928x128xf32, #tpu.memory_space<vmem>>, vector<36x64xf32>
    %c328 = arith.constant 328 : index
    %c0_60 = arith.constant 0 : index
    %89 = vector.load %arg2[%c328, %c0_60] : memref<928x128xf32, #tpu.memory_space<vmem>>, vector<64x36xf32>
    %cst_61 = arith.constant dense<0.000000e+00> : vector<64xf32>
    %90 = vector.multi_reduction <add>, %83, %cst_61 [1] : vector<64x36xf32> to vector<64xf32>
    %91 = vector.shape_cast %90 : vector<64xf32> to vector<64x1xf32>
    %cst_62 = arith.constant 3.600000e+01 : f32
    %92 = vector.broadcast %cst_62 : f32 to vector<64x1xf32>
    %93 = arith.divf %91, %92 : vector<64x1xf32>
    %94 = vector.broadcast %93 : vector<64x1xf32> to vector<64x36xf32>
    %95 = arith.subf %83, %94 : vector<64x36xf32>
    %96 = arith.mulf %95, %95 : vector<64x36xf32>
    %cst_63 = arith.constant dense<0.000000e+00> : vector<64xf32>
    %97 = vector.multi_reduction <add>, %96, %cst_63 [1] : vector<64x36xf32> to vector<64xf32>
    %98 = vector.shape_cast %97 : vector<64xf32> to vector<64x1xf32>
    %cst_64 = arith.constant 3.600000e+01 : f32
    %99 = vector.broadcast %cst_64 : f32 to vector<64x1xf32>
    %100 = arith.divf %98, %99 : vector<64x1xf32>
    %101 = vector.broadcast %93 : vector<64x1xf32> to vector<64x36xf32>
    %102 = arith.subf %83, %101 : vector<64x36xf32>
    %cst_65 = arith.constant 9.99999974E-6 : f32
    %103 = vector.broadcast %cst_65 : f32 to vector<64x1xf32>
    %104 = arith.addf %100, %103 : vector<64x1xf32>
    %105 = math.rsqrt %104 : vector<64x1xf32>
    %106 = vector.broadcast %105 : vector<64x1xf32> to vector<64x36xf32>
    %107 = arith.mulf %102, %106 : vector<64x36xf32>
    %108 = vector.broadcast %84 : vector<1x36xf32> to vector<64x36xf32>
    %109 = arith.mulf %107, %108 : vector<64x36xf32>
    %110 = vector.broadcast %85 : vector<1x36xf32> to vector<64x36xf32>
    %111 = arith.addf %109, %110 : vector<64x36xf32>
    %cst_66 = arith.constant dense<0.000000e+00> : vector<64x64xf32>
    %112 = tpu.matmul %111, %88, %cst_66 {dimension_numbers = #tpu.dot_dimension_numbers<[1], [0], [0], [1], [0, 0, 1, 1], [], []>} : vector<64x36xf32>, vector<36x64xf32>, vector<64x64xf32> -> vector<64x64xf32>
    %113 = vector.broadcast %86 : vector<1x64xf32> to vector<64x64xf32>
    %114 = arith.addf %112, %113 : vector<64x64xf32>
    %cst_67 = arith.constant 0.000000e+00 : f32
    %115 = vector.broadcast %cst_67 : f32 to vector<64x64xf32>
    %116 = arith.maximumf %114, %115 : vector<64x64xf32>
    %cst_68 = arith.constant dense<0.000000e+00> : vector<64x36xf32>
    %117 = tpu.matmul %116, %89, %cst_68 {dimension_numbers = #tpu.dot_dimension_numbers<[1], [0], [0], [1], [0, 0, 1, 1], [], []>} : vector<64x64xf32>, vector<64x36xf32>, vector<64x36xf32> -> vector<64x36xf32>
    %118 = arith.addf %83, %117 : vector<64x36xf32>
    %119 = vector.broadcast %87 : vector<1x36xf32> to vector<64x36xf32>
    %120 = arith.addf %118, %119 : vector<64x36xf32>
    %cst_69 = arith.constant dense<0xFF800000> : vector<64xf32>
    %121 = vector.multi_reduction <maximumf>, %120, %cst_69 [1] : vector<64x36xf32> to vector<64xf32>
    %122 = vector.shape_cast %121 : vector<64xf32> to vector<64x1xf32>
    %123 = vector.extract_strided_slice %122 {offsets = [0, 0], sizes = [32, 1], strides = [1, 1]} : vector<64x1xf32> to vector<32x1xf32>
    %c0_70 = arith.constant 0 : index
    %c0_71 = arith.constant 0 : index
    %124 = vector.load %arg5[%c0_70, %c0_71] : memref<64x2xf32, #tpu.memory_space<vmem>>, vector<32x1xf32>
    tpu.vector_store %arg5[%c0_70, %c0_71], %123 {strides = array<i32>} : memref<64x2xf32, #tpu.memory_space<vmem>>, vector<32x1xf32>,
    %125 = vector.extract_strided_slice %122 {offsets = [32, 0], sizes = [32, 1], strides = [1, 1]} : vector<64x1xf32> to vector<32x1xf32>
    %c0_72 = arith.constant 0 : index
    %c1_73 = arith.constant 1 : index
    %126 = vector.load %arg5[%c0_72, %c1_73] : memref<64x2xf32, #tpu.memory_space<vmem>>, vector<32x1xf32>
    tpu.vector_store %arg5[%c0_72, %c1_73], %125 {strides = array<i32>} : memref<64x2xf32, #tpu.memory_space<vmem>>, vector<32x1xf32>,
    %c0_74 = arith.constant 0 : index
    %c0_75 = arith.constant 0 : index
    %127 = vector.load %arg5[%c0_74, %c0_75] : memref<64x2xf32, #tpu.memory_space<vmem>>, vector<32x2xf32>
    %c392 = arith.constant 392 : index
    %c0_76 = arith.constant 0 : index
    %128 = vector.load %arg2[%c392, %c0_76] : memref<928x128xf32, #tpu.memory_space<vmem>>, vector<32x1xf32>
    %c392_77 = arith.constant 392 : index
    %c1_78 = arith.constant 1 : index
    %129 = vector.load %arg2[%c392_77, %c1_78] : memref<928x128xf32, #tpu.memory_space<vmem>>, vector<32x1xf32>
    %c392_79 = arith.constant 392 : index
    %c4 = arith.constant 4 : index
    %130 = vector.load %arg2[%c392_79, %c4] : memref<928x128xf32, #tpu.memory_space<vmem>>, vector<32x1xf32>
    %c392_80 = arith.constant 392 : index
    %c6 = arith.constant 6 : index
    %131 = vector.load %arg2[%c392_80, %c6] : memref<928x128xf32, #tpu.memory_space<vmem>>, vector<32x1xf32>
    %c424 = arith.constant 424 : index
    %c0_81 = arith.constant 0 : index
    %132 = vector.load %arg2[%c424, %c0_81] : memref<928x128xf32, #tpu.memory_space<vmem>>, vector<32x32xf32>
    %c488 = arith.constant 488 : index
    %c0_82 = arith.constant 0 : index
    %133 = vector.load %arg2[%c488, %c0_82] : memref<928x128xf32, #tpu.memory_space<vmem>>, vector<32x32xf32>
    %cst_83 = arith.constant dense<0.000000e+00> : vector<2xf32>
    %134 = vector.multi_reduction <add>, %127, %cst_83 [0] : vector<32x2xf32> to vector<2xf32>
    %135 = vector.shape_cast %134 : vector<2xf32> to vector<1x2xf32>
    %cst_84 = arith.constant 3.200000e+01 : f32
    %136 = vector.broadcast %cst_84 : f32 to vector<1x2xf32>
    %137 = arith.divf %135, %136 : vector<1x2xf32>
    %138 = vector.broadcast %137 : vector<1x2xf32> to vector<32x2xf32>
    %139 = arith.subf %127, %138 : vector<32x2xf32>
    %140 = arith.mulf %139, %139 : vector<32x2xf32>
    %cst_85 = arith.constant dense<0.000000e+00> : vector<2xf32>
    %141 = vector.multi_reduction <add>, %140, %cst_85 [0] : vector<32x2xf32> to vector<2xf32>
    %142 = vector.shape_cast %141 : vector<2xf32> to vector<1x2xf32>
    %cst_86 = arith.constant 3.200000e+01 : f32
    %143 = vector.broadcast %cst_86 : f32 to vector<1x2xf32>
    %144 = arith.divf %142, %143 : vector<1x2xf32>
    %145 = vector.broadcast %137 : vector<1x2xf32> to vector<32x2xf32>
    %146 = arith.subf %127, %145 : vector<32x2xf32>
    %cst_87 = arith.constant 9.99999974E-6 : f32
    %147 = vector.broadcast %cst_87 : f32 to vector<1x2xf32>
    %148 = arith.addf %144, %147 : vector<1x2xf32>
    %149 = math.rsqrt %148 : vector<1x2xf32>
    %150 = vector.broadcast %149 : vector<1x2xf32> to vector<32x2xf32>
    %151 = arith.mulf %146, %150 : vector<32x2xf32>
    %152 = vector.broadcast %128 : vector<32x1xf32> to vector<32x2xf32>
    %153 = arith.mulf %151, %152 : vector<32x2xf32>
    %154 = vector.broadcast %129 : vector<32x1xf32> to vector<32x2xf32>
    %155 = arith.addf %153, %154 : vector<32x2xf32>
    %cst_88 = arith.constant dense<0.000000e+00> : vector<32x2xf32>
    %156 = tpu.matmul %132, %155, %cst_88 {dimension_numbers = #tpu.dot_dimension_numbers<[1], [0], [0], [1], [0, 0, 1, 1], [], []>} : vector<32x32xf32>, vector<32x2xf32>, vector<32x2xf32> -> vector<32x2xf32>
    %157 = vector.broadcast %130 : vector<32x1xf32> to vector<32x2xf32>
    %158 = arith.addf %156, %157 : vector<32x2xf32>
    %cst_89 = arith.constant 0.000000e+00 : f32
    %159 = vector.broadcast %cst_89 : f32 to vector<32x2xf32>
    %160 = arith.maximumf %158, %159 : vector<32x2xf32>
    %cst_90 = arith.constant dense<0.000000e+00> : vector<32x2xf32>
    %161 = tpu.matmul %133, %160, %cst_90 {dimension_numbers = #tpu.dot_dimension_numbers<[1], [0], [0], [1], [0, 0, 1, 1], [], []>} : vector<32x32xf32>, vector<32x2xf32>, vector<32x2xf32> -> vector<32x2xf32>
    %162 = arith.addf %127, %161 : vector<32x2xf32>
    %163 = vector.broadcast %131 : vector<32x1xf32> to vector<32x2xf32>
    %164 = arith.addf %162, %163 : vector<32x2xf32>
    %c392_91 = arith.constant 392 : index
    %c2_92 = arith.constant 2 : index
    %165 = vector.load %arg2[%c392_91, %c2_92] : memref<928x128xf32, #tpu.memory_space<vmem>>, vector<32x1xf32>
    %c392_93 = arith.constant 392 : index
    %c3_94 = arith.constant 3 : index
    %166 = vector.load %arg2[%c392_93, %c3_94] : memref<928x128xf32, #tpu.memory_space<vmem>>, vector<32x1xf32>
    %c392_95 = arith.constant 392 : index
    %c5 = arith.constant 5 : index
    %167 = vector.load %arg2[%c392_95, %c5] : memref<928x128xf32, #tpu.memory_space<vmem>>, vector<32x1xf32>
    %c392_96 = arith.constant 392 : index
    %c7 = arith.constant 7 : index
    %168 = vector.load %arg2[%c392_96, %c7] : memref<928x128xf32, #tpu.memory_space<vmem>>, vector<32x1xf32>
    %c456 = arith.constant 456 : index
    %c0_97 = arith.constant 0 : index
    %169 = vector.load %arg2[%c456, %c0_97] : memref<928x128xf32, #tpu.memory_space<vmem>>, vector<32x32xf32>
    %c520 = arith.constant 520 : index
    %c0_98 = arith.constant 0 : index
    %170 = vector.load %arg2[%c520, %c0_98] : memref<928x128xf32, #tpu.memory_space<vmem>>, vector<32x32xf32>
    %cst_99 = arith.constant dense<0.000000e+00> : vector<2xf32>
    %171 = vector.multi_reduction <add>, %164, %cst_99 [0] : vector<32x2xf32> to vector<2xf32>
    %172 = vector.shape_cast %171 : vector<2xf32> to vector<1x2xf32>
    %cst_100 = arith.constant 3.200000e+01 : f32
    %173 = vector.broadcast %cst_100 : f32 to vector<1x2xf32>
    %174 = arith.divf %172, %173 : vector<1x2xf32>
    %175 = vector.broadcast %174 : vector<1x2xf32> to vector<32x2xf32>
    %176 = arith.subf %164, %175 : vector<32x2xf32>
    %177 = arith.mulf %176, %176 : vector<32x2xf32>
    %cst_101 = arith.constant dense<0.000000e+00> : vector<2xf32>
    %178 = vector.multi_reduction <add>, %177, %cst_101 [0] : vector<32x2xf32> to vector<2xf32>
    %179 = vector.shape_cast %178 : vector<2xf32> to vector<1x2xf32>
    %cst_102 = arith.constant 3.200000e+01 : f32
    %180 = vector.broadcast %cst_102 : f32 to vector<1x2xf32>
    %181 = arith.divf %179, %180 : vector<1x2xf32>
    %182 = vector.broadcast %174 : vector<1x2xf32> to vector<32x2xf32>
    %183 = arith.subf %164, %182 : vector<32x2xf32>
    %cst_103 = arith.constant 9.99999974E-6 : f32
    %184 = vector.broadcast %cst_103 : f32 to vector<1x2xf32>
    %185 = arith.addf %181, %184 : vector<1x2xf32>
    %186 = math.rsqrt %185 : vector<1x2xf32>
    %187 = vector.broadcast %186 : vector<1x2xf32> to vector<32x2xf32>
    %188 = arith.mulf %183, %187 : vector<32x2xf32>
    %189 = vector.broadcast %165 : vector<32x1xf32> to vector<32x2xf32>
    %190 = arith.mulf %188, %189 : vector<32x2xf32>
    %191 = vector.broadcast %166 : vector<32x1xf32> to vector<32x2xf32>
    %192 = arith.addf %190, %191 : vector<32x2xf32>
    %cst_104 = arith.constant dense<0.000000e+00> : vector<32x2xf32>
    %193 = tpu.matmul %169, %192, %cst_104 {dimension_numbers = #tpu.dot_dimension_numbers<[1], [0], [0], [1], [0, 0, 1, 1], [], []>} : vector<32x32xf32>, vector<32x2xf32>, vector<32x2xf32> -> vector<32x2xf32>
    %194 = vector.broadcast %167 : vector<32x1xf32> to vector<32x2xf32>
    %195 = arith.addf %193, %194 : vector<32x2xf32>
    %cst_105 = arith.constant 0.000000e+00 : f32
    %196 = vector.broadcast %cst_105 : f32 to vector<32x2xf32>
    %197 = arith.maximumf %195, %196 : vector<32x2xf32>
    %cst_106 = arith.constant dense<0.000000e+00> : vector<32x2xf32>
    %198 = tpu.matmul %170, %197, %cst_106 {dimension_numbers = #tpu.dot_dimension_numbers<[1], [0], [0], [1], [0, 0, 1, 1], [], []>} : vector<32x32xf32>, vector<32x2xf32>, vector<32x2xf32> -> vector<32x2xf32>
    %199 = arith.addf %164, %198 : vector<32x2xf32>
    %200 = vector.broadcast %168 : vector<32x1xf32> to vector<32x2xf32>
    %201 = arith.addf %199, %200 : vector<32x2xf32>
    %c392_107 = arith.constant 392 : index
    %c8 = arith.constant 8 : index
    %202 = vector.load %arg2[%c392_107, %c8] : memref<928x128xf32, #tpu.memory_space<vmem>>, vector<32x1xf32>
    %c392_108 = arith.constant 392 : index
    %c9 = arith.constant 9 : index
    %203 = vector.load %arg2[%c392_108, %c9] : memref<928x128xf32, #tpu.memory_space<vmem>>, vector<1x1xf32>
    %204 = vector.broadcast %202 : vector<32x1xf32> to vector<32x2xf32>
    %205 = arith.mulf %201, %204 : vector<32x2xf32>
    %cst_109 = arith.constant dense<0.000000e+00> : vector<2xf32>
    %206 = vector.multi_reduction <add>, %205, %cst_109 [0] : vector<32x2xf32> to vector<2xf32>
    %207 = vector.shape_cast %206 : vector<2xf32> to vector<1x2xf32>
    %208 = vector.broadcast %203 : vector<1x1xf32> to vector<1x2xf32>
    %209 = arith.addf %207, %208 : vector<1x2xf32>
    %c0_110 = arith.constant 0 : index
    %c0_111 = arith.constant 0 : index
    %210 = vector.load %arg3[%c0_110, %c0_111] : memref<2x2xf32, #tpu.memory_space<vmem>>, vector<1x2xf32>
    tpu.vector_store %arg3[%c0_110, %c0_111], %209 {strides = array<i32>} : memref<2x2xf32, #tpu.memory_space<vmem>>, vector<1x2xf32>,
    %c64_112 = arith.constant 64 : index
    %c0_113 = arith.constant 0 : index
    %211 = vector.load %arg4[%c64_112, %c0_113] : memref<128x36xf32, #tpu.memory_space<vmem>>, vector<64x36xf32>
    %c552 = arith.constant 552 : index
    %c0_114 = arith.constant 0 : index
    %212 = vector.load %arg2[%c552, %c0_114] : memref<928x128xf32, #tpu.memory_space<vmem>>, vector<1x36xf32>
    %c553 = arith.constant 553 : index
    %c0_115 = arith.constant 0 : index
    %213 = vector.load %arg2[%c553, %c0_115] : memref<928x128xf32, #tpu.memory_space<vmem>>, vector<1x36xf32>
    %c556 = arith.constant 556 : index
    %c0_116 = arith.constant 0 : index
    %214 = vector.load %arg2[%c556, %c0_116] : memref<928x128xf32, #tpu.memory_space<vmem>>, vector<1x64xf32>
    %c558 = arith.constant 558 : index
    %c0_117 = arith.constant 0 : index
    %215 = vector.load %arg2[%c558, %c0_117] : memref<928x128xf32, #tpu.memory_space<vmem>>, vector<1x36xf32>
    %c560 = arith.constant 560 : index
    %c0_118 = arith.constant 0 : index
    %216 = vector.load %arg2[%c560, %c0_118] : memref<928x128xf32, #tpu.memory_space<vmem>>, vector<36x64xf32>
    %c640 = arith.constant 640 : index
    %c0_119 = arith.constant 0 : index
    %217 = vector.load %arg2[%c640, %c0_119] : memref<928x128xf32, #tpu.memory_space<vmem>>, vector<64x36xf32>
    %cst_120 = arith.constant dense<0.000000e+00> : vector<64xf32>
    %218 = vector.multi_reduction <add>, %211, %cst_120 [1] : vector<64x36xf32> to vector<64xf32>
    %219 = vector.shape_cast %218 : vector<64xf32> to vector<64x1xf32>
    %cst_121 = arith.constant 3.600000e+01 : f32
    %220 = vector.broadcast %cst_121 : f32 to vector<64x1xf32>
    %221 = arith.divf %219, %220 : vector<64x1xf32>
    %222 = vector.broadcast %221 : vector<64x1xf32> to vector<64x36xf32>
    %223 = arith.subf %211, %222 : vector<64x36xf32>
    %224 = arith.mulf %223, %223 : vector<64x36xf32>
    %cst_122 = arith.constant dense<0.000000e+00> : vector<64xf32>
    %225 = vector.multi_reduction <add>, %224, %cst_122 [1] : vector<64x36xf32> to vector<64xf32>
    %226 = vector.shape_cast %225 : vector<64xf32> to vector<64x1xf32>
    %cst_123 = arith.constant 3.600000e+01 : f32
    %227 = vector.broadcast %cst_123 : f32 to vector<64x1xf32>
    %228 = arith.divf %226, %227 : vector<64x1xf32>
    %229 = vector.broadcast %221 : vector<64x1xf32> to vector<64x36xf32>
    %230 = arith.subf %211, %229 : vector<64x36xf32>
    %cst_124 = arith.constant 9.99999974E-6 : f32
    %231 = vector.broadcast %cst_124 : f32 to vector<64x1xf32>
    %232 = arith.addf %228, %231 : vector<64x1xf32>
    %233 = math.rsqrt %232 : vector<64x1xf32>
    %234 = vector.broadcast %233 : vector<64x1xf32> to vector<64x36xf32>
    %235 = arith.mulf %230, %234 : vector<64x36xf32>
    %236 = vector.broadcast %212 : vector<1x36xf32> to vector<64x36xf32>
    %237 = arith.mulf %235, %236 : vector<64x36xf32>
    %238 = vector.broadcast %213 : vector<1x36xf32> to vector<64x36xf32>
    %239 = arith.addf %237, %238 : vector<64x36xf32>
    %cst_125 = arith.constant dense<0.000000e+00> : vector<64x64xf32>
    %240 = tpu.matmul %239, %216, %cst_125 {dimension_numbers = #tpu.dot_dimension_numbers<[1], [0], [0], [1], [0, 0, 1, 1], [], []>} : vector<64x36xf32>, vector<36x64xf32>, vector<64x64xf32> -> vector<64x64xf32>
    %241 = vector.broadcast %214 : vector<1x64xf32> to vector<64x64xf32>
    %242 = arith.addf %240, %241 : vector<64x64xf32>
    %cst_126 = arith.constant 0.000000e+00 : f32
    %243 = vector.broadcast %cst_126 : f32 to vector<64x64xf32>
    %244 = arith.maximumf %242, %243 : vector<64x64xf32>
    %cst_127 = arith.constant dense<0.000000e+00> : vector<64x36xf32>
    %245 = tpu.matmul %244, %217, %cst_127 {dimension_numbers = #tpu.dot_dimension_numbers<[1], [0], [0], [1], [0, 0, 1, 1], [], []>} : vector<64x64xf32>, vector<64x36xf32>, vector<64x36xf32> -> vector<64x36xf32>
    %246 = arith.addf %211, %245 : vector<64x36xf32>
    %247 = vector.broadcast %215 : vector<1x36xf32> to vector<64x36xf32>
    %248 = arith.addf %246, %247 : vector<64x36xf32>
    %c554 = arith.constant 554 : index
    %c0_128 = arith.constant 0 : index
    %249 = vector.load %arg2[%c554, %c0_128] : memref<928x128xf32, #tpu.memory_space<vmem>>, vector<1x36xf32>
    %c555 = arith.constant 555 : index
    %c0_129 = arith.constant 0 : index
    %250 = vector.load %arg2[%c555, %c0_129] : memref<928x128xf32, #tpu.memory_space<vmem>>, vector<1x36xf32>
    %c557 = arith.constant 557 : index
    %c0_130 = arith.constant 0 : index
    %251 = vector.load %arg2[%c557, %c0_130] : memref<928x128xf32, #tpu.memory_space<vmem>>, vector<1x64xf32>
    %c559 = arith.constant 559 : index
    %c0_131 = arith.constant 0 : index
    %252 = vector.load %arg2[%c559, %c0_131] : memref<928x128xf32, #tpu.memory_space<vmem>>, vector<1x36xf32>
    %c600 = arith.constant 600 : index
    %c0_132 = arith.constant 0 : index
    %253 = vector.load %arg2[%c600, %c0_132] : memref<928x128xf32, #tpu.memory_space<vmem>>, vector<36x64xf32>
    %c704 = arith.constant 704 : index
    %c0_133 = arith.constant 0 : index
    %254 = vector.load %arg2[%c704, %c0_133] : memref<928x128xf32, #tpu.memory_space<vmem>>, vector<64x36xf32>
    %cst_134 = arith.constant dense<0.000000e+00> : vector<64xf32>
    %255 = vector.multi_reduction <add>, %248, %cst_134 [1] : vector<64x36xf32> to vector<64xf32>
    %256 = vector.shape_cast %255 : vector<64xf32> to vector<64x1xf32>
    %cst_135 = arith.constant 3.600000e+01 : f32
    %257 = vector.broadcast %cst_135 : f32 to vector<64x1xf32>
    %258 = arith.divf %256, %257 : vector<64x1xf32>
    %259 = vector.broadcast %258 : vector<64x1xf32> to vector<64x36xf32>
    %260 = arith.subf %248, %259 : vector<64x36xf32>
    %261 = arith.mulf %260, %260 : vector<64x36xf32>
    %cst_136 = arith.constant dense<0.000000e+00> : vector<64xf32>
    %262 = vector.multi_reduction <add>, %261, %cst_136 [1] : vector<64x36xf32> to vector<64xf32>
    %263 = vector.shape_cast %262 : vector<64xf32> to vector<64x1xf32>
    %cst_137 = arith.constant 3.600000e+01 : f32
    %264 = vector.broadcast %cst_137 : f32 to vector<64x1xf32>
    %265 = arith.divf %263, %264 : vector<64x1xf32>
    %266 = vector.broadcast %258 : vector<64x1xf32> to vector<64x36xf32>
    %267 = arith.subf %248, %266 : vector<64x36xf32>
    %cst_138 = arith.constant 9.99999974E-6 : f32
    %268 = vector.broadcast %cst_138 : f32 to vector<64x1xf32>
    %269 = arith.addf %265, %268 : vector<64x1xf32>
    %270 = math.rsqrt %269 : vector<64x1xf32>
    %271 = vector.broadcast %270 : vector<64x1xf32> to vector<64x36xf32>
    %272 = arith.mulf %267, %271 : vector<64x36xf32>
    %273 = vector.broadcast %249 : vector<1x36xf32> to vector<64x36xf32>
    %274 = arith.mulf %272, %273 : vector<64x36xf32>
    %275 = vector.broadcast %250 : vector<1x36xf32> to vector<64x36xf32>
    %276 = arith.addf %274, %275 : vector<64x36xf32>
    %cst_139 = arith.constant dense<0.000000e+00> : vector<64x64xf32>
    %277 = tpu.matmul %276, %253, %cst_139 {dimension_numbers = #tpu.dot_dimension_numbers<[1], [0], [0], [1], [0, 0, 1, 1], [], []>} : vector<64x36xf32>, vector<36x64xf32>, vector<64x64xf32> -> vector<64x64xf32>
    %278 = vector.broadcast %251 : vector<1x64xf32> to vector<64x64xf32>
    %279 = arith.addf %277, %278 : vector<64x64xf32>
    %cst_140 = arith.constant 0.000000e+00 : f32
    %280 = vector.broadcast %cst_140 : f32 to vector<64x64xf32>
    %281 = arith.maximumf %279, %280 : vector<64x64xf32>
    %cst_141 = arith.constant dense<0.000000e+00> : vector<64x36xf32>
    %282 = tpu.matmul %281, %254, %cst_141 {dimension_numbers = #tpu.dot_dimension_numbers<[1], [0], [0], [1], [0, 0, 1, 1], [], []>} : vector<64x64xf32>, vector<64x36xf32>, vector<64x36xf32> -> vector<64x36xf32>
    %283 = arith.addf %248, %282 : vector<64x36xf32>
    %284 = vector.broadcast %252 : vector<1x36xf32> to vector<64x36xf32>
    %285 = arith.addf %283, %284 : vector<64x36xf32>
    %cst_142 = arith.constant dense<0xFF800000> : vector<64xf32>
    %286 = vector.multi_reduction <maximumf>, %285, %cst_142 [1] : vector<64x36xf32> to vector<64xf32>
    %287 = vector.shape_cast %286 : vector<64xf32> to vector<64x1xf32>
    %288 = vector.extract_strided_slice %287 {offsets = [0, 0], sizes = [32, 1], strides = [1, 1]} : vector<64x1xf32> to vector<32x1xf32>
    %c32_143 = arith.constant 32 : index
    %c0_144 = arith.constant 0 : index
    %289 = vector.load %arg5[%c32_143, %c0_144] : memref<64x2xf32, #tpu.memory_space<vmem>>, vector<32x1xf32>
    tpu.vector_store %arg5[%c32_143, %c0_144], %288 {strides = array<i32>} : memref<64x2xf32, #tpu.memory_space<vmem>>, vector<32x1xf32>,
    %290 = vector.extract_strided_slice %287 {offsets = [32, 0], sizes = [32, 1], strides = [1, 1]} : vector<64x1xf32> to vector<32x1xf32>
    %c32_145 = arith.constant 32 : index
    %c1_146 = arith.constant 1 : index
    %291 = vector.load %arg5[%c32_145, %c1_146] : memref<64x2xf32, #tpu.memory_space<vmem>>, vector<32x1xf32>
    tpu.vector_store %arg5[%c32_145, %c1_146], %290 {strides = array<i32>} : memref<64x2xf32, #tpu.memory_space<vmem>>, vector<32x1xf32>,
    %c32_147 = arith.constant 32 : index
    %c0_148 = arith.constant 0 : index
    %292 = vector.load %arg5[%c32_147, %c0_148] : memref<64x2xf32, #tpu.memory_space<vmem>>, vector<32x2xf32>
    %c768 = arith.constant 768 : index
    %c0_149 = arith.constant 0 : index
    %293 = vector.load %arg2[%c768, %c0_149] : memref<928x128xf32, #tpu.memory_space<vmem>>, vector<32x1xf32>
    %c768_150 = arith.constant 768 : index
    %c1_151 = arith.constant 1 : index
    %294 = vector.load %arg2[%c768_150, %c1_151] : memref<928x128xf32, #tpu.memory_space<vmem>>, vector<32x1xf32>
    %c768_152 = arith.constant 768 : index
    %c4_153 = arith.constant 4 : index
    %295 = vector.load %arg2[%c768_152, %c4_153] : memref<928x128xf32, #tpu.memory_space<vmem>>, vector<32x1xf32>
    %c768_154 = arith.constant 768 : index
    %c6_155 = arith.constant 6 : index
    %296 = vector.load %arg2[%c768_154, %c6_155] : memref<928x128xf32, #tpu.memory_space<vmem>>, vector<32x1xf32>
    %c800 = arith.constant 800 : index
    %c0_156 = arith.constant 0 : index
    %297 = vector.load %arg2[%c800, %c0_156] : memref<928x128xf32, #tpu.memory_space<vmem>>, vector<32x32xf32>
    %c864 = arith.constant 864 : index
    %c0_157 = arith.constant 0 : index
    %298 = vector.load %arg2[%c864, %c0_157] : memref<928x128xf32, #tpu.memory_space<vmem>>, vector<32x32xf32>
    %cst_158 = arith.constant dense<0.000000e+00> : vector<2xf32>
    %299 = vector.multi_reduction <add>, %292, %cst_158 [0] : vector<32x2xf32> to vector<2xf32>
    %300 = vector.shape_cast %299 : vector<2xf32> to vector<1x2xf32>
    %cst_159 = arith.constant 3.200000e+01 : f32
    %301 = vector.broadcast %cst_159 : f32 to vector<1x2xf32>
    %302 = arith.divf %300, %301 : vector<1x2xf32>
    %303 = vector.broadcast %302 : vector<1x2xf32> to vector<32x2xf32>
    %304 = arith.subf %292, %303 : vector<32x2xf32>
    %305 = arith.mulf %304, %304 : vector<32x2xf32>
    %cst_160 = arith.constant dense<0.000000e+00> : vector<2xf32>
    %306 = vector.multi_reduction <add>, %305, %cst_160 [0] : vector<32x2xf32> to vector<2xf32>
    %307 = vector.shape_cast %306 : vector<2xf32> to vector<1x2xf32>
    %cst_161 = arith.constant 3.200000e+01 : f32
    %308 = vector.broadcast %cst_161 : f32 to vector<1x2xf32>
    %309 = arith.divf %307, %308 : vector<1x2xf32>
    %310 = vector.broadcast %302 : vector<1x2xf32> to vector<32x2xf32>
    %311 = arith.subf %292, %310 : vector<32x2xf32>
    %cst_162 = arith.constant 9.99999974E-6 : f32
    %312 = vector.broadcast %cst_162 : f32 to vector<1x2xf32>
    %313 = arith.addf %309, %312 : vector<1x2xf32>
    %314 = math.rsqrt %313 : vector<1x2xf32>
    %315 = vector.broadcast %314 : vector<1x2xf32> to vector<32x2xf32>
    %316 = arith.mulf %311, %315 : vector<32x2xf32>
    %317 = vector.broadcast %293 : vector<32x1xf32> to vector<32x2xf32>
    %318 = arith.mulf %316, %317 : vector<32x2xf32>
    %319 = vector.broadcast %294 : vector<32x1xf32> to vector<32x2xf32>
    %320 = arith.addf %318, %319 : vector<32x2xf32>
    %cst_163 = arith.constant dense<0.000000e+00> : vector<32x2xf32>
    %321 = tpu.matmul %297, %320, %cst_163 {dimension_numbers = #tpu.dot_dimension_numbers<[1], [0], [0], [1], [0, 0, 1, 1], [], []>} : vector<32x32xf32>, vector<32x2xf32>, vector<32x2xf32> -> vector<32x2xf32>
    %322 = vector.broadcast %295 : vector<32x1xf32> to vector<32x2xf32>
    %323 = arith.addf %321, %322 : vector<32x2xf32>
    %cst_164 = arith.constant 0.000000e+00 : f32
    %324 = vector.broadcast %cst_164 : f32 to vector<32x2xf32>
    %325 = arith.maximumf %323, %324 : vector<32x2xf32>
    %cst_165 = arith.constant dense<0.000000e+00> : vector<32x2xf32>
    %326 = tpu.matmul %298, %325, %cst_165 {dimension_numbers = #tpu.dot_dimension_numbers<[1], [0], [0], [1], [0, 0, 1, 1], [], []>} : vector<32x32xf32>, vector<32x2xf32>, vector<32x2xf32> -> vector<32x2xf32>
    %327 = arith.addf %292, %326 : vector<32x2xf32>
    %328 = vector.broadcast %296 : vector<32x1xf32> to vector<32x2xf32>
    %329 = arith.addf %327, %328 : vector<32x2xf32>
    %c768_166 = arith.constant 768 : index
    %c2_167 = arith.constant 2 : index
    %330 = vector.load %arg2[%c768_166, %c2_167] : memref<928x128xf32, #tpu.memory_space<vmem>>, vector<32x1xf32>
    %c768_168 = arith.constant 768 : index
    %c3_169 = arith.constant 3 : index
    %331 = vector.load %arg2[%c768_168, %c3_169] : memref<928x128xf32, #tpu.memory_space<vmem>>, vector<32x1xf32>
    %c768_170 = arith.constant 768 : index
    %c5_171 = arith.constant 5 : index
    %332 = vector.load %arg2[%c768_170, %c5_171] : memref<928x128xf32, #tpu.memory_space<vmem>>, vector<32x1xf32>
    %c768_172 = arith.constant 768 : index
    %c7_173 = arith.constant 7 : index
    %333 = vector.load %arg2[%c768_172, %c7_173] : memref<928x128xf32, #tpu.memory_space<vmem>>, vector<32x1xf32>
    %c832 = arith.constant 832 : index
    %c0_174 = arith.constant 0 : index
    %334 = vector.load %arg2[%c832, %c0_174] : memref<928x128xf32, #tpu.memory_space<vmem>>, vector<32x32xf32>
    %c896 = arith.constant 896 : index
    %c0_175 = arith.constant 0 : index
    %335 = vector.load %arg2[%c896, %c0_175] : memref<928x128xf32, #tpu.memory_space<vmem>>, vector<32x32xf32>
    %cst_176 = arith.constant dense<0.000000e+00> : vector<2xf32>
    %336 = vector.multi_reduction <add>, %329, %cst_176 [0] : vector<32x2xf32> to vector<2xf32>
    %337 = vector.shape_cast %336 : vector<2xf32> to vector<1x2xf32>
    %cst_177 = arith.constant 3.200000e+01 : f32
    %338 = vector.broadcast %cst_177 : f32 to vector<1x2xf32>
    %339 = arith.divf %337, %338 : vector<1x2xf32>
    %340 = vector.broadcast %339 : vector<1x2xf32> to vector<32x2xf32>
    %341 = arith.subf %329, %340 : vector<32x2xf32>
    %342 = arith.mulf %341, %341 : vector<32x2xf32>
    %cst_178 = arith.constant dense<0.000000e+00> : vector<2xf32>
    %343 = vector.multi_reduction <add>, %342, %cst_178 [0] : vector<32x2xf32> to vector<2xf32>
    %344 = vector.shape_cast %343 : vector<2xf32> to vector<1x2xf32>
    %cst_179 = arith.constant 3.200000e+01 : f32
    %345 = vector.broadcast %cst_179 : f32 to vector<1x2xf32>
    %346 = arith.divf %344, %345 : vector<1x2xf32>
    %347 = vector.broadcast %339 : vector<1x2xf32> to vector<32x2xf32>
    %348 = arith.subf %329, %347 : vector<32x2xf32>
    %cst_180 = arith.constant 9.99999974E-6 : f32
    %349 = vector.broadcast %cst_180 : f32 to vector<1x2xf32>
    %350 = arith.addf %346, %349 : vector<1x2xf32>
    %351 = math.rsqrt %350 : vector<1x2xf32>
    %352 = vector.broadcast %351 : vector<1x2xf32> to vector<32x2xf32>
    %353 = arith.mulf %348, %352 : vector<32x2xf32>
    %354 = vector.broadcast %330 : vector<32x1xf32> to vector<32x2xf32>
    %355 = arith.mulf %353, %354 : vector<32x2xf32>
    %356 = vector.broadcast %331 : vector<32x1xf32> to vector<32x2xf32>
    %357 = arith.addf %355, %356 : vector<32x2xf32>
    %cst_181 = arith.constant dense<0.000000e+00> : vector<32x2xf32>
    %358 = tpu.matmul %334, %357, %cst_181 {dimension_numbers = #tpu.dot_dimension_numbers<[1], [0], [0], [1], [0, 0, 1, 1], [], []>} : vector<32x32xf32>, vector<32x2xf32>, vector<32x2xf32> -> vector<32x2xf32>
    %359 = vector.broadcast %332 : vector<32x1xf32> to vector<32x2xf32>
    %360 = arith.addf %358, %359 : vector<32x2xf32>
    %cst_182 = arith.constant 0.000000e+00 : f32
    %361 = vector.broadcast %cst_182 : f32 to vector<32x2xf32>
    %362 = arith.maximumf %360, %361 : vector<32x2xf32>
    %cst_183 = arith.constant dense<0.000000e+00> : vector<32x2xf32>
    %363 = tpu.matmul %335, %362, %cst_183 {dimension_numbers = #tpu.dot_dimension_numbers<[1], [0], [0], [1], [0, 0, 1, 1], [], []>} : vector<32x32xf32>, vector<32x2xf32>, vector<32x2xf32> -> vector<32x2xf32>
    %364 = arith.addf %329, %363 : vector<32x2xf32>
    %365 = vector.broadcast %333 : vector<32x1xf32> to vector<32x2xf32>
    %366 = arith.addf %364, %365 : vector<32x2xf32>
    %c768_184 = arith.constant 768 : index
    %c8_185 = arith.constant 8 : index
    %367 = vector.load %arg2[%c768_184, %c8_185] : memref<928x128xf32, #tpu.memory_space<vmem>>, vector<32x1xf32>
    %c768_186 = arith.constant 768 : index
    %c9_187 = arith.constant 9 : index
    %368 = vector.load %arg2[%c768_186, %c9_187] : memref<928x128xf32, #tpu.memory_space<vmem>>, vector<1x1xf32>
    %369 = vector.broadcast %367 : vector<32x1xf32> to vector<32x2xf32>
    %370 = arith.mulf %366, %369 : vector<32x2xf32>
    %cst_188 = arith.constant dense<0.000000e+00> : vector<2xf32>
    %371 = vector.multi_reduction <add>, %370, %cst_188 [0] : vector<32x2xf32> to vector<2xf32>
    %372 = vector.shape_cast %371 : vector<2xf32> to vector<1x2xf32>
    %373 = vector.broadcast %368 : vector<1x1xf32> to vector<1x2xf32>
    %374 = arith.addf %372, %373 : vector<1x2xf32>
    %c1_189 = arith.constant 1 : index
    %c0_190 = arith.constant 0 : index
    %375 = vector.load %arg3[%c1_189, %c0_190] : memref<2x2xf32, #tpu.memory_space<vmem>>, vector<1x2xf32>
    tpu.vector_store %arg3[%c1_189, %c0_190], %374 {strides = array<i32>} : memref<2x2xf32, #tpu.memory_space<vmem>>, vector<1x2xf32>,
    return
  }
}

</mosaic_0001>

<bundles_post_ra>
// kernel: ohe_critic_forward.1
= control target key start
LH: loop header
LB: loop body
LE: loop exit
PB: predicated region body
PF: predicated region fallthrough
CT: control target
= control target key end

     0   :  { %vm21_vm0 = vcmask 138240   ;;  %vm28_vm1 = vcmask 1040384   ;;  %v5729_v5 = vmov 0.0   ;;  %s7332_s0 = inlined_call_operand.vmem [shape: f32[17,98], index: 0, kind: input, shape index: {}]   ;;  %s7333_s1 = inlined_call_operand.vmem [shape: bf16[4,98,72], index: 1, kind: input, shape index: {}]   ;;  %s7334_s2 = inlined_call_operand.vmem [shape: f32[928,128], index: 2, kind: input, shape index: {}]   ;;  %s7335_s3 = inlined_call_operand.hbm [shape: f32[2,2], index: 3, kind: output, shape index: {}]  }
   0x1   :  { %v18_v0 = vld [vmem:[%s7332_s0] sm:$0xff]  ;;  %v19_v1 = vld [vmem:[%s7332_s0 + $0x8] sm:$0xff]  ;;  %v20_v3 = vld [vmem:[%s7332_s0 + $0x10] sm:$0x1]  ;;  %4885 = vmatprep.subr.bf16.mxu1 %v5729_v5 }
   0x2   :  { %v5329_v2 = vpack.c.bf16 %v19_v1, %v18_v0  ;;  %v16_v4 = vld [vmem:[%s7334_s2] sm:$0xff]  ;;  %v5602_v7 = vld [vmem:[%s7333_s1 + $0x8] sm:$0xff]   ;;  %v5603_v9 = vld [vmem:[%s7333_s1 + $0x10] sm:$0xff]  }
   0x3   :  { %4882 = vmatprep.mubr.msk.f32.mxu0 %vm21_vm0, %v16_v4  ;;  %v5601_v6 = vld [vmem:[%s7333_s1] sm:$0xff]   ;;  %v17_v8 = vld [vmem:[%s7334_s2 + $0x8] sm:$0xff]  ;;  %v5604_v10 = vld [vmem:[%s7333_s1 + $0x18] sm:$0xff]  }
   0x4   :  { %5330 = vmatprep.subr.bf16.mxu0 %v5329_v2  ;;  %4886 = vmatpush3.bf16.msra.mxu1 %v5601_v6  ;;  %v5605_v11 = vld [vmem:[%s7333_s1 + $0x20] sm:$0xff]   ;;  %v5606_v12 = vld [vmem:[%s7333_s1 + $0x28] sm:$0xff]  }
   0x5   :  { %5332 = vmatpush3.bf16.msra.mxu0 %v5329_v2  ;;  %4887 = vmatprep.subr.bf16.mxu1 %v5729_v5 }
   0x6   :  { %4880 = vmatprep.subr.msk.mxu0 %vm28_vm1, %v20_v3 }
   0x8   :  { %4888 = vmatpush3.bf16.msra.mxu1 %v5602_v7 }
   0x9   :  { %4881 = vmatpush3.msk.msra.mxu0 %vm28_vm1, %v20_v3  ;;  %4889 = vmatprep.subr.bf16.mxu1 %v5729_v5 }
   0xa   :  { %4883 = vmatmul.mubr.msk.f32.vlgmr.msra.gmra.mrb[0].mxu0 %vm21_vm0, %v17_v8 }
   0xc   :  { %4890 = vmatpush3.bf16.msra.mxu1 %v5603_v9 }
   0xd   :  { %4891 = vmatprep.subr.bf16.mxu1 %v5729_v5 }
  0x10   :  { %4892 = vmatpush3.bf16.msra.mxu1 %v5604_v10 }
  0x11   :  { %4893 = vmatprep.subr.bf16.mxu1 %v5729_v5 }
  0x14   :  { %4894 = vmatpush3.bf16.msra.mxu1 %v5605_v11 }
  0x15   :  { %4895 = vmatprep.subr.bf16.mxu1 %v5729_v5 }
  0x16   :  { %8 = vsyncpa [#allocation5], 0  ;;  %v5607_v13 = vld [vmem:[%s7333_s1 + $0x30] ss:$0 sps:$4 sm:$0x11]   ;;  %vm5730_vm2 = vmmov 0  }
  0x17   :  { %v171_v14 = vsel %vm28_vm1, %v5607_v13, 0  ;;  %4899 = vmatprep.mubr.msk.bf16.mxu1 %vm5730_vm2, %v5729_v5  ;;  %vm166_vm3 = vcmask 801792   ;;  %v5608_v19 = vld [vmem:[%s7333_s1 + $0x68] sm:$0xff]   ;;  %v5609_v21 = vld [vmem:[%s7333_s1 + $0x70] sm:$0xff]   ;;  %v5610_v22 = vld [vmem:[%s7333_s1 + $0x78] sm:$0xff]   ;;  %vm214_vm4 = vcmask 130048  }
  0x18   :  { %4896 = vmatpush3.bf16.msra.mxu1 %v5606_v12  ;;  %v5611_v23 = vld [vmem:[%s7333_s1 + $0x80] sm:$0xff]   ;;  %v5612_v24 = vld [vmem:[%s7333_s1 + $0x88] sm:$0xff]   ;;  %v5613_v25 = vld [vmem:[%s7333_s1 + $0x90] sm:$0xff]   ;;  %s5731_s25 = smov 112   ;;  %s5732_s30 = smov 96   ;;  %v5734_v9 = vmov 64  }
  0x19   :  { %4897 = vmatprep.subr.bf16.mxu1 %v5729_v5  ;;  %v5614_v26 = vld [vmem:[%s7333_s1 + $0x98] ss:$0 sps:$4 sm:$0x11]   ;;  %v5857_v28 = vld [vmem:[%s7334_s2 + $0x10] sm:$0xff]  ;;  %v5864_v29 = vld [vmem:[%s7334_s2 + $0x20] sm:$0xff]  ;;  %s5733_s18 = smov 80   ;;  %5556 = vset.pattern.permute.xlu1 %v5734_v9 }
  0x1a   :  { %v588_v27 = vsel %vm28_vm1, %v5614_v26, 0  ;;  %4907 = vmatprep.mubr.msk.f32.mxu0 %vm214_vm4, %v5857_v28  ;;  %429 = vrot.lane.b32.xlu0 %v5857_v28, %s5731_s25  ;;  %v5871_v30 = vld [vmem:[%s7334_s2 + $0x18] sm:$0xff]  ;;  %v5876_v31 = vld [vmem:[%s7334_s2 + $0x28] sm:$0xff]  ;;  %v5621_v43 = vld [vmem:[%s7333_s1 + $0x64] ss:$0 sps:$4 sm:$0x11]  }
  0x1b   :  { %433 = vrot.lane.b32.xlu1 %v5864_v29, %s5731_s25  ;;  %v5615_v37 = vld [vmem:[%s7333_s1 + $0x34] sm:$0xff]   ;;  %v5616_v38 = vld [vmem:[%s7333_s1 + $0x3c] sm:$0xff]   ;;  %v5617_v39 = vld [vmem:[%s7333_s1 + $0x44] sm:$0xff]   ;;  %v386_v49 = vsel %vm28_vm1, %v5621_v43, 0  ;;  %5555 = vset.pattern.permute.xlu0 %v5734_v9  ;;  %vm958_vm5 = vcmask 261120   ;;  %vm1088_vm6 = vcmask 293888  }
  0x1c   :  { %4898 = vmatpush3.bf16.msra.mxu1 %v171_v14  ;;  %v5618_v40 = vld [vmem:[%s7333_s1 + $0x4c] sm:$0xff]   ;;  %v5619_v41 = vld [vmem:[%s7333_s1 + $0x54] sm:$0xff]   ;;  %v5620_v42 = vld [vmem:[%s7333_s1 + $0x5c] sm:$0xff]   ;;  %vm1319_vm7 = vcmask 1043456   ;;  %vm1436_vm8 = vcmask 523264   ;;  %vm2048_vm9 = vcmask 7168  }
  0x1d   :  { %4941 = vmatprep.subr.bf16.mxu1 %v5729_v5  ;;  %v5622_v61 = vld [vmem:[%s7333_s1 + $0x9c] sm:$0xff]   ;;  %v5623_v63 = vld [vmem:[%s7333_s1 + $0xa4] sm:$0xff]   ;;  %v5624_v1 = vld [vmem:[%s7333_s1 + $0xac] sm:$0xff]   ;;  %vm2053_vm10 = vcmask 15368   ;;  %vm2074_vm11 = vcmask 15360   ;;  %vm2768_vm12 = vcmask 8192  }
  0x1e   :  { %431 = vrot.lane.b32.xlu0 %v5871_v30, %s5731_s25  ;;  %v5625_v2 = vld [vmem:[%s7333_s1 + $0xb4] sm:$0xff]   ;;  %v5626_v3 = vld [vmem:[%s7333_s1 + $0xbc] sm:$0xff]   ;;  %v5627_v4 = vld [vmem:[%s7333_s1 + $0xc4] sm:$0xff]  }
  0x1f   :  { %435 = vrot.lane.b32.xlu1 %v5876_v31, %s5731_s25  ;;  %v5628_v6 = vld [vmem:[%s7333_s1 + $0xcc] ss:$0 sps:$4 sm:$0x11]  }
  0x20   :  { %v790_v7 = vsel %vm28_vm1, %v5628_v6, 0 }
  0x22   :  { %631 = vrot.lane.b32.xlu0 %v5857_v28, %s5732_s30 }
  0x23   :  { %633 = vrot.lane.b32.xlu1 %v5871_v30, %s5732_s30 }
  0x26   :  { %635 = vrot.lane.b32.xlu0 %v5864_v29, %s5732_s30 }
  0x27   :  { %637 = vrot.lane.b32.xlu1 %v5876_v31, %s5732_s30 }
  0x2a   :  { %833 = vrot.lane.b32.xlu0 %v5857_v28, %s5733_s18 }
  0x2b   :  { %835 = vrot.lane.b32.xlu1 %v5871_v30, %s5733_s18 }
  0x2e   :  { %837 = vrot.lane.b32.xlu0 %v5864_v29, %s5733_s18 }
  0x2f   :  { %839 = vrot.lane.b32.xlu1 %v5876_v31, %s5733_s18  ;;  %s5735_s18 = smov 92  }
  0x32   :  { %313 = vperm.xlu0 %5555, %v5857_v28  }
  0x33   :  { %317 = vperm.xlu1 %5556, %v5871_v30  }
  0x36   :  { %325 = vperm.xlu0 %5555, %v5876_v31  }
  0x37   :  { %321 = vperm.xlu1 %5556, %v5864_v29  }
  0x8c   :  { %v430_v50 = vpop.permute.xlu0 %429 }
  0x8d   :  { %v434_v54 = vpop.permute.xlu1 %433 }
  0x90   :  { %v432_v57 = vpop.permute.xlu0 %431 }
  0x91   :  { %v436_v58 = vpop.permute.xlu1 %435 }
  0x94   :  { %v632_v59 = vpop.permute.xlu0 %631 }
  0x95   :  { %v634_v60 = vpop.permute.xlu1 %633 }
  0x98   :  { %v636_v62 = vpop.permute.xlu0 %635 }
  0x99   :  { %v638_v0 = vpop.permute.xlu1 %637 }
  0x9c   :  { %v834_v8 = vpop.permute.xlu0 %833 }
  0x9d   :  { %v836_v14 = vpop.permute.xlu1 %835 }
  0xdd   :  { %v4884_v15 = vpop.f32.mrb[0].mxu0 }
  0xde   :  { %v108_v16 = vmax.f32 %v4884_v15, 0.0  ;;  %v98_v17 = vpop.f32.mrb[1].mxu0  ;;  %v838_v15 = vpop.permute.xlu0 %837 }
  0xdf   :  { %v107_v18 = vmax.f32 %v98_v17, 0.0  ;;  %v942_v17 = vld [vmem:[%s7334_s2 + $0x30] sm:$0xff] }
  0xe1   :  { %v5821_v20 = vpack.c.bf16 %v108_v16, %v107_v18  ;;  %v840_v16 = vpop.permute.xlu1 %839 }
  0xe2   :  { %v314_v18 = vpop.permute.xlu0 %313 }
  0xe3   :  { %4900 = vmatmul.mubr.msk.bf16.vlgmr.msra.gmra.mrb[0].mxu1 %vm166_vm3, %v5821_v20 }
  0xe4   :  { %4942 = vmatpush3.bf16.msra.mxu1 %v5608_v19  ;;  %4955 = vmatprep.mubr.msk.bf16.mxu1 %vm5730_vm2, %v5729_v5 }
  0xe5   :  { %4943 = vmatprep.subr.bf16.mxu1 %v5729_v5  ;;  %v318_v19 = vpop.permute.xlu1 %317 }
  0xe8   :  { %4944 = vmatpush3.bf16.msra.mxu1 %v5609_v21 }
  0xe9   :  { %4945 = vmatprep.subr.bf16.mxu1 %v5729_v5  ;;  %v322_v28 = vpop.permute.xlu1 %321 }
  0xec   :  { %4946 = vmatpush3.bf16.msra.mxu1 %v5610_v22 }
  0xed   :  { %4947 = vmatprep.subr.bf16.mxu1 %v5729_v5 }
  0xf0   :  { %4948 = vmatpush3.bf16.msra.mxu1 %v5611_v23 }
  0xf1   :  { %4949 = vmatprep.subr.bf16.mxu1 %v5729_v5 }
  0xf4   :  { %4950 = vmatpush3.bf16.msra.mxu1 %v5612_v24 }
  0xf5   :  { %4951 = vmatprep.subr.bf16.mxu1 %v5729_v5 }
  0xf8   :  { %4952 = vmatpush3.bf16.msra.mxu1 %v5613_v25  ;;  %v326_v25 = vpop.permute.xlu0 %325 }
  0xf9   :  { %4953 = vmatprep.subr.bf16.mxu1 %v5729_v5 }
  0xfc   :  { %4954 = vmatpush3.bf16.msra.mxu1 %v588_v27 }
  0xff   :  { %4956 = vmatmul.mubr.msk.bf16.vlgmr.msra.gmra.mrb[4].mxu1 %vm166_vm3, %v5821_v20 }
 0x100   :  { %5005 = vmatprep.mubr.msk.f32.mxu1 %vm958_vm5, %v942_v17 }
 0x1b6   :  { %v207_v32 = vpop.f32.mrb[0].mxu1 }
 0x1b7   :  { %v4901_v33 = vpop.f32.mrb[1].mxu1 }
 0x1b8   :  { %v210_v34 = vpop.f32.mrb[2].mxu1 }
 0x1b9   :  { %v5333_v35 = vpack.c.bf16 %v210_v34, %v207_v32  ;;  %v4902_v36 = vpop.f32.mrb[3].mxu1 }
 0x1ba   :  { %v943_v36 = vld [vmem:[%s7334_s2 + $0x38] sm:$0xff] }
 0x1bb   :  { %5334 = vmatprep.subr.bf16.mxu0 %v5333_v35 }
 0x1bc   :  { %5336 = vmatpush3.bf16.msra.mxu0 %v5333_v35 }
 0x1bd   :  { %4913 = vmatprep.subr.bf16.mxu0 %v5729_v5 }
 0x1bf   :  { %4908 = vmatmul.mubr.msk.f32.vlgmr.msra.gmra.mrb[2].mxu0 %vm214_vm4, %v5871_v30 }
 0x1c0   :  { %4914 = vmatpush3.bf16.msra.mxu0 %v5615_v37  ;;  %4910 = vmatprep.mubr.msk.f32.mxu0 %vm214_vm4, %v5864_v29  ;;  %v944_v37 = vld [vmem:[%s7334_s2 + $0x40] sm:$0xff] }
 0x1c1   :  { %4915 = vmatprep.subr.bf16.mxu0 %v5729_v5 }
 0x1c3   :  { %4911 = vmatmul.mubr.msk.f32.gmra.mrb[4].mxu0 %vm214_vm4, %v5876_v31 }
 0x1c4   :  { %4916 = vmatpush3.bf16.msra.mxu0 %v5616_v38  ;;  %4927 = vmatprep.mubr.msk.bf16.mxu0 %vm5730_vm2, %v5729_v5  ;;  %v945_v38 = vld [vmem:[%s7334_s2 + $0x48] sm:$0xff] }
 0x1c5   :  { %4917 = vmatprep.subr.bf16.mxu0 %v5729_v5 }
 0x1c8   :  { %4918 = vmatpush3.bf16.msra.mxu0 %v5617_v39  ;;  %v951_v39 = vld [vmem:[%s7334_s2 + $0x78] sm:$0xff] }
 0x1c9   :  { %4919 = vmatprep.subr.bf16.mxu0 %v5729_v5 }
 0x1cc   :  { %4920 = vmatpush3.bf16.msra.mxu0 %v5618_v40  ;;  %v950_v40 = vld [vmem:[%s7334_s2 + $0x70] sm:$0xff] }
 0x1cd   :  { %4921 = vmatprep.subr.bf16.mxu0 %v5729_v5 }
 0x1d0   :  { %4922 = vmatpush3.bf16.msra.mxu0 %v5619_v41 }
 0x1d1   :  { %4923 = vmatprep.subr.bf16.mxu0 %v5729_v5 }
 0x1d2   :  { %v624_v44 = vpop.f32.mrb[4].mxu1 }
 0x1d3   :  { %v4957_v45 = vpop.f32.mrb[5].mxu1 }
 0x1d4   :  { %v627_v46 = vpop.f32.mrb[6].mxu1  ;;  %4924 = vmatpush3.bf16.msra.mxu0 %v5620_v42  ;;  %v953_v45 = vld [vmem:[%s7334_s2 + $0x88] sm:$0xff] }
 0x1d5   :  { %v5341_v47 = vpack.c.bf16 %v627_v46, %v624_v44  ;;  %v4958_v48 = vpop.f32.mrb[7].mxu1  ;;  %4925 = vmatprep.subr.bf16.mxu0 %v5729_v5  ;;  %v952_v46 = vld [vmem:[%s7334_s2 + $0x80] sm:$0xff] }
 0x1d8   :  { %4926 = vmatpush3.bf16.msra.mxu0 %v386_v49 }
 0x1db   :  { %4928 = vmatmul.mubr.msk.bf16.vlgmr.msra.gmra.mrb[8].mxu0 %vm166_vm3, %v5821_v20 }
 0x1dc   :  { %4935 = vmatprep.mubr.msk.f32.mxu0 %vm214_vm4, %v430_v50 }
 0x2ae   :  { %v422_v51 = vpop.f32.mrb[8].mxu0 }
 0x2af   :  { %v4929_v52 = vpop.f32.mrb[9].mxu0 }
 0x2b0   :  { %v425_v53 = vpop.f32.mrb[10].mxu0 }
 0x2b1   :  { %v5337_v55 = vpack.c.bf16 %v425_v53, %v422_v51  ;;  %v4930_v56 = vpop.f32.mrb[11].mxu0 }
 0x2b3   :  { %5338 = vmatprep.subr.bf16.mxu0 %v5337_v55 }
 0x2b4   :  { %5340 = vmatpush3.bf16.msra.mxu0 %v5337_v55 }
 0x2b5   :  { %5342 = vmatprep.subr.bf16.mxu0 %v5341_v47 }
 0x2b7   :  { %4936 = vmatmul.mubr.msk.f32.vlgmr.msra.gmra.mrb[2].mxu0 %vm214_vm4, %v432_v57 }
 0x2b8   :  { %4938 = vmatprep.mubr.msk.f32.mxu0 %vm214_vm4, %v434_v54  ;;  %5344 = vmatpush3.bf16.msra.mxu0 %v5341_v47 }
 0x2b9   :  { %4969 = vmatprep.subr.bf16.mxu0 %v5729_v5 }
 0x2bb   :  { %4939 = vmatmul.mubr.msk.f32.gmra.mrb[4].mxu0 %vm214_vm4, %v436_v58 }
 0x2bc   :  { %4963 = vmatprep.mubr.msk.f32.mxu0 %vm214_vm4, %v632_v59 }
 0x2bf   :  { %4964 = vmatmul.mubr.msk.f32.vlgmr.msra.gmra.mrb[2].mxu0 %vm214_vm4, %v634_v60 }
 0x2c0   :  { %4970 = vmatpush3.bf16.msra.mxu0 %v5622_v61  ;;  %4966 = vmatprep.mubr.msk.f32.mxu0 %vm214_vm4, %v636_v62 }
 0x2c1   :  { %4971 = vmatprep.subr.bf16.mxu0 %v5729_v5 }
 0x2c3   :  { %4967 = vmatmul.mubr.msk.f32.gmra.mrb[4].mxu0 %vm214_vm4, %v638_v0 }
 0x2c4   :  { %4972 = vmatpush3.bf16.msra.mxu0 %v5623_v63  ;;  %4983 = vmatprep.mubr.msk.bf16.mxu0 %vm5730_vm2, %v5729_v5 }
 0x2c5   :  { %4973 = vmatprep.subr.bf16.mxu0 %v5729_v5 }
 0x2c8   :  { %4974 = vmatpush3.bf16.msra.mxu0 %v5624_v1 }
 0x2c9   :  { %4975 = vmatprep.subr.bf16.mxu0 %v5729_v5 }
 0x2cc   :  { %4976 = vmatpush3.bf16.msra.mxu0 %v5625_v2 }
 0x2cd   :  { %4977 = vmatprep.subr.bf16.mxu0 %v5729_v5 }
 0x2d0   :  { %4978 = vmatpush3.bf16.msra.mxu0 %v5626_v3 }
 0x2d1   :  { %4979 = vmatprep.subr.bf16.mxu0 %v5729_v5 }
 0x2d4   :  { %4980 = vmatpush3.bf16.msra.mxu0 %v5627_v4 }
 0x2d5   :  { %4981 = vmatprep.subr.bf16.mxu0 %v5729_v5 }
 0x2d8   :  { %4982 = vmatpush3.bf16.msra.mxu0 %v790_v7 }
 0x2db   :  { %4984 = vmatmul.mubr.msk.bf16.vlgmr.msra.gmra.mrb[12].mxu0 %vm166_vm3, %v5821_v20 }
 0x2dc   :  { %4991 = vmatprep.mubr.msk.f32.mxu0 %vm214_vm4, %v834_v8 }
 0x3ae   :  { %v826_v5 = vpop.f32.mrb[12].mxu0 }
 0x3af   :  { %v4985_v10 = vpop.f32.mrb[13].mxu0 }
 0x3b0   :  { %v829_v11 = vpop.f32.mrb[14].mxu0 }
 0x3b1   :  { %v5345_v12 = vpack.c.bf16 %v829_v11, %v826_v5  ;;  %v4986_v13 = vpop.f32.mrb[15].mxu0 }
 0x3b3   :  { %5346 = vmatprep.subr.bf16.mxu0 %v5345_v12 }
 0x3b4   :  { %5348 = vmatpush3.bf16.msra.mxu0 %v5345_v12 }
 0x3b7   :  { %4992 = vmatmul.mubr.msk.f32.vlgmr.msra.gmra.mrb[2].mxu0 %vm214_vm4, %v836_v14 }
 0x3b8   :  { %4994 = vmatprep.mubr.msk.f32.mxu0 %vm214_vm4, %v838_v15 }
 0x3bb   :  { %4995 = vmatmul.mubr.msk.f32.gmra.mrb[4].mxu0 %vm214_vm4, %v840_v16 }
 0x48a   :  { %v4993_v20 = vpop.f32.mrb[2].mxu0 }
 0x48b   :  { %v5521_v21 = vadd.f32 %v4993_v20, %v318_v19  ;;  %v915_v22 = vpop.f32.mrb[3].mxu0 }
 0x48c   :  { %v5522_v23 = vadd.f32 %v915_v22, %v314_v18 }
 0x48d   :  { %v939_v24 = vmax.f32 %v5521_v21, 0.0 }
 0x48e   :  { %v938_v26 = vmax.f32 %v5522_v23, 0.0  ;;  %v4996_v27 = vpop.f32.mrb[4].mxu0 }
 0x48f   :  { %v5523_v29 = vadd.f32 %v4996_v27, %v326_v25  ;;  %v925_v30 = vpop.f32.mrb[5].mxu0  ;;  %v1149_v27 = vld [vmem:[%s7334_s2 + $0xb8] sm:$0xff] }
 0x490   :  { %v5349_v31 = vpack.c.bf16 %v939_v24, %v938_v26  ;;  %v5524_v32 = vadd.f32 %v925_v30, %v322_v28  ;;  %v1150_v28 = vld [vmem:[%s7334_s2 + $0xc0] sm:$0xff]  ;;  %v946_v30 = vld [vmem:[%s7334_s2 + $0x50] sm:$0xff] }
 0x491   :  { %v941_v33 = vmax.f32 %v5523_v29, 0.0  ;;  %v5357_v29 = vpack.c.bf16 %v1150_v28, %v1149_v27  ;;  %v6146_v27 = vld [vmem:[%s7334_s2 + $0xb1] ss:$0 sm:$0xff] }
 0x492   :  { %v940_v34 = vmax.f32 %v5524_v32, 0.0  ;;  %5350 = vmatprep.subr.bf16.mxu1 %v5349_v31  ;;  %v1151_v32 = vld [vmem:[%s7334_s2 + $0xc8] sm:$0xff] }
 0x493   :  { %5352 = vmatpush3.bf16.msra.mxu1 %v5349_v31  ;;  %v947_v31 = vld [vmem:[%s7334_s2 + $0x58] sm:$0xff] }
 0x494   :  { %v5353_v35 = vpack.c.bf16 %v941_v33, %v940_v34  ;;  %v1152_v33 = vld [vmem:[%s7334_s2 + $0xd0] sm:$0xff]  ;;  %v948_v34 = vld [vmem:[%s7334_s2 + $0x60] sm:$0xff] }
 0x496   :  { %5354 = vmatprep.subr.bf16.mxu1 %v5353_v35 }
 0x497   :  { %5356 = vmatpush3.bf16.msra.mxu1 %v5353_v35  ;;  %v5361_v35 = vpack.c.bf16 %v1152_v33, %v1151_v32 }
 0x498   :  { %5358 = vmatprep.subr.bf16.mxu1 %v5357_v29 }
 0x49a   :  { %5006 = vmatmul.mubr.msk.f32.vlgmr.msra.gmra.mrb[8].mxu1 %vm958_vm5, %v943_v36  ;;  %v949_v36 = vld [vmem:[%s7334_s2 + $0x68] sm:$0xff] }
 0x49b   :  { %5008 = vmatprep.mubr.msk.f32.mxu1 %vm958_vm5, %v944_v37  ;;  %5360 = vmatpush3.bf16.msra.mxu1 %v5357_v29  ;;  %v1153_v37 = vld [vmem:[%s7334_s2 + $0xd8] sm:$0xf]  ;;  %v1157_v29 = vld [vmem:[%s7334_s2 + $0x120] sm:$0xff] }
 0x49c   :  { %5362 = vmatprep.subr.bf16.mxu1 %v5361_v35 }
 0x49e   :  { %5009 = vmatmul.mubr.msk.f32.gmra.mrb[10].mxu1 %vm958_vm5, %v945_v38 }
 0x49f   :  { %5011 = vmatprep.mubr.msk.f32.mxu1 %vm958_vm5, %v946_v30  ;;  %5364 = vmatpush3.bf16.msra.mxu1 %v5361_v35 }
 0x4a0   :  { %5025 = vmatprep.subr.msk.mxu1 %vm1319_vm7, %v1153_v37 }
 0x4a2   :  { %5012 = vmatmul.mubr.msk.f32.gmra.mrb[12].mxu1 %vm958_vm5, %v947_v31 }
 0x4a3   :  { %5014 = vmatprep.mubr.msk.f32.mxu1 %vm958_vm5, %v948_v34  ;;  %5026 = vmatpush3.msk.msra.mxu1 %vm1319_vm7, %v1153_v37  ;;  %v1158_v37 = vld [vmem:[%s7334_s2 + $0x128] sm:$0xff] }
 0x4a6   :  { %5015 = vmatmul.mubr.msk.f32.gmra.mrb[14].mxu1 %vm958_vm5, %v949_v36 }
 0x56d   :  { %v5007_v41 = vpop.f32.mrb[8].mxu1 }
 0x56e   :  { %v1055_v42 = vadd.f32 %v5007_v41, %v951_v39  ;;  %v1049_v43 = vpop.f32.mrb[9].mxu1 }
 0x56f   :  { %v1050_v44 = vadd.f32 %v1049_v43, %v950_v40 }
 0x570   :  { %1090 = vst.msk [vmem:[#allocation2 + $0x8] sm:$0xff] %vm1088_vm6, %v1055_v42  ;;  %1099 = vrot.lane.b32.xlu0 %v1055_v42, %s5735_s18 }
 0x571   :  { %1089 = vst.msk [vmem:[#allocation2] sm:$0xff] %vm1088_vm6, %v1050_v44  ;;  %v5010_v47 = vpop.f32.mrb[10].mxu1  ;;  %1097 = vrot.lane.b32.xlu1 %v1050_v44, %s5735_s18 }
 0x572   :  { %v1065_v48 = vadd.f32 %v5010_v47, %v953_v45  ;;  %v1059_v49 = vpop.f32.mrb[11].mxu1 }
 0x573   :  { %v1060_v50 = vadd.f32 %v1059_v49, %v952_v46 }
 0x574   :  { %1092 = vst.msk [vmem:[#allocation2 + $0x18] sm:$0xff] %vm1088_vm6, %v1065_v48  ;;  %1103 = vrot.lane.b32.xlu0 %v1065_v48, %s5735_s18 }
 0x575   :  { %1091 = vst.msk [vmem:[#allocation2 + $0x10] sm:$0xff] %vm1088_vm6, %v1060_v50  ;;  %1101 = vrot.lane.b32.xlu1 %v1060_v50, %s5735_s18 }
 0x577   :  { %v6012_v51 = vld [vmem:[#allocation2 + $0x8] sm:$0xff] }
 0x578   :  { %v1165_v52 = vsel %vm1088_vm6, %v6012_v51, 0.0  ;;  %v6018_v54 = vld [vmem:[#allocation2] sm:$0xff] }
 0x579   :  { %v1162_v56 = vsel %vm1088_vm6, %v6018_v54, 0.0 }
 0x57b   :  { %v6024_v57 = vld [vmem:[#allocation2 + $0x18] sm:$0xff] }
 0x57c   :  { %v6016_v53 = vld [vmem:[#allocation2 + $0x10] sm:$0xff]  ;;  %v1171_v58 = vsel %vm1088_vm6, %v6024_v57, 0.0 }
 0x57d   :  { %v1168_v55 = vsel %vm1088_vm6, %v6016_v53, 0.0 }
 0x593   :  { %1166 = vadd.xlane.f32.xlu0 %v1165_v52 }
 0x597   :  { %1169 = vadd.xlane.f32.xlu0 %v1168_v55 }
 0x599   :  { %1163 = vadd.xlane.f32.xlu1 %v1162_v56 }
 0x59d   :  { %1172 = vadd.xlane.f32.xlu1 %v1171_v58 }
 0x5e2   :  { %v1100_v59 = vpop.permute.xlu0 %1099 }
 0x5e3   :  { %1110 = vst.msk [vmem:[#allocation2 + $0x28] sm:$0xff] %vm1088_vm6, %v1100_v59  ;;  %v1098_v60 = vpop.permute.xlu1 %1097 }
 0x5e4   :  { %1109 = vst.msk [vmem:[#allocation2 + $0x20] sm:$0xff] %vm1088_vm6, %v1098_v60 }
 0x5e6   :  { %v1104_v61 = vpop.permute.xlu0 %1103 }
 0x5e7   :  { %1112 = vst.msk [vmem:[#allocation2 + $0x38] sm:$0xff] %vm1088_vm6, %v1104_v61  ;;  %v1102_v62 = vpop.permute.xlu1 %1101 }
 0x5e8   :  { %1111 = vst.msk [vmem:[#allocation2 + $0x30] sm:$0xff] %vm1088_vm6, %v1102_v62  ;;  %v1154_v62 = vld [vmem:[%s7334_s2 + $0x108] sm:$0xff] }
 0x5ea   :  { %v6032_v63 = vld [vmem:[#allocation2 + $0x28] sm:$0xff] }
 0x5eb   :  { %v1177_v0 = vsel %vm1088_vm6, %v6032_v63, 0.0  ;;  %v6036_v1 = vld [vmem:[#allocation2 + $0x20] sm:$0xff] }
 0x5ec   :  { %1178 = vadd.xlane.f32.xlu1 %v1177_v0  ;;  %v1174_v2 = vsel %vm1088_vm6, %v6036_v1, 0.0  ;;  %v1155_v0 = vld [vmem:[%s7334_s2 + $0x110] sm:$0xff] }
 0x5ed   :  { %1175 = vadd.xlane.f32.xlu0 %v1174_v2  ;;  %v5365_v2 = vpack.c.bf16 %v1155_v0, %v1154_v62  ;;  %v954_v62 = vld [vmem:[%s7334_s2 + $0x90] sm:$0xff]  ;;  %v5013_v0 = vpop.f32.mrb[12].mxu1 }
 0x5ee   :  { %v6040_v3 = vld [vmem:[#allocation2 + $0x38] sm:$0xff] }
 0x5ef   :  { %v1183_v4 = vsel %vm1088_vm6, %v6040_v3, 0.0  ;;  %v6044_v6 = vld [vmem:[#allocation2 + $0x30] sm:$0xff]  ;;  %5366 = vmatprep.subr.bf16.mxu1 %v5365_v2 }
 0x5f0   :  { %1184 = vadd.xlane.f32.xlu1 %v1183_v4  ;;  %v1180_v7 = vsel %vm1088_vm6, %v6044_v6, 0.0 }
 0x5f1   :  { %1181 = vadd.xlane.f32.xlu0 %v1180_v7 }
 0x620   :  { %v1167_v8 = vpop.xlane.xlu0 %1166 }
 0x621   :  { %v1188_v9 = vmul.f32 0.027777778, %v1167_v8 }
 0x623   :  { %v6049_v5 = vsub.f32 %v6012_v51, %v1188_v9 }
 0x624   :  { %v1170_v10 = vpop.xlane.xlu0 %1169 }
 0x625   :  { %v1189_v11 = vmul.f32 0.027777778, %v1170_v10  ;;  %v1204_v12 = vmul.f32 %v6049_v5, %v6049_v5 }
 0x626   :  { %v1164_v13 = vpop.xlane.xlu1 %1163 }
 0x627   :  { %v1187_v14 = vmul.f32 0.027777778, %v1164_v13  ;;  %v1214_v15 = vsel %vm1088_vm6, %v1204_v12, 0.0  ;;  %v6055_v16 = vsub.f32 %v6016_v53, %v1189_v11 }
 0x628   :  { %1215 = vadd.xlane.f32.xlu1 %v1214_v15 }
 0x629   :  { %v6058_v17 = vsub.f32 %v6018_v54, %v1187_v14  ;;  %v1205_v23 = vmul.f32 %v6055_v16, %v6055_v16 }
 0x62a   :  { %v1173_v18 = vpop.xlane.xlu1 %1172 }
 0x62b   :  { %v1190_v19 = vmul.f32 0.027777778, %v1173_v18  ;;  %v1203_v20 = vmul.f32 %v6058_v17, %v6058_v17  ;;  %v1217_v25 = vsel %vm1088_vm6, %v1205_v23, 0.0  ;;  %v6139_v23 = vld [vmem:[%s7334_s2 + $0xb0] ss:$0 sm:$0xff] }
 0x62d   :  { %v6063_v21 = vsub.f32 %v6024_v57, %v1190_v19  ;;  %v1211_v22 = vsel %vm1088_vm6, %v1203_v20, 0.0 }
 0x62e   :  { %1212 = vadd.xlane.f32.xlu0 %v1211_v22 }
 0x62f   :  { %v1206_v24 = vmul.f32 %v6063_v21, %v6063_v21 }
 0x631   :  { %v1220_v26 = vsel %vm1088_vm6, %v1206_v24, 0.0 }
 0x632   :  { %1218 = vadd.xlane.f32.xlu0 %v1217_v25  ;;  %1221 = vadd.xlane.f32.xlu1 %v1220_v26 }
 0x679   :  { %v1179_v38 = vpop.xlane.xlu1 %1178 }
 0x67a   :  { %v1192_v39 = vmul.f32 0.027777778, %v1179_v38  ;;  %v1176_v40 = vpop.xlane.xlu0 %1175  ;;  %v1159_v38 = vld [vmem:[%s7334_s2 + $0x130] sm:$0xff] }
 0x67b   :  { %v1191_v41 = vmul.f32 0.027777778, %v1176_v40  ;;  %v5373_v40 = vpack.c.bf16 %v1159_v38, %v1158_v37 }
 0x67c   :  { %v6106_v42 = vsub.f32 %v6032_v63, %v1192_v39 }
 0x67d   :  { %v6109_v43 = vsub.f32 %v6036_v1, %v1191_v41  ;;  %v1185_v44 = vpop.xlane.xlu1 %1184 }
 0x67e   :  { %v1194_v45 = vmul.f32 0.027777778, %v1185_v44  ;;  %v1182_v46 = vpop.xlane.xlu0 %1181  ;;  %v1208_v47 = vmul.f32 %v6106_v42, %v6106_v42 }
 0x67f   :  { %v1193_v48 = vmul.f32 0.027777778, %v1182_v46  ;;  %v1207_v49 = vmul.f32 %v6109_v43, %v6109_v43 }
 0x680   :  { %v6116_v50 = vsub.f32 %v6040_v3, %v1194_v45  ;;  %v1226_v52 = vsel %vm1088_vm6, %v1208_v47, 0.0 }
 0x681   :  { %v6120_v55 = vsub.f32 %v6044_v6, %v1193_v48  ;;  %1227 = vadd.xlane.f32.xlu1 %v1226_v52  ;;  %v1223_v56 = vsel %vm1088_vm6, %v1207_v49, 0.0 }
 0x682   :  { %1224 = vadd.xlane.f32.xlu0 %v1223_v56  ;;  %v1210_v58 = vmul.f32 %v6116_v50, %v6116_v50 }
 0x683   :  { %v1209_v59 = vmul.f32 %v6120_v55, %v6120_v55 }
 0x684   :  { %v1232_v60 = vsel %vm1088_vm6, %v1210_v58, 0.0 }
 0x685   :  { %1233 = vadd.xlane.f32.xlu1 %v1232_v60  ;;  %v1229_v61 = vsel %vm1088_vm6, %v1209_v59, 0.0 }
 0x686   :  { %1230 = vadd.xlane.f32.xlu0 %v1229_v61  ;;  %v955_v61 = vld [vmem:[%s7334_s2 + $0x98] sm:$0xff] }
 0x6b5   :  { %v1216_v4 = vpop.xlane.xlu1 %1215 }
 0x6b6   :  { %v1236_v7 = vmul.f32 0.027777778, %v1216_v4  ;;  %v6179_v4 = vadd.f32 %v5013_v0, %v955_v61  ;;  %v4527_v61 = vld [vmem:[%s7334_s2 + $0xb6] ss:$0 sm:$0xff] }
 0x6b8   :  { %v1244_v8 = vadd.f32 1e-05, %v1236_v7  ;;  %v1069_v7 = vpop.f32.mrb[13].mxu1  ;;  %1114 = vst.msk [vmem:[#allocation2 + $0x48] sm:$0xff] %vm1088_vm6, %v6179_v4 }
 0x6ba   :  { %5629 = vrsqrt.f32 %v1244_v8 }
 0x6bb   :  { %v1213_v9 = vpop.xlane.xlu0 %1212 }
 0x6bc   :  { %v1235_v10 = vmul.f32 0.027777778, %v1213_v9 }
 0x6be   :  { %v1243_v11 = vadd.f32 1e-05, %v1235_v10  ;;  %v6182_v10 = vadd.f32 %v1069_v7, %v954_v62 }
 0x6bf   :  { %v1219_v12 = vpop.xlane.xlu0 %1218  ;;  %v1222_v13 = vpop.xlane.xlu1 %1221 }
 0x6c0   :  { %5631 = vrsqrt.f32 %v1243_v11  ;;  %v1237_v14 = vmul.f32 0.027777778, %v1219_v12  ;;  %v1238_v15 = vmul.f32 0.027777778, %v1222_v13  ;;  %v957_v11 = vld [vmem:[%s7334_s2 + $0xa8] sm:$0xff]  ;;  %v956_v13 = vld [vmem:[%s7334_s2 + $0xa0] sm:$0xff] }
 0x6c1   :  { %1113 = vst.msk [vmem:[#allocation2 + $0x40] sm:$0xff] %vm1088_vm6, %v6182_v10 }
 0x6c2   :  { %v1245_v18 = vadd.f32 1e-05, %v1237_v14  ;;  %v1246_v19 = vadd.f32 1e-05, %v1238_v15 }
 0x6c4   :  { %5633 = vrsqrt.f32 %v1245_v18  ;;  %v5630_v20 = vpop.eup %5629 }
 0x6c5   :  { %5635 = vrsqrt.f32 %v1246_v19  ;;  %v1260_v22 = vmul.f32 %v5630_v20, %v6049_v5  ;;  %v1156_v5 = vld [vmem:[%s7334_s2 + $0x118] sm:$0xff] }
 0x6c6   :  { %v5369_v35 = vpack.c.bf16 %v1157_v29, %v1156_v5  ;;  %v1161_v29 = vld [vmem:[%s7334_s2 + $0x140] sm:$0xff] }
 0x6c7   :  { %v1272_v26 = vmul.f32 %v6139_v23, %v1260_v22 }
 0x6c9   :  { %v1284_v33 = vadd.f32 %v6146_v27, %v1272_v26 }
 0x6ca   :  { %v5632_v24 = vpop.eup %5631 }
 0x6cb   :  { %v1259_v25 = vmul.f32 %v5632_v24, %v6058_v17 }
 0x6cd   :  { %v1271_v28 = vmul.f32 %v6139_v23, %v1259_v25 }
 0x6ce   :  { %v5634_v30 = vpop.eup %5633 }
 0x6cf   :  { %v5636_v31 = vpop.eup %5635  ;;  %v1283_v17 = vadd.f32 %v6146_v27, %v1271_v28  ;;  %v1261_v32 = vmul.f32 %v5634_v30, %v6055_v16 }
 0x6d0   :  { %v1262_v34 = vmul.f32 %v5636_v31, %v6063_v21 }
 0x6d1   :  { %5027 = vmatprep.mubr.msk.f32.mxu1 %vm1088_vm6, %v1283_v17  ;;  %v1273_v36 = vmul.f32 %v6139_v23, %v1261_v32 }
 0x6d2   :  { %5028 = vmatmul.mubr.msk.f32.vlgmr.msra.gmra.mrb[16].mxu1 %vm1088_vm6, %v1284_v33  ;;  %v1274_v16 = vmul.f32 %v6139_v23, %v1262_v34 }
 0x6d3   :  { %v1285_v39 = vadd.f32 %v6146_v27, %v1273_v36  ;;  %5368 = vmatpush3.bf16.msra.mxu1 %v5365_v2 }
 0x6d4   :  { %v1286_v21 = vadd.f32 %v6146_v27, %v1274_v16  ;;  %5370 = vmatprep.subr.bf16.mxu1 %v5369_v35 }
 0x6d5   :  { %5030 = vmatprep.mubr.msk.f32.mxu1 %vm1088_vm6, %v1285_v39 }
 0x6d6   :  { %5031 = vmatmul.mubr.msk.f32.gmra.mrb[18].mxu1 %vm1088_vm6, %v1286_v21 }
 0x6d7   :  { %5372 = vmatpush3.bf16.msra.mxu1 %v5369_v35 }
 0x6d8   :  { %5374 = vmatprep.subr.bf16.mxu1 %v5373_v40 }
 0x6db   :  { %5376 = vmatpush3.bf16.msra.mxu1 %v5373_v40 }
 0x70e   :  { %v1228_v41 = vpop.xlane.xlu1 %1227 }
 0x70f   :  { %v1240_v44 = vmul.f32 0.027777778, %v1228_v41  ;;  %v1225_v45 = vpop.xlane.xlu0 %1224 }
 0x710   :  { %v1239_v46 = vmul.f32 0.027777778, %v1225_v45 }
 0x711   :  { %v1248_v47 = vadd.f32 1e-05, %v1240_v44 }
 0x712   :  { %v1247_v48 = vadd.f32 1e-05, %v1239_v46  ;;  %v1234_v49 = vpop.xlane.xlu1 %1233 }
 0x713   :  { %5637 = vrsqrt.f32 %v1248_v47  ;;  %v1242_v52 = vmul.f32 0.027777778, %v1234_v49  ;;  %v1231_v56 = vpop.xlane.xlu0 %1230 }
 0x714   :  { %5639 = vrsqrt.f32 %v1247_v48  ;;  %v1241_v58 = vmul.f32 0.027777778, %v1231_v56 }
 0x715   :  { %v1250_v59 = vadd.f32 1e-05, %v1242_v52 }
 0x716   :  { %v1249_v60 = vadd.f32 1e-05, %v1241_v58 }
 0x717   :  { %5641 = vrsqrt.f32 %v1250_v59 }
 0x718   :  { %5643 = vrsqrt.f32 %v1249_v60 }
 0x71d   :  { %v5638_v2 = vpop.eup %5637 }
 0x71e   :  { %v5640_v8 = vpop.eup %5639  ;;  %v1264_v9 = vmul.f32 %v5638_v2, %v6106_v42  ;;  %v5016_v42 = vpop.f32.mrb[14].mxu1 }
 0x71f   :  { %v1263_v12 = vmul.f32 %v5640_v8, %v6109_v43  ;;  %v6197_v19 = vadd.f32 %v5016_v42, %v957_v11  ;;  %v1079_v20 = vpop.f32.mrb[15].mxu1 }
 0x720   :  { %v1276_v14 = vmul.f32 %v6139_v23, %v1264_v9  ;;  %v6200_v24 = vadd.f32 %v1079_v20, %v956_v13 }
 0x721   :  { %v5642_v15 = vpop.eup %5641  ;;  %v1275_v18 = vmul.f32 %v6139_v23, %v1263_v12  ;;  %1116 = vst.msk [vmem:[#allocation2 + $0x58] sm:$0xff] %vm1088_vm6, %v6197_v19 }
 0x722   :  { %v5644_v43 = vpop.eup %5643  ;;  %v1266_v22 = vmul.f32 %v5642_v15, %v6116_v50  ;;  %v1288_v28 = vadd.f32 %v6146_v27, %v1276_v14  ;;  %1115 = vst.msk [vmem:[#allocation2 + $0x50] sm:$0xff] %vm1088_vm6, %v6200_v24 }
 0x723   :  { %v1287_v25 = vadd.f32 %v6146_v27, %v1275_v18  ;;  %v1265_v26 = vmul.f32 %v5644_v43, %v6120_v55  ;;  %v1160_v55 = vld [vmem:[%s7334_s2 + $0x138] sm:$0xff] }
 0x724   :  { %v1278_v5 = vmul.f32 %v6139_v23, %v1266_v22  ;;  %v5377_v31 = vpack.c.bf16 %v1161_v29, %v1160_v55 }
 0x725   :  { %5033 = vmatprep.mubr.msk.f32.mxu1 %vm1088_vm6, %v1287_v25  ;;  %v1277_v50 = vmul.f32 %v6139_v23, %v1265_v26  ;;  %v4509_v23 = vld [vmem:[%s7334_s2 + $0xb4] ss:$0 sm:$0xff] }
 0x726   :  { %5034 = vmatmul.mubr.msk.f32.gmra.mrb[20].mxu1 %vm1088_vm6, %v1288_v28  ;;  %v1290_v17 = vadd.f32 %v6146_v27, %v1278_v5  ;;  %5378 = vmatprep.subr.bf16.mxu1 %v5377_v31 }
 0x727   :  { %v1289_v30 = vadd.f32 %v6146_v27, %v1277_v50  ;;  %5380 = vmatpush3.bf16.msra.mxu1 %v5377_v31 }
 0x729   :  { %5036 = vmatprep.mubr.msk.f32.mxu1 %vm1088_vm6, %v1289_v30 }
 0x72a   :  { %5037 = vmatmul.mubr.msk.f32.gmra.mrb[22].mxu1 %vm1088_vm6, %v1290_v17 }
 0x7a5   :  { %v5029_v32 = vpop.f32.mrb[16].mxu1 }
 0x7a6   :  { %v1395_v33 = vadd.f32 %v5029_v32, %v4509_v23  ;;  %v1389_v34 = vpop.f32.mrb[17].mxu1 }
 0x7a7   :  { %v1390_v35 = vadd.f32 %v4509_v23, %v1389_v34 }
 0x7a8   :  { %v1429_v38 = vmax.f32 %v1395_v33, 0.0 }
 0x7a9   :  { %v1428_v36 = vmax.f32 %v1390_v35, 0.0  ;;  %v5032_v37 = vpop.f32.mrb[18].mxu1 }
 0x7aa   :  { %v1405_v16 = vadd.f32 %v5032_v37, %v4509_v23  ;;  %v1399_v27 = vpop.f32.mrb[19].mxu1 }
 0x7ab   :  { %v1400_v39 = vadd.f32 %v4509_v23, %v1399_v27  ;;  %5055 = vmatprep.mubr.msk.f32.mxu1 %vm1436_vm8, %v1428_v36 }
 0x7ac   :  { %5056 = vmatmul.mubr.msk.f32.vlgmr.msra.gmra.mrb[24].mxu1 %vm1436_vm8, %v1429_v38  ;;  %v1431_v40 = vmax.f32 %v1405_v16, 0.0 }
 0x7ad   :  { %v1430_v21 = vmax.f32 %v1400_v39, 0.0 }
 0x7af   :  { %5058 = vmatprep.mubr.msk.f32.mxu1 %vm1436_vm8, %v1430_v21 }
 0x7b0   :  { %5059 = vmatmul.mubr.msk.f32.gmra.mrb[26].mxu1 %vm1436_vm8, %v1431_v40 }
 0x7f9   :  { %v5035_v41 = vpop.f32.mrb[20].mxu1 }
 0x7fa   :  { %v1415_v44 = vadd.f32 %v5035_v41, %v4509_v23  ;;  %v1409_v45 = vpop.f32.mrb[21].mxu1 }
 0x7fb   :  { %v1410_v46 = vadd.f32 %v4509_v23, %v1409_v45 }
 0x7fc   :  { %v1433_v49 = vmax.f32 %v1415_v44, 0.0 }
 0x7fd   :  { %v1432_v47 = vmax.f32 %v1410_v46, 0.0  ;;  %v5038_v48 = vpop.f32.mrb[22].mxu1 }
 0x7fe   :  { %v1425_v52 = vadd.f32 %v5038_v48, %v4509_v23  ;;  %v1419_v56 = vpop.f32.mrb[23].mxu1  ;;  %v1590_v48 = vld [vmem:[%s7334_s2 + $0xe0] sm:$0xff] }
 0x7ff   :  { %v1420_v58 = vadd.f32 %v4509_v23, %v1419_v56  ;;  %5061 = vmatprep.mubr.msk.f32.mxu1 %vm1436_vm8, %v1432_v47  ;;  %v1592_v56 = vld [vmem:[%s7334_s2 + $0xf0] sm:$0xff] }
 0x800   :  { %5062 = vmatmul.mubr.msk.f32.gmra.mrb[28].mxu1 %vm1436_vm8, %v1433_v49  ;;  %v1435_v60 = vmax.f32 %v1425_v52, 0.0  ;;  %v1591_v49 = vld [vmem:[%s7334_s2 + $0xe8] sm:$0xff] }
 0x801   :  { %v1434_v59 = vmax.f32 %v1420_v58, 0.0  ;;  %v5381_v52 = vpack.c.bf16 %v1591_v49, %v1590_v48  ;;  %v1593_v58 = vld [vmem:[%s7334_s2 + $0xf8] sm:$0xff]  ;;  %v4528_v49 = vld [vmem:[%s7334_s2 + $0xb2] ss:$0 sm:$0xff] }
 0x803   :  { %5064 = vmatprep.mubr.msk.f32.mxu1 %vm1436_vm8, %v1434_v59  ;;  %5382 = vmatprep.subr.bf16.mxu0 %v5381_v52  ;;  %v5385_v59 = vpack.c.bf16 %v1593_v58, %v1592_v56 }
 0x804   :  { %5065 = vmatmul.mubr.msk.f32.gmra.mrb[30].mxu1 %vm1436_vm8, %v1435_v60  ;;  %5384 = vmatpush3.bf16.msra.mxu0 %v5381_v52  ;;  %v1594_v60 = vld [vmem:[%s7334_s2 + $0x100] sm:$0xf] }
 0x805   :  { %5386 = vmatprep.subr.bf16.mxu0 %v5385_v59 }
 0x808   :  { %5388 = vmatpush3.bf16.msra.mxu0 %v5385_v59 }
 0x809   :  { %5075 = vmatprep.subr.msk.mxu0 %vm1319_vm7, %v1594_v60 }
 0x80c   :  { %5076 = vmatpush3.msk.msra.mxu0 %vm1319_vm7, %v1594_v60  ;;  %v4529_v60 = vld [vmem:[%s7334_s2 + $0xb3] ss:$0 sm:$0xff] }
 0x87f   :  { %v5057_v62 = vpop.f32.mrb[24].mxu1 }
 0x880   :  { %v1567_v0 = vadd.f32 %v5057_v62, %v6012_v51  ;;  %v1527_v2 = vpop.f32.mrb[25].mxu1 }
 0x881   :  { %v1566_v7 = vadd.f32 %v1527_v2, %v6018_v54 }
 0x882   :  { %v6239_v8 = vadd.f32 %v4527_v61, %v1567_v0 }
 0x883   :  { %v6241_v9 = vadd.f32 %v4527_v61, %v1566_v7  ;;  %v5060_v11 = vpop.f32.mrb[26].mxu1 }
 0x884   :  { %v1569_v12 = vadd.f32 %v5060_v11, %v6024_v57  ;;  %v1537_v13 = vpop.f32.mrb[27].mxu1  ;;  %v1606_v14 = vsel %vm1088_vm6, %v6239_v8, 0.0 }
 0x885   :  { %v1568_v42 = vadd.f32 %v1537_v13, %v6016_v53  ;;  %1607 = vadd.xlane.f32.xlu1 %v1606_v14  ;;  %v1603_v51 = vsel %vm1088_vm6, %v6241_v9, 0.0 }
 0x886   :  { %v6249_v15 = vadd.f32 %v4527_v61, %v1569_v12  ;;  %1604 = vadd.xlane.f32.xlu0 %v1603_v51 }
 0x887   :  { %v6251_v54 = vadd.f32 %v4527_v61, %v1568_v42 }
 0x888   :  { %v1612_v18 = vsel %vm1088_vm6, %v6249_v15, 0.0 }
 0x889   :  { %1613 = vadd.xlane.f32.xlu1 %v1612_v18  ;;  %v1609_v57 = vsel %vm1088_vm6, %v6251_v54, 0.0 }
 0x88a   :  { %1610 = vadd.xlane.f32.xlu0 %v1609_v57 }
 0x8d3   :  { %v5063_v20 = vpop.f32.mrb[28].mxu1 }
 0x8d4   :  { %v1571_v53 = vadd.f32 %v5063_v20, %v6032_v63  ;;  %v1547_v43 = vpop.f32.mrb[29].mxu1 }
 0x8d5   :  { %v1570_v22 = vadd.f32 %v1547_v43, %v6036_v1 }
 0x8d6   :  { %v6259_v25 = vadd.f32 %v4527_v61, %v1571_v53 }
 0x8d7   :  { %v6261_v26 = vadd.f32 %v4527_v61, %v1570_v22  ;;  %v5066_v28 = vpop.f32.mrb[30].mxu1 }
 0x8d8   :  { %v1573_v5 = vadd.f32 %v5066_v28, %v6040_v3  ;;  %v1557_v50 = vpop.f32.mrb[31].mxu1  ;;  %v1618_v55 = vsel %vm1088_vm6, %v6259_v25, 0.0 }
 0x8d9   :  { %v1572_v29 = vadd.f32 %v1557_v50, %v6044_v6  ;;  %1619 = vadd.xlane.f32.xlu1 %v1618_v55  ;;  %v1615_v63 = vsel %vm1088_vm6, %v6261_v26, 0.0  ;;  %v1595_v55 = vld [vmem:[%s7334_s2 + $0x148] sm:$0xff] }
 0x8da   :  { %v6269_v30 = vadd.f32 %v4527_v61, %v1573_v5  ;;  %1616 = vadd.xlane.f32.xlu0 %v1615_v63  ;;  %v1597_v63 = vld [vmem:[%s7334_s2 + $0x158] sm:$0xff] }
 0x8db   :  { %v6271_v1 = vadd.f32 %v4527_v61, %v1572_v29  ;;  %v1596_v29 = vld [vmem:[%s7334_s2 + $0x150] sm:$0xff] }
 0x8dc   :  { %v1624_v31 = vsel %vm1088_vm6, %v6269_v30, 0.0 }
 0x8dd   :  { %1625 = vadd.xlane.f32.xlu1 %v1624_v31  ;;  %v1621_v3 = vsel %vm1088_vm6, %v6271_v1, 0.0  ;;  %v5389_v31 = vpack.c.bf16 %v1596_v29, %v1595_v55 }
 0x8de   :  { %1622 = vadd.xlane.f32.xlu0 %v1621_v3  ;;  %v1598_v3 = vld [vmem:[%s7334_s2 + $0x160] sm:$0xff] }
 0x8df   :  { %5390 = vmatprep.subr.bf16.mxu1 %v5389_v31 }
 0x8e0   :  { %5392 = vmatpush3.bf16.msra.mxu1 %v5389_v31 }
 0x912   :  { %v1608_v17 = vpop.xlane.xlu1 %1607 }
 0x913   :  { %v1628_v23 = vmul.f32 0.027777778, %v1608_v17  ;;  %v1605_v6 = vpop.xlane.xlu0 %1604  ;;  %v5393_v17 = vpack.c.bf16 %v1598_v3, %v1597_v63 }
 0x914   :  { %v1627_v32 = vmul.f32 0.027777778, %v1605_v6  ;;  %v1600_v6 = vld [vmem:[%s7334_s2 + $0x170] sm:$0xff] }
 0x915   :  { %v6278_v33 = vsub.f32 %v6239_v8, %v1628_v23  ;;  %v1599_v23 = vld [vmem:[%s7334_s2 + $0x168] sm:$0xff]  ;;  %5394 = vmatprep.subr.bf16.mxu1 %v5393_v17 }
 0x916   :  { %v6281_v34 = vsub.f32 %v6241_v9, %v1627_v32  ;;  %v1614_v35 = vpop.xlane.xlu1 %1613  ;;  %v5397_v32 = vpack.c.bf16 %v1600_v6, %v1599_v23  ;;  %5396 = vmatpush3.bf16.msra.mxu1 %v5393_v17 }
 0x917   :  { %v1630_v36 = vmul.f32 0.027777778, %v1614_v35  ;;  %v1611_v37 = vpop.xlane.xlu0 %1610  ;;  %v1644_v38 = vmul.f32 %v6278_v33, %v6278_v33 }
 0x918   :  { %v1629_v16 = vmul.f32 0.027777778, %v1611_v37  ;;  %v1643_v27 = vmul.f32 %v6281_v34, %v6281_v34  ;;  %5398 = vmatprep.subr.bf16.mxu1 %v5397_v32 }
 0x919   :  { %v6288_v39 = vsub.f32 %v6249_v15, %v1630_v36  ;;  %v1654_v21 = vsel %vm1088_vm6, %v1644_v38, 0.0 }
 0x91a   :  { %v6292_v40 = vsub.f32 %v6251_v54, %v1629_v16  ;;  %1655 = vadd.xlane.f32.xlu1 %v1654_v21  ;;  %v1651_v41 = vsel %vm1088_vm6, %v1643_v27, 0.0  ;;  %5400 = vmatpush3.bf16.msra.mxu1 %v5397_v32 }
 0x91b   :  { %1652 = vadd.xlane.f32.xlu0 %v1651_v41  ;;  %v1646_v44 = vmul.f32 %v6288_v39, %v6288_v39 }
 0x91c   :  { %v1645_v45 = vmul.f32 %v6292_v40, %v6292_v40 }
 0x91d   :  { %v1660_v46 = vsel %vm1088_vm6, %v1646_v44, 0.0 }
 0x91e   :  { %1661 = vadd.xlane.f32.xlu1 %v1660_v46  ;;  %v1657_v47 = vsel %vm1088_vm6, %v1645_v45, 0.0 }
 0x91f   :  { %1658 = vadd.xlane.f32.xlu0 %v1657_v47 }
 0x966   :  { %v1620_v61 = vpop.xlane.xlu1 %1619 }
 0x967   :  { %v1632_v62 = vmul.f32 0.027777778, %v1620_v61  ;;  %v1617_v0 = vpop.xlane.xlu0 %1616 }
 0x968   :  { %v1631_v2 = vmul.f32 0.027777778, %v1617_v0 }
 0x969   :  { %v6319_v7 = vsub.f32 %v6259_v25, %v1632_v62 }
 0x96a   :  { %v6322_v11 = vsub.f32 %v6261_v26, %v1631_v2  ;;  %v1626_v12 = vpop.xlane.xlu1 %1625 }
 0x96b   :  { %v1634_v13 = vmul.f32 0.027777778, %v1626_v12  ;;  %v1623_v14 = vpop.xlane.xlu0 %1622  ;;  %v1648_v42 = vmul.f32 %v6319_v7, %v6319_v7 }
 0x96c   :  { %v1633_v51 = vmul.f32 0.027777778, %v1623_v14  ;;  %v1647_v18 = vmul.f32 %v6322_v11, %v6322_v11 }
 0x96d   :  { %v6329_v57 = vsub.f32 %v6269_v30, %v1634_v13  ;;  %v1666_v20 = vsel %vm1088_vm6, %v1648_v42, 0.0 }
 0x96e   :  { %v6333_v53 = vsub.f32 %v6271_v1, %v1633_v51  ;;  %1667 = vadd.xlane.f32.xlu1 %v1666_v20  ;;  %v1663_v43 = vsel %vm1088_vm6, %v1647_v18, 0.0 }
 0x96f   :  { %1664 = vadd.xlane.f32.xlu0 %v1663_v43  ;;  %v1650_v22 = vmul.f32 %v6329_v57, %v6329_v57 }
 0x970   :  { %v1649_v28 = vmul.f32 %v6333_v53, %v6333_v53 }
 0x971   :  { %v1672_v5 = vsel %vm1088_vm6, %v1650_v22, 0.0 }
 0x972   :  { %1673 = vadd.xlane.f32.xlu1 %v1672_v5  ;;  %v1669_v50 = vsel %vm1088_vm6, %v1649_v28, 0.0 }
 0x973   :  { %1670 = vadd.xlane.f32.xlu0 %v1669_v50 }
 0x9a7   :  { %v1656_v35 = vpop.xlane.xlu1 %1655 }
 0x9a8   :  { %v1676_v36 = vmul.f32 0.027777778, %v1656_v35  ;;  %v1653_v37 = vpop.xlane.xlu0 %1652 }
 0x9a9   :  { %v1675_v38 = vmul.f32 0.027777778, %v1653_v37 }
 0x9aa   :  { %v1684_v16 = vadd.f32 1e-05, %v1676_v36 }
 0x9ab   :  { %v1683_v27 = vadd.f32 1e-05, %v1675_v38  ;;  %v1662_v21 = vpop.xlane.xlu1 %1661 }
 0x9ac   :  { %5645 = vrsqrt.f32 %v1684_v16  ;;  %v1678_v41 = vmul.f32 0.027777778, %v1662_v21  ;;  %v1659_v44 = vpop.xlane.xlu0 %1658 }
 0x9ad   :  { %5647 = vrsqrt.f32 %v1683_v27  ;;  %v1677_v45 = vmul.f32 0.027777778, %v1659_v44 }
 0x9ae   :  { %v1686_v46 = vadd.f32 1e-05, %v1678_v41 }
 0x9af   :  { %v1685_v47 = vadd.f32 1e-05, %v1677_v45 }
 0x9b0   :  { %5649 = vrsqrt.f32 %v1686_v46 }
 0x9b1   :  { %5651 = vrsqrt.f32 %v1685_v47 }
 0x9b6   :  { %v5646_v48 = vpop.eup %5645 }
 0x9b7   :  { %v5648_v52 = vpop.eup %5647  ;;  %v1700_v56 = vmul.f32 %v5646_v48, %v6278_v33 }
 0x9b8   :  { %v1699_v58 = vmul.f32 %v5648_v52, %v6281_v34 }
 0x9b9   :  { %v1712_v59 = vmul.f32 %v4528_v49, %v1700_v56 }
 0x9ba   :  { %v5650_v61 = vpop.eup %5649  ;;  %v1711_v62 = vmul.f32 %v4528_v49, %v1699_v58 }
 0x9bb   :  { %v5652_v0 = vpop.eup %5651  ;;  %v1702_v2 = vmul.f32 %v5650_v61, %v6288_v39  ;;  %v1724_v14 = vadd.f32 %v4529_v60, %v1712_v59 }
 0x9bc   :  { %v1723_v12 = vadd.f32 %v4529_v60, %v1711_v62  ;;  %v1701_v13 = vmul.f32 %v5652_v0, %v6292_v40 }
 0x9bd   :  { %v1714_v42 = vmul.f32 %v4528_v49, %v1702_v2 }
 0x9be   :  { %5077 = vmatprep.mubr.msk.f32.mxu0 %vm1088_vm6, %v1723_v12  ;;  %v1713_v33 = vmul.f32 %v4528_v49, %v1701_v13 }
 0x9bf   :  { %5078 = vmatmul.mubr.msk.f32.vlgmr.msra.gmra.mrb[6].mxu0 %vm1088_vm6, %v1724_v14  ;;  %v1726_v51 = vadd.f32 %v4529_v60, %v1714_v42 }
 0x9c0   :  { %v1725_v34 = vadd.f32 %v4529_v60, %v1713_v33 }
 0x9c2   :  { %5080 = vmatprep.mubr.msk.f32.mxu0 %vm1088_vm6, %v1725_v34 }
 0x9c3   :  { %5081 = vmatmul.mubr.msk.f32.gmra.mrb[16].mxu0 %vm1088_vm6, %v1726_v51 }
 0x9fb   :  { %v1668_v18 = vpop.xlane.xlu1 %1667 }
 0x9fc   :  { %v1680_v20 = vmul.f32 0.027777778, %v1668_v18  ;;  %v1665_v43 = vpop.xlane.xlu0 %1664 }
 0x9fd   :  { %v1679_v39 = vmul.f32 0.027777778, %v1665_v43 }
 0x9fe   :  { %v1688_v22 = vadd.f32 1e-05, %v1680_v20 }
 0x9ff   :  { %v1687_v28 = vadd.f32 1e-05, %v1679_v39  ;;  %v1674_v40 = vpop.xlane.xlu1 %1673 }
 0xa00   :  { %5653 = vrsqrt.f32 %v1688_v22  ;;  %v1682_v5 = vmul.f32 0.027777778, %v1674_v40  ;;  %v1671_v50 = vpop.xlane.xlu0 %1670  ;;  %v5736_v22 = vmov 0   ;;  %v4548_v40 = vld [vmem:[%s7334_s2 + $0xb7] ss:$0 sm:$0xff] }
 0xa01   :  { %5655 = vrsqrt.f32 %v1687_v28  ;;  %v1681_v55 = vmul.f32 0.027777778, %v1671_v50  ;;  %5558 = vset.pattern.permute.xlu1 %v5736_v22  ;;  %5557 = vset.pattern.permute.xlu0 %v5736_v22 }
 0xa02   :  { %v1690_v29 = vadd.f32 1e-05, %v1682_v5 }
 0xa03   :  { %v1689_v63 = vadd.f32 1e-05, %v1681_v55 }
 0xa04   :  { %5657 = vrsqrt.f32 %v1690_v29 }
 0xa05   :  { %5659 = vrsqrt.f32 %v1689_v63 }
 0xa0a   :  { %v5654_v31 = vpop.eup %5653 }
 0xa0b   :  { %v5656_v3 = vpop.eup %5655  ;;  %v1704_v17 = vmul.f32 %v5654_v31, %v6319_v7  ;;  %v1601_v7 = vld [vmem:[%s7334_s2 + $0x178] sm:$0xff] }
 0xa0c   :  { %v1703_v23 = vmul.f32 %v5656_v3, %v6322_v11  ;;  %v1602_v11 = vld [vmem:[%s7334_s2 + $0x180] sm:$0xff] }
 0xa0d   :  { %v1716_v6 = vmul.f32 %v4528_v49, %v1704_v17 }
 0xa0e   :  { %v5658_v32 = vpop.eup %5657  ;;  %v1715_v35 = vmul.f32 %v4528_v49, %v1703_v23 }
 0xa0f   :  { %v5660_v36 = vpop.eup %5659  ;;  %v1706_v37 = vmul.f32 %v5658_v32, %v6329_v57  ;;  %v1728_v27 = vadd.f32 %v4529_v60, %v1716_v6  ;;  %v5401_v57 = vpack.c.bf16 %v1602_v11, %v1601_v7 }
 0xa10   :  { %v1727_v38 = vadd.f32 %v4529_v60, %v1715_v35  ;;  %v1705_v16 = vmul.f32 %v5660_v36, %v6333_v53  ;;  %v4530_v53 = vld [vmem:[%s7334_s2 + $0xb5] ss:$0 sm:$0xff] }
 0xa11   :  { %v1718_v21 = vmul.f32 %v4528_v49, %v1706_v37  ;;  %5402 = vmatprep.subr.bf16.mxu1 %v5401_v57 }
 0xa12   :  { %5083 = vmatprep.mubr.msk.f32.mxu0 %vm1088_vm6, %v1727_v38  ;;  %v1717_v41 = vmul.f32 %v4528_v49, %v1705_v16  ;;  %5404 = vmatpush3.bf16.msra.mxu1 %v5401_v57 }
 0xa13   :  { %5084 = vmatmul.mubr.msk.f32.gmra.mrb[18].mxu0 %vm1088_vm6, %v1728_v27  ;;  %v1730_v45 = vadd.f32 %v4529_v60, %v1718_v21 }
 0xa14   :  { %v1729_v44 = vadd.f32 %v4529_v60, %v1717_v41 }
 0xa16   :  { %5086 = vmatprep.mubr.msk.f32.mxu0 %vm1088_vm6, %v1729_v44 }
 0xa17   :  { %5087 = vmatmul.mubr.msk.f32.gmra.mrb[20].mxu0 %vm1088_vm6, %v1730_v45 }
 0xa92   :  { %v5079_v46 = vpop.f32.mrb[6].mxu0 }
 0xa93   :  { %v1834_v47 = vadd.f32 %v5079_v46, %v4530_v53  ;;  %v1828_v48 = vpop.f32.mrb[7].mxu0  ;;  %v5737_v46 = vmov 1  }
 0xa94   :  { %v1829_v49 = vadd.f32 %v4530_v53, %v1828_v48  ;;  %v6442_v48 = vld [vmem:[%s7334_s2 + $0x198] sm:$0xff] }
 0xa95   :  { %v1868_v58 = vmax.f32 %v1834_v47, 0.0  ;;  %v5738_v47 = vmov 4  }
 0xa96   :  { %v1867_v52 = vmax.f32 %v1829_v49, 0.0  ;;  %v5082_v56 = vpop.f32.mrb[16].mxu0  ;;  %v6451_v49 = vld [vmem:[%s7334_s2 + $0x1a0] sm:$0xff] }
 0xa97   :  { %v1844_v59 = vadd.f32 %v5082_v56, %v4530_v53  ;;  %v1838_v61 = vpop.f32.mrb[17].mxu0 }
 0xa98   :  { %v1839_v60 = vadd.f32 %v4530_v53, %v1838_v61  ;;  %5105 = vmatprep.mubr.msk.f32.mxu1 %vm1436_vm8, %v1867_v52  ;;  %v6471_v61 = vld [vmem:[#allocation2 + $0x50] sm:$0xff] }
 0xa99   :  { %5106 = vmatmul.mubr.msk.f32.vlgmr.msra.gmra.mrb[32].mxu1 %vm1436_vm8, %v1868_v58  ;;  %v1870_v0 = vmax.f32 %v1844_v59, 0.0  ;;  %v6465_v58 = vld [vmem:[#allocation2 + $0x40] sm:$0xff] }
 0xa9a   :  { %v1869_v62 = vmax.f32 %v1839_v60, 0.0  ;;  %v2795_v59 = vsel %vm1088_vm6, %v6465_v58, 0.0  ;;  %v2801_v60 = vsel %vm1088_vm6, %v6471_v61, 0.0 }
 0xa9c   :  { %5108 = vmatprep.mubr.msk.f32.mxu1 %vm1436_vm8, %v1869_v62  ;;  %v6478_v62 = vld [vmem:[#allocation2 + $0x58] sm:$0xff] }
 0xa9d   :  { %5109 = vmatmul.mubr.msk.f32.gmra.mrb[34].mxu1 %vm1436_vm8, %v1870_v0  ;;  %v2066_v0 = vld [vmem:[%s7334_s2 + $0x1a8] sm:$0xff] }
 0xa9e   :  { %5125 = vmatprep.mubr.msk.f32.mxu0 %vm958_vm5, %v2066_v0 }
 0xae6   :  { %v5085_v2 = vpop.f32.mrb[18].mxu0 }
 0xae7   :  { %v1854_v12 = vadd.f32 %v5085_v2, %v4530_v53  ;;  %v1848_v13 = vpop.f32.mrb[19].mxu0  ;;  %v5740_v2 = vmov 3  }
 0xae8   :  { %v1849_v14 = vadd.f32 %v4530_v53, %v1848_v13 }
 0xae9   :  { %v1872_v34 = vmax.f32 %v1854_v12, 0.0 }
 0xaea   :  { %v1871_v42 = vmax.f32 %v1849_v14, 0.0  ;;  %v5088_v33 = vpop.f32.mrb[20].mxu0 }
 0xaeb   :  { %v1864_v51 = vadd.f32 %v5088_v33, %v4530_v53  ;;  %v1858_v18 = vpop.f32.mrb[21].mxu0 }
 0xaec   :  { %v1859_v20 = vadd.f32 %v4530_v53, %v1858_v18  ;;  %5111 = vmatprep.mubr.msk.f32.mxu1 %vm1436_vm8, %v1871_v42 }
 0xaed   :  { %5112 = vmatmul.mubr.msk.f32.gmra.mrb[36].mxu1 %vm1436_vm8, %v1872_v34  ;;  %v1874_v39 = vmax.f32 %v1864_v51, 0.0 }
 0xaee   :  { %v1873_v43 = vmax.f32 %v1859_v20, 0.0 }
 0xaf0   :  { %5114 = vmatprep.mubr.msk.f32.mxu1 %vm1436_vm8, %v1873_v43 }
 0xaf1   :  { %5115 = vmatmul.mubr.msk.f32.gmra.mrb[38].mxu1 %vm1436_vm8, %v1874_v39 }
 0xb6c   :  { %v5107_v28 = vpop.f32.mrb[32].mxu1 }
 0xb6d   :  { %v2005_v5 = vadd.f32 %v5107_v28, %v6239_v8  ;;  %v1965_v50 = vpop.f32.mrb[33].mxu1 }
 0xb6e   :  { %v2004_v55 = vadd.f32 %v1965_v50, %v6241_v9 }
 0xb6f   :  { %v2017_v29 = vadd.f32 %v4548_v40, %v2005_v5 }
 0xb70   :  { %v5110_v63 = vpop.f32.mrb[34].mxu1  ;;  %v2016_v31 = vadd.f32 %v4548_v40, %v2004_v55 }
 0xb71   :  { %v1975_v3 = vpop.f32.mrb[35].mxu1  ;;  %v2027_v17 = vsel %vm1088_vm6, %v2017_v29, -inf  ;;  %v2007_v37 = vadd.f32 %v5110_v63, %v6249_v15 }
 0xb72   :  { %v2006_v23 = vadd.f32 %v1975_v3, %v6251_v54  ;;  %2028 = vmax.xlane.f32.xlu1 %v2027_v17  ;;  %v2024_v6 = vsel %vm1088_vm6, %v2016_v31, -inf }
 0xb73   :  { %2025 = vmax.xlane.f32.xlu0 %v2024_v6  ;;  %v2019_v57 = vadd.f32 %v4548_v40, %v2007_v37 }
 0xb74   :  { %v2018_v32 = vadd.f32 %v4548_v40, %v2006_v23 }
 0xb75   :  { %v2033_v15 = vsel %vm1088_vm6, %v2019_v57, -inf }
 0xb76   :  { %v2030_v35 = vsel %vm1088_vm6, %v2018_v32, -inf }
 0xb77   :  { %2031 = vmax.xlane.f32.xlu0 %v2030_v35 }
 0xbc0   :  { %v5113_v8 = vpop.f32.mrb[36].mxu1 }
 0xbc1   :  { %v2009_v36 = vadd.f32 %v5113_v8, %v6259_v25  ;;  %v1985_v9 = vpop.f32.mrb[37].mxu1 }
 0xbc2   :  { %v2008_v38 = vadd.f32 %v1985_v9, %v6261_v26 }
 0xbc3   :  { %v2021_v16 = vadd.f32 %v4548_v40, %v2009_v36 }
 0xbc4   :  { %v5116_v27 = vpop.f32.mrb[38].mxu1  ;;  %v2020_v21 = vadd.f32 %v4548_v40, %v2008_v38 }
 0xbc5   :  { %v1995_v54 = vpop.f32.mrb[39].mxu1  ;;  %v2039_v41 = vsel %vm1088_vm6, %v2021_v16, -inf  ;;  %v2011_v7 = vadd.f32 %v5116_v27, %v6269_v30  ;;  %v6423_v30 = vld [vmem:[%s7334_s2 + $0x190] sm:$0xff] }
 0xbc6   :  { %v2010_v11 = vadd.f32 %v1995_v54, %v6271_v1  ;;  %2040 = vmax.xlane.f32.xlu1 %v2039_v41  ;;  %v2036_v44 = vsel %vm1088_vm6, %v2020_v21, -inf  ;;  %v6428_v1 = vld [vmem:[%s7334_s2 + $0x188] sm:$0xff] }
 0xbc7   :  { %2037 = vmax.xlane.f32.xlu0 %v2036_v44  ;;  %v2023_v45 = vadd.f32 %v4548_v40, %v2011_v7 }
 0xbc8   :  { %v2022_v25 = vadd.f32 %v4548_v40, %v2010_v11 }
 0xbc9   :  { %v2045_v53 = vsel %vm1088_vm6, %v2023_v45, -inf }
 0xbca   :  { %v2042_v26 = vsel %vm1088_vm6, %v2022_v25, -inf }
 0xbcb   :  { %2034 = vmax.xlane.f32.xlu0 %v2033_v15  ;;  %2043 = vmax.xlane.f32.xlu1 %v2042_v26 }
 0xbcf   :  { %2046 = vmax.xlane.f32.xlu1 %v2045_v53 }
 0xbe0   :  { %2125 = vperm.xlu1 %5558, %v6423_v30  }
 0xbe1   :  { %2120 = vperm.xlu0 %5557, %v6428_v1  }
 0xbe4   :  { %5559 = vset.pattern.permute.xlu1 %v5737_v46 }
 0xbe5   :  { %5563 = vset.pattern.permute.xlu0 %v5738_v47  ;;  %2143 = vperm.xlu1 %5559, %v6428_v1  }
 0xbe6   :  { %2167 = vperm.xlu0 %5563, %v6423_v30  }
 0xbe9   :  { %2147 = vperm.xlu1 %5559, %v6423_v30  }
 0xbea   :  { %1121 = vrot.lane.b32.xlu0 %v6182_v10, %s5735_s18  ;;  %v5739_v10 = vmov 6  }
 0xbeb   :  { %5564 = vset.pattern.permute.xlu0 %v5739_v10 }
 0xbed   :  { %5560 = vset.pattern.permute.xlu1 %v5736_v22 }
 0xbee   :  { %1125 = vrot.lane.b32.xlu0 %v6200_v24, %s5735_s18  ;;  %2130 = vperm.xlu1 %5560, %v6442_v48  }
 0xbf2   :  { %2135 = vperm.xlu1 %5560, %v6451_v49  }
 0xbf6   :  { %5561 = vset.pattern.permute.xlu1 %v5737_v46 }
 0xbf7   :  { %2151 = vperm.xlu1 %5561, %v6442_v48  }
 0xbfb   :  { %2155 = vperm.xlu1 %5561, %v6451_v49  }
 0xbff   :  { %v2029_v24 = vpop.xlane.xlu1 %2028  ;;  %5562 = vset.pattern.permute.xlu1 %v5738_v47 }
 0xc00   :  { %2050 = vst.msk [vmem:[#allocation3 + $0x8] sm:$0xff] %vm2048_vm9, %v2029_v24  ;;  %2163 = vperm.xlu1 %5562, %v6428_v1   ;;  %v2026_v52 = vpop.xlane.xlu0 %2025 }
 0xc01   :  { %2049 = vst.msk [vmem:[#allocation3] sm:$0xff] %vm2048_vm9, %v2026_v52 }
 0xc04   :  { %2171 = vperm.xlu1 %5562, %v6442_v48   ;;  %v2032_v56 = vpop.xlane.xlu0 %2031 }
 0xc05   :  { %2051 = vst.msk [vmem:[#allocation3 + $0x10] sm:$0xff] %vm2048_vm9, %v2032_v56 }
 0xc08   :  { %2175 = vperm.xlu1 %5562, %v6451_v49  }
 0xc0c   :  { %1123 = vrot.lane.b32.xlu1 %v6179_v4, %s5735_s18  ;;  %v2804_v4 = vsel %vm1088_vm6, %v6478_v62, 0.0 }
 0xc0d   :  { %2796 = vadd.xlane.f32.xlu0 %v2795_v59  ;;  %5565 = vset.pattern.permute.xlu1 %v5739_v10 }
 0xc10   :  { %1127 = vrot.lane.b32.xlu1 %v6197_v19, %s5735_s18  ;;  %v6488_v19 = vld [vmem:[#allocation2 + $0x48] sm:$0xff] }
 0xc11   :  { %2802 = vadd.xlane.f32.xlu0 %v2801_v60  ;;  %v2798_v12 = vsel %vm1088_vm6, %v6488_v19, 0.0 }
 0xc15   :  { %2805 = vadd.xlane.f32.xlu0 %v2804_v4 }
 0xc2b   :  { %2385 = vperm.xlu0 %5564, %v6423_v30  }
 0xc2f   :  { %5567 = vset.pattern.permute.xlu0 %v5740_v2 }
 0xc34   :  { %2799 = vadd.xlane.f32.xlu1 %v2798_v12 }
 0xc53   :  { %v2041_v13 = vpop.xlane.xlu1 %2040 }
 0xc54   :  { %2055 = vst.msk [vmem:[#allocation3 + $0x8] sm:$0xff] %vm2053_vm10, %v2041_v13  ;;  %v2038_v14 = vpop.xlane.xlu0 %2037 }
 0xc55   :  { %2054 = vst.msk [vmem:[#allocation3] sm:$0xff] %vm2053_vm10, %v2038_v14 }
 0xc58   :  { %v2044_v42 = vpop.xlane.xlu1 %2043  ;;  %v2035_v33 = vpop.xlane.xlu0 %2034 }
 0xc59   :  { %2056 = vst.msk [vmem:[#allocation3 + $0x10] sm:$0xff] %vm2053_vm10, %v2044_v42 }
 0xc5a   :  { %2052 = vst.msk [vmem:[#allocation3 + $0x18] sm:$0xff] %vm2048_vm9, %v2035_v33 }
 0xc5b   :  { %v6498_v18 = vld [vmem:[#allocation3 + $0x8] sm:$0xff] }
 0xc5c   :  { %v2047_v34 = vpop.xlane.xlu1 %2046  ;;  %v6496_v51 = vld [vmem:[#allocation3] sm:$0xff]  ;;  %v2076_v43 = vsel %vm2074_vm11, %v6498_v18, 0.0 }
 0xc5d   :  { %2057 = vst.msk [vmem:[#allocation3 + $0x18] sm:$0xff] %vm2053_vm10, %v2047_v34  ;;  %v2075_v20 = vsel %vm2074_vm11, %v6496_v51, 0.0 }
 0xc5e   :  { %v2077_v50 = vadd.f32 %v2076_v43, %v2075_v20 }
 0xc60   :  { %v6505_v39 = vld [vmem:[#allocation3 + $0x10] sm:$0xff]  ;;  %v6507_v28 = vpop.permute.xlu0 %2120  ;;  %v6509_v40 = vpop.permute.xlu1 %2125 }
 0xc61   :  { %v2078_v5 = vsel %vm2074_vm11, %v6505_v39, 0.0 }
 0xc62   :  { %v2079_v29 = vadd.f32 %v2078_v5, %v2077_v50 }
 0xc64   :  { %v6513_v55 = vld [vmem:[#allocation3 + $0x18] sm:$0xff]  ;;  %v6515_v63 = vpop.permute.xlu1 %2143 }
 0xc65   :  { %v2080_v31 = vsel %vm2074_vm11, %v6513_v55, 0.0  ;;  %v6519_v3 = vpop.permute.xlu0 %2167 }
 0xc66   :  { %v2081_v17 = vadd.f32 %v2080_v31, %v2079_v29 }
 0xc68   :  { %v2082_v23 = vrot.slane %v2081_v17, 4  ;;  %v6521_v6 = vpop.permute.xlu1 %2147 }
 0xc69   :  { %v1122_v32 = vpop.permute.xlu0 %1121 }
 0xc6a   :  { %v2083_v35 = vadd.f32 %v2082_v23, %v2081_v17  ;;  %1133 = vst.msk [vmem:[#allocation2 + $0x60] sm:$0xff] %vm1088_vm6, %v1122_v32  ;;  %v5741_v32 = vmov 2  }
 0xc6c   :  { %v2084_v8 = vrot.slane %v2083_v35, 2 }
 0xc6d   :  { %v1126_v36 = vpop.permute.xlu0 %1125  ;;  %v2131_v9 = vpop.permute.xlu1 %2130 }
 0xc6e   :  { %v2085_v37 = vadd.f32 %v2084_v8, %v2083_v35  ;;  %1135 = vst.msk [vmem:[#allocation2 + $0x70] sm:$0xff] %vm1088_vm6, %v1126_v36 }
 0xc70   :  { %v2086_v38 = vrot.slane %v2085_v37, 1 }
 0xc71   :  { %v2136_v16 = vpop.permute.xlu1 %2135  ;;  %v6525_v27 = vld [vmem:[#allocation2 + $0x60] sm:$0xff] }
 0xc72   :  { %v2087_v21 = vadd.f32 %v2086_v38, %v2085_v37  ;;  %v2807_v54 = vsel %vm1088_vm6, %v6525_v27, 0.0 }
 0xc73   :  { %2808 = vadd.xlane.f32.xlu1 %v2807_v54 }
 0xc74   :  { %v2089_v41 = vmul.f32 0.03125, %v2087_v21 }
 0xc76   :  { %v2090_v7 = vsub.f32 %v6496_v51, %v2089_v41  ;;  %v2091_v11 = vsub.f32 %v6498_v18, %v2089_v41  ;;  %v2092_v44 = vsub.f32 %v6505_v39, %v2089_v41  ;;  %v2093_v57 = vsub.f32 %v6513_v55, %v2089_v41  ;;  %v2152_v25 = vpop.permute.xlu1 %2151 }
 0xc78   :  { %v2094_v15 = vmul.f32 %v2090_v7, %v2090_v7  ;;  %v2095_v26 = vmul.f32 %v2091_v11, %v2091_v11  ;;  %v2096_v45 = vmul.f32 %v2092_v44, %v2092_v44  ;;  %v2097_v53 = vmul.f32 %v2093_v57, %v2093_v57 }
 0xc7a   :  { %v2098_v24 = vsel %vm2074_vm11, %v2094_v15, 0.0  ;;  %v2099_v52 = vsel %vm2074_vm11, %v2095_v26, 0.0  ;;  %v2156_v56 = vpop.permute.xlu1 %2155  ;;  %v2101_v60 = vsel %vm2074_vm11, %v2096_v45, 0.0  ;;  %v2103_v0 = vsel %vm2074_vm11, %v2097_v53, 0.0 }
 0xc7b   :  { %v2100_v59 = vadd.f32 %v2099_v52, %v2098_v24 }
 0xc7d   :  { %v2102_v4 = vadd.f32 %v2101_v60, %v2100_v59 }
 0xc7f   :  { %v2104_v12 = vadd.f32 %v2103_v0, %v2102_v4  ;;  %v6537_v13 = vpop.permute.xlu1 %2163 }
 0xc81   :  { %v2105_v14 = vrot.slane %v2104_v12, 4 }
 0xc83   :  { %v2106_v42 = vadd.f32 %v2105_v14, %v2104_v12  ;;  %v6539_v33 = vpop.permute.xlu1 %2171 }
 0xc84   :  { %2381 = vperm.xlu1 %5565, %v6428_v1  }
 0xc85   :  { %v2107_v34 = vrot.slane %v2106_v42, 2 }
 0xc87   :  { %v2108_v20 = vadd.f32 %v2107_v34, %v2106_v42  ;;  %v6542_v43 = vpop.permute.xlu1 %2175 }
 0xc88   :  { %2389 = vperm.xlu1 %5565, %v6442_v48  }
 0xc89   :  { %v2109_v5 = vrot.slane %v2108_v20, 1 }
 0xc8b   :  { %v2110_v50 = vadd.f32 %v2109_v5, %v2108_v20  ;;  %v1124_v29 = vpop.permute.xlu1 %1123 }
 0xc8c   :  { %1134 = vst.msk [vmem:[#allocation2 + $0x68] sm:$0xff] %vm1088_vm6, %v1124_v29  ;;  %2393 = vperm.xlu1 %5565, %v6451_v49  }
 0xc8d   :  { %v2111_v31 = vmul.f32 0.03125, %v2110_v50 }
 0xc8f   :  { %v2112_v17 = vadd.f32 1e-05, %v2111_v31  ;;  %v1128_v23 = vpop.permute.xlu1 %1127 }
 0xc90   :  { %1136 = vst.msk [vmem:[#allocation2 + $0x78] sm:$0xff] %vm1088_vm6, %v1128_v23  ;;  %5566 = vset.pattern.permute.xlu1 %v5741_v32 }
 0xc91   :  { %5661 = vrsqrt.f32 %v2112_v17 }
 0xc93   :  { %v6549_v35 = vld [vmem:[#allocation2 + $0x68] sm:$0xff] }
 0xc94   :  { %v2810_v8 = vsel %vm1088_vm6, %v6549_v35, 0.0 }
 0xc95   :  { %2811 = vadd.xlane.f32.xlu0 %v2810_v8 }
 0xc97   :  { %v6553_v36 = vld [vmem:[#allocation2 + $0x78] sm:$0xff] }
 0xc98   :  { %v2816_v37 = vsel %vm1088_vm6, %v6553_v36, 0.0 }
 0xc99   :  { %2817 = vadd.xlane.f32.xlu0 %v2816_v37 }
 0xc9b   :  { %v5662_v38 = vpop.eup %5661 }
 0xc9c   :  { %v2114_v21 = vmul.f32 %v5662_v38, %v2090_v7  ;;  %v2115_v54 = vmul.f32 %v5662_v38, %v2091_v11  ;;  %v2116_v41 = vmul.f32 %v5662_v38, %v2092_v44  ;;  %v2117_v15 = vmul.f32 %v5662_v38, %v2093_v57 }
 0xc9e   :  { %v2138_v26 = vmul.f32 %v6507_v28, %v2114_v21  ;;  %v2139_v45 = vmul.f32 %v6509_v40, %v2115_v54  ;;  %v2140_v53 = vmul.f32 %v2131_v9, %v2116_v41  ;;  %v2141_v24 = vmul.f32 %v2136_v16, %v2117_v15  ;;  %v2067_v28 = vld [vmem:[%s7334_s2 + $0x1b0] sm:$0xff]  ;;  %v2068_v40 = vld [vmem:[%s7334_s2 + $0x1b8] sm:$0xff]  ;;  %v2797_v16 = vpop.xlane.xlu0 %2796 }
 0xc9f   :  { %v2819_v11 = vmul.f32 0.027777778, %v2797_v16 }
 0xca0   :  { %v2158_v52 = vadd.f32 %v6515_v63, %v2138_v26  ;;  %v2159_v59 = vadd.f32 %v6521_v6, %v2139_v45  ;;  %v2160_v60 = vadd.f32 %v2152_v25, %v2140_v53  ;;  %v2161_v4 = vadd.f32 %v2156_v56, %v2141_v24  ;;  %v6568_v63 = vld [vmem:[#allocation2 + $0x70] sm:$0xff]  ;;  %v2069_v6 = vld [vmem:[%s7334_s2 + $0x1c0] sm:$0xff]  ;;  %v2070_v45 = vld [vmem:[%s7334_s2 + $0x1e8] sm:$0xff] }
 0xca1   :  { %v2813_v9 = vsel %vm1088_vm6, %v6568_v63, 0.0  ;;  %v6587_v44 = vsub.f32 %v6465_v58, %v2819_v11 }
 0xca2   :  { %v5405_v0 = vpack.c.bf16 %v2159_v59, %v2158_v52  ;;  %v5409_v12 = vpack.c.bf16 %v2161_v4, %v2160_v60  ;;  %v2803_v7 = vpop.xlane.xlu0 %2802 }
 0xca3   :  { %v2821_v57 = vmul.f32 0.027777778, %v2803_v7  ;;  %v2835_v42 = vmul.f32 %v6587_v44, %v6587_v44 }
 0xca4   :  { %5406 = vmatprep.subr.bf16.mxu0 %v5405_v0 }
 0xca5   :  { %5408 = vmatpush3.bf16.msra.mxu0 %v5405_v0  ;;  %v6592_v56 = vsub.f32 %v6471_v61, %v2821_v57  ;;  %v2843_v20 = vsel %vm1088_vm6, %v2835_v42, 0.0 }
 0xca6   :  { %5410 = vmatprep.subr.bf16.mxu0 %v5409_v12  ;;  %v2806_v25 = vpop.xlane.xlu0 %2805 }
 0xca7   :  { %v2822_v14 = vmul.f32 0.027777778, %v2806_v25  ;;  %v2837_v5 = vmul.f32 %v6592_v56, %v6592_v56 }
 0xca9   :  { %5412 = vmatpush3.bf16.msra.mxu0 %v5409_v12  ;;  %v6598_v34 = vsub.f32 %v6478_v62, %v2822_v14  ;;  %v2849_v50 = vsel %vm1088_vm6, %v2837_v5, 0.0 }
 0xcaa   :  { %v2386_v53 = vpop.permute.xlu0 %2385 }
 0xcab   :  { %v2838_v29 = vmul.f32 %v6598_v34, %v6598_v34 }
 0xcac   :  { %5126 = vmatmul.mubr.msk.f32.vlgmr.msra.gmra.mrb[22].mxu0 %vm958_vm5, %v2067_v28 }
 0xcad   :  { %5128 = vmatprep.mubr.msk.f32.mxu0 %vm958_vm5, %v2068_v40  ;;  %v2852_v31 = vsel %vm1088_vm6, %v2838_v29, 0.0 }
 0xcaf   :  { %2471 = vperm.xlu0 %5567, %v6428_v1  }
 0xcb0   :  { %5129 = vmatmul.mubr.msk.f32.gmra.mrb[24].mxu0 %vm958_vm5, %v2069_v6  ;;  %2814 = vadd.xlane.f32.xlu1 %v2813_v9 }
 0xcb1   :  { %5139 = vmatprep.mubr.msk.f32.mxu0 %vm958_vm5, %v2070_v45 }
 0xcb3   :  { %5568 = vset.pattern.permute.xlu0 %v5741_v32 }
 0xcb4   :  { %2451 = vperm.xlu0 %5568, %v6428_v1  }
 0xcb8   :  { %2463 = vperm.xlu0 %5568, %v6451_v49  }
 0xcc1   :  { %2455 = vperm.xlu1 %5566, %v6423_v30   ;;  %v2800_v17 = vpop.xlane.xlu1 %2799 }
 0xcc2   :  { %v2820_v23 = vmul.f32 0.027777778, %v2800_v17 }
 0xcc4   :  { %v6608_v8 = vsub.f32 %v6488_v19, %v2820_v23 }
 0xcc5   :  { %5569 = vset.pattern.permute.xlu1 %v5740_v2 }
 0xcc6   :  { %2475 = vperm.xlu1 %5569, %v6423_v30   ;;  %v2836_v37 = vmul.f32 %v6608_v8, %v6608_v8 }
 0xcc8   :  { %v2846_v38 = vsel %vm1088_vm6, %v2836_v37, 0.0 }
 0xcca   :  { %5570 = vset.pattern.permute.xlu1 %v5741_v32 }
 0xccb   :  { %2459 = vperm.xlu1 %5570, %v6442_v48  }
 0xccf   :  { %5571 = vset.pattern.permute.xlu1 %v5740_v2 }
 0xcd0   :  { %2479 = vperm.xlu1 %5571, %v6442_v48  }
 0xcd4   :  { %2483 = vperm.xlu1 %5571, %v6451_v49  }
 0xcd7   :  { %2844 = vadd.xlane.f32.xlu0 %v2843_v20 }
 0xcdb   :  { %2850 = vadd.xlane.f32.xlu0 %v2849_v50 }
 0xcdf   :  { %2853 = vadd.xlane.f32.xlu0 %v2852_v31 }
 0xcf8   :  { %2847 = vadd.xlane.f32.xlu1 %v2846_v38 }
 0xd00   :  { %v2809_v21 = vpop.xlane.xlu1 %2808 }
 0xd01   :  { %v2823_v54 = vmul.f32 0.027777778, %v2809_v21 }
 0xd03   :  { %v6614_v41 = vsub.f32 %v6525_v27, %v2823_v54 }
 0xd04   :  { %v2382_v6 = vpop.permute.xlu1 %2381 }
 0xd05   :  { %v2839_v15 = vmul.f32 %v6614_v41, %v6614_v41 }
 0xd07   :  { %v2855_v26 = vsel %vm1088_vm6, %v2839_v15, 0.0 }
 0xd08   :  { %2856 = vadd.xlane.f32.xlu0 %v2855_v26  ;;  %v2390_v16 = vpop.permute.xlu1 %2389 }
 0xd0c   :  { %v2394_v7 = vpop.permute.xlu1 %2393 }
 0xd22   :  { %v2812_v24 = vpop.xlane.xlu0 %2811 }
 0xd23   :  { %v2824_v52 = vmul.f32 0.027777778, %v2812_v24  ;;  %v5742_v24 = vmov 5  }
 0xd24   :  { %5573 = vset.pattern.permute.xlu1 %v5742_v24  ;;  %5572 = vset.pattern.permute.xlu0 %v5742_v24 }
 0xd25   :  { %v6624_v59 = vsub.f32 %v6549_v35, %v2824_v52 }
 0xd26   :  { %v2818_v60 = vpop.xlane.xlu0 %2817 }
 0xd27   :  { %v2826_v4 = vmul.f32 0.027777778, %v2818_v60  ;;  %v2840_v0 = vmul.f32 %v6624_v59, %v6624_v59 }
 0xd29   :  { %v6629_v12 = vsub.f32 %v6553_v36, %v2826_v4  ;;  %v2858_v28 = vsel %vm1088_vm6, %v2840_v0, 0.0 }
 0xd2a   :  { %2859 = vadd.xlane.f32.xlu1 %v2858_v28 }
 0xd2b   :  { %v2842_v40 = vmul.f32 %v6629_v12, %v6629_v12 }
 0xd2d   :  { %v2864_v9 = vsel %vm1088_vm6, %v2842_v40, 0.0 }
 0xd2e   :  { %2865 = vadd.xlane.f32.xlu1 %v2864_v9 }
 0xd3d   :  { %v2815_v11 = vpop.xlane.xlu1 %2814 }
 0xd3e   :  { %v2825_v57 = vmul.f32 0.027777778, %v2815_v11 }
 0xd3f   :  { %2495 = vperm.xlu1 %5573, %v6423_v30  }
 0xd40   :  { %v6636_v25 = vsub.f32 %v6568_v63, %v2825_v57 }
 0xd42   :  { %v2841_v14 = vmul.f32 %v6636_v25, %v6636_v25 }
 0xd43   :  { %2499 = vperm.xlu1 %5573, %v6442_v48  }
 0xd44   :  { %v2861_v42 = vsel %vm1088_vm6, %v2841_v14, 0.0 }
 0xd45   :  { %2862 = vadd.xlane.f32.xlu0 %v2861_v42 }
 0xd47   :  { %2503 = vperm.xlu1 %5573, %v6451_v49  }
 0xd4b   :  { %5575 = vset.pattern.permute.xlu1 %v5736_v22 }
 0xd5b   :  { %2491 = vperm.xlu0 %5572, %v6428_v1  }
 0xd5f   :  { %5574 = vset.pattern.permute.xlu0 %v5736_v22 }
 0xd7f   :  { %v5127_v20 = vpop.f32.mrb[22].mxu0 }
 0xd80   :  { %v2262_v5 = vadd.f32 %v5127_v20, %v6519_v3  ;;  %v2256_v50 = vpop.f32.mrb[23].mxu0  ;;  %v2071_v3 = vld [vmem:[%s7334_s2 + $0x1f0] sm:$0xff] }
 0xd81   :  { %v2257_v29 = vadd.f32 %v2256_v50, %v6537_v13  ;;  %v2072_v13 = vld [vmem:[%s7334_s2 + $0x1f8] sm:$0xff] }
 0xd82   :  { %v2276_v31 = vmax.f32 %v2262_v5, 0.0 }
 0xd83   :  { %v2275_v17 = vmax.f32 %v2257_v29, 0.0  ;;  %v5130_v23 = vpop.f32.mrb[24].mxu0 }
 0xd84   :  { %v2272_v37 = vadd.f32 %v5130_v23, %v6542_v43  ;;  %v2266_v38 = vpop.f32.mrb[25].mxu0  ;;  %v2400_v43 = vld [vmem:[%s7334_s2 + $0x1c8] sm:$0xff] }
 0xd85   :  { %v5413_v21 = vpack.c.bf16 %v2276_v31, %v2275_v17  ;;  %v2267_v54 = vadd.f32 %v2266_v38, %v6539_v33  ;;  %v2073_v33 = vld [vmem:[%s7334_s2 + $0x200] sm:$0xff]  ;;  %5153 = vmatprep.mubr.msk.f32.mxu1 %vm958_vm5, %v2400_v43 }
 0xd86   :  { %v2278_v15 = vmax.f32 %v2272_v37, 0.0 }
 0xd87   :  { %v2277_v26 = vmax.f32 %v2267_v54, 0.0  ;;  %5414 = vmatprep.subr.bf16.mxu0 %v5413_v21 }
 0xd88   :  { %5416 = vmatpush3.bf16.msra.mxu0 %v5413_v21 }
 0xd89   :  { %v5417_v45 = vpack.c.bf16 %v2278_v15, %v2277_v26 }
 0xd8b   :  { %5418 = vmatprep.subr.bf16.mxu0 %v5417_v45 }
 0xd8c   :  { %5420 = vmatpush3.bf16.msra.mxu0 %v5417_v45 }
 0xd8f   :  { %5140 = vmatmul.mubr.msk.f32.vlgmr.msra.gmra.mrb[26].mxu0 %vm958_vm5, %v2071_v3 }
 0xd90   :  { %5142 = vmatprep.mubr.msk.f32.mxu0 %vm958_vm5, %v2072_v13 }
 0xd93   :  { %5143 = vmatmul.mubr.msk.f32.gmra.mrb[28].mxu0 %vm958_vm5, %v2073_v33 }
 0xe62   :  { %v5141_v52 = vpop.f32.mrb[26].mxu0 }
 0xe63   :  { %v2377_v60 = vadd.f32 %v5141_v52, %v6498_v18  ;;  %v2357_v4 = vpop.f32.mrb[27].mxu0 }
 0xe64   :  { %v2376_v0 = vadd.f32 %v2357_v4, %v6496_v51 }
 0xe65   :  { %v6671_v28 = vadd.f32 %v2386_v53, %v2377_v60 }
 0xe66   :  { %v6673_v40 = vadd.f32 %v2382_v6, %v2376_v0  ;;  %v5144_v30 = vpop.f32.mrb[28].mxu0 }
 0xe67   :  { %v2379_v1 = vadd.f32 %v5144_v30, %v6513_v55  ;;  %v2367_v48 = vpop.f32.mrb[29].mxu0  ;;  %v2409_v9 = vsel %vm2074_vm11, %v6671_v28, 0.0 }
 0xe68   :  { %v2408_v49 = vsel %vm2074_vm11, %v6673_v40, 0.0  ;;  %v2378_v11 = vadd.f32 %v2367_v48, %v6505_v39 }
 0xe69   :  { %v6681_v18 = vadd.f32 %v2394_v7, %v2379_v1  ;;  %v2410_v51 = vadd.f32 %v2409_v9, %v2408_v49  ;;  %v6689_v7 = vpop.permute.xlu0 %2471 }
 0xe6a   :  { %v6683_v57 = vadd.f32 %v2390_v16, %v2378_v11  ;;  %v2456_v16 = vpop.permute.xlu1 %2455 }
 0xe6b   :  { %v2413_v55 = vsel %vm2074_vm11, %v6681_v18, 0.0 }
 0xe6c   :  { %v2411_v53 = vsel %vm2074_vm11, %v6683_v57, 0.0 }
 0xe6d   :  { %v2412_v6 = vadd.f32 %v2411_v53, %v2410_v51  ;;  %v2452_v33 = vpop.permute.xlu0 %2451 }
 0xe6e   :  { %v2476_v43 = vpop.permute.xlu1 %2475 }
 0xe6f   :  { %v2414_v14 = vadd.f32 %v2413_v55, %v2412_v6 }
 0xe71   :  { %v2415_v42 = vrot.slane %v2414_v14, 4  ;;  %v2464_v1 = vpop.permute.xlu0 %2463 }
 0xe72   :  { %v2460_v48 = vpop.permute.xlu1 %2459 }
 0xe73   :  { %v2416_v20 = vadd.f32 %v2415_v42, %v2414_v14 }
 0xe75   :  { %v2417_v5 = vrot.slane %v2416_v20, 2  ;;  %v2845_v51 = vpop.xlane.xlu0 %2844 }
 0xe76   :  { %v2480_v53 = vpop.permute.xlu1 %2479 }
 0xe77   :  { %v2418_v50 = vadd.f32 %v2417_v5, %v2416_v20 }
 0xe79   :  { %v2419_v29 = vrot.slane %v2418_v50, 1  ;;  %v2851_v42 = vpop.xlane.xlu0 %2850 }
 0xe7a   :  { %v2484_v20 = vpop.permute.xlu1 %2483 }
 0xe7b   :  { %v2420_v31 = vadd.f32 %v2419_v29, %v2418_v50  ;;  %v2867_v50 = vmul.f32 0.027777778, %v2845_v51 }
 0xe7d   :  { %v2421_v39 = vmul.f32 0.03125, %v2420_v31  ;;  %v2854_v29 = vpop.xlane.xlu0 %2853 }
 0xe7e   :  { %v2848_v31 = vpop.xlane.xlu1 %2847 }
 0xe7f   :  { %v2422_v17 = vsub.f32 %v6673_v40, %v2421_v39  ;;  %v2423_v23 = vsub.f32 %v6671_v28, %v2421_v39  ;;  %v2424_v37 = vsub.f32 %v6683_v57, %v2421_v39  ;;  %v2425_v38 = vsub.f32 %v6681_v18, %v2421_v39 }
 0xe80   :  { %v2869_v39 = vmul.f32 0.027777778, %v2851_v42 }
 0xe81   :  { %v2426_v21 = vmul.f32 %v2422_v17, %v2422_v17  ;;  %v2427_v54 = vmul.f32 %v2423_v23, %v2423_v23  ;;  %v2428_v15 = vmul.f32 %v2424_v37, %v2424_v37  ;;  %v2429_v26 = vmul.f32 %v2425_v38, %v2425_v38 }
 0xe83   :  { %v2430_v45 = vsel %vm2074_vm11, %v2426_v21, 0.0  ;;  %v2431_v3 = vsel %vm2074_vm11, %v2427_v54, 0.0  ;;  %v2433_v52 = vsel %vm2074_vm11, %v2428_v15, 0.0  ;;  %v2435_v4 = vsel %vm2074_vm11, %v2429_v26, 0.0  ;;  %v2857_v15 = vpop.xlane.xlu0 %2856 }
 0xe84   :  { %v2432_v13 = vadd.f32 %v2431_v3, %v2430_v45  ;;  %v2875_v21 = vadd.f32 1e-05, %v2867_v50  ;;  %v2868_v54 = vmul.f32 0.027777778, %v2848_v31  ;;  %v2877_v26 = vadd.f32 1e-05, %v2869_v39  ;;  %v2860_v3 = vpop.xlane.xlu1 %2859 }
 0xe85   :  { %v2870_v45 = vmul.f32 0.027777778, %v2854_v29 }
 0xe86   :  { %v2434_v60 = vadd.f32 %v2433_v52, %v2432_v13  ;;  %v2876_v52 = vadd.f32 1e-05, %v2868_v54 }
 0xe88   :  { %v2436_v0 = vadd.f32 %v2435_v4, %v2434_v60  ;;  %v2871_v60 = vmul.f32 0.027777778, %v2857_v15  ;;  %v2863_v4 = vpop.xlane.xlu0 %2862  ;;  %v2866_v29 = vpop.xlane.xlu1 %2865  ;;  %v2785_v15 = vld [vmem:[%s7334_s2 + $0x248] sm:$0xff] }
 0xe89   :  { %v2873_v50 = vmul.f32 0.027777778, %v2863_v4 }
 0xe8a   :  { %v2437_v30 = vrot.slane %v2436_v0, 4  ;;  %v2879_v42 = vadd.f32 1e-05, %v2871_v60 }
 0xe8c   :  { %v2438_v9 = vadd.f32 %v2437_v30, %v2436_v0 }
 0xe8e   :  { %v2439_v49 = vrot.slane %v2438_v9, 2 }
 0xe90   :  { %v2440_v11 = vadd.f32 %v2439_v49, %v2438_v9 }
 0xe92   :  { %v2441_v6 = vrot.slane %v2440_v11, 1 }
 0xe94   :  { %v2442_v55 = vadd.f32 %v2441_v6, %v2440_v11  ;;  %v2878_v11 = vadd.f32 1e-05, %v2870_v45  ;;  %v4565_v45 = vld [vmem:[%s7334_s2 + $0x228] ss:$0 sm:$0xff] }
 0xe96   :  { %v2443_v14 = vmul.f32 0.03125, %v2442_v55 }
 0xe98   :  { %v2444_v5 = vadd.f32 1e-05, %v2443_v14 }
 0xe9a   :  { %5663 = vrsqrt.f32 %v2444_v5  ;;  %v2872_v5 = vmul.f32 0.027777778, %v2860_v3 }
 0xe9b   :  { %5665 = vrsqrt.f32 %v2875_v21 }
 0xe9c   :  { %5667 = vrsqrt.f32 %v2877_v26 }
 0xe9d   :  { %5669 = vrsqrt.f32 %v2876_v52  ;;  %v2402_v52 = vld [vmem:[%s7334_s2 + $0x1d8] sm:$0xff] }
 0xe9e   :  { %5671 = vrsqrt.f32 %v2878_v11 }
 0xe9f   :  { %5673 = vrsqrt.f32 %v2879_v42 }
 0xea4   :  { %v5664_v13 = vpop.eup %5663 }
 0xea5   :  { %v2448_v0 = vmul.f32 %v5664_v13, %v2424_v37  ;;  %v2446_v30 = vmul.f32 %v5664_v13, %v2422_v17  ;;  %v2447_v9 = vmul.f32 %v5664_v13, %v2423_v23  ;;  %v2449_v49 = vmul.f32 %v5664_v13, %v2425_v38  ;;  %v2783_v38 = vld [vmem:[%s7334_s2 + $0x238] sm:$0xff]  ;;  %v2401_v13 = vld [vmem:[%s7334_s2 + $0x1d0] sm:$0xff] }
 0xea6   :  { %v2880_v17 = vadd.f32 1e-05, %v2872_v5  ;;  %v2874_v23 = vmul.f32 0.027777778, %v2866_v29 }
 0xea7   :  { %v2466_v51 = vmul.f32 %v2452_v33, %v2446_v30  ;;  %v2467_v6 = vmul.f32 %v2456_v16, %v2447_v9  ;;  %v2468_v55 = vmul.f32 %v2460_v48, %v2448_v0  ;;  %v2469_v14 = vmul.f32 %v2464_v1, %v2449_v49  ;;  %v2782_v16 = vld [vmem:[%s7334_s2 + $0x230] sm:$0xff]  ;;  %v5666_v33 = vpop.eup %5665  ;;  %v4566_v0 = vld [vmem:[%s7334_s2 + $0x229] ss:$0 sm:$0xff]  ;;  %v2403_v9 = vld [vmem:[%s7334_s2 + $0x1e0] sm:$0xff] }
 0xea8   :  { %v2881_v1 = vadd.f32 1e-05, %v2873_v50  ;;  %v5668_v48 = vpop.eup %5667  ;;  %5675 = vrsqrt.f32 %v2880_v17  ;;  %v2891_v26 = vmul.f32 %v5666_v33, %v6587_v44 }
 0xea9   :  { %v2486_v31 = vadd.f32 %v6689_v7, %v2466_v51  ;;  %v2487_v39 = vadd.f32 %v2476_v43, %v2467_v6  ;;  %v2488_v21 = vadd.f32 %v2480_v53, %v2468_v55  ;;  %v2489_v54 = vadd.f32 %v2484_v20, %v2469_v14  ;;  %v2784_v20 = vld [vmem:[%s7334_s2 + $0x240] sm:$0xff]  ;;  %v5670_v3 = vpop.eup %5669 }
 0xeaa   :  { %v5437_v43 = vpack.c.bf16 %v2783_v38, %v2782_v16  ;;  %v2882_v53 = vadd.f32 1e-05, %v2874_v23  ;;  %5677 = vrsqrt.f32 %v2881_v1  ;;  %v5441_v60 = vpack.c.bf16 %v2785_v15, %v2784_v20  ;;  %v5672_v30 = vpop.eup %5671  ;;  %v2496_v1 = vpop.permute.xlu1 %2495 }
 0xeab   :  { %v5421_v37 = vpack.c.bf16 %v2487_v39, %v2486_v31  ;;  %v5425_v7 = vpack.c.bf16 %v2489_v54, %v2488_v21  ;;  %v2903_v4 = vmul.f32 %v4565_v45, %v2891_v26  ;;  %v2892_v44 = vmul.f32 %v5670_v3, %v6608_v8  ;;  %v5674_v11 = vpop.eup %5673  ;;  %v2786_v8 = vld [vmem:[%s7334_s2 + $0x250] sm:$0xf] }
 0xeac   :  { %5679 = vrsqrt.f32 %v2882_v53  ;;  %v2893_v49 = vmul.f32 %v5668_v48, %v6592_v56  ;;  %v2894_v55 = vmul.f32 %v5672_v30, %v6598_v34  ;;  %v2895_v5 = vmul.f32 %v5674_v11, %v6614_v41  ;;  %v2787_v30 = vld [vmem:[%s7334_s2 + $0x280] sm:$0xff] }
 0xead   :  { %5422 = vmatprep.subr.bf16.mxu1 %v5421_v37  ;;  %v2915_v51 = vadd.f32 %v4566_v0, %v2903_v4  ;;  %v2904_v6 = vmul.f32 %v4565_v45, %v2892_v44 }
 0xeae   :  { %5424 = vmatpush3.bf16.msra.mxu1 %v5421_v37  ;;  %v2905_v42 = vmul.f32 %v4565_v45, %v2893_v49  ;;  %v2906_v29 = vmul.f32 %v4565_v45, %v2894_v55  ;;  %v2907_v54 = vmul.f32 %v4565_v45, %v2895_v5  ;;  %v2789_v55 = vld [vmem:[%s7334_s2 + $0x290] sm:$0xff] }
 0xeaf   :  { %5426 = vmatprep.subr.bf16.mxu1 %v5425_v7  ;;  %v2916_v50 = vadd.f32 %v4566_v0, %v2904_v6  ;;  %v2405_v5 = vld [vmem:[%s7334_s2 + $0x210] sm:$0xff] }
 0xeb0   :  { %v2917_v21 = vadd.f32 %v4566_v0, %v2905_v42  ;;  %v2918_v37 = vadd.f32 %v4566_v0, %v2906_v29  ;;  %v2919_v23 = vadd.f32 %v4566_v0, %v2907_v54  ;;  %v4567_v42 = vld [vmem:[%s7334_s2 + $0x22c] ss:$0 sm:$0xff] }
 0xeb1   :  { %v2792_v54 = vld [vmem:[%s7334_s2 + $0x2a8] sm:$0xff] }
 0xeb2   :  { %5428 = vmatpush3.bf16.msra.mxu1 %v5425_v7  ;;  %v5676_v14 = vpop.eup %5675  ;;  %v2500_v7 = vpop.permute.xlu1 %2499 }
 0xeb3   :  { %5438 = vmatprep.subr.bf16.mxu1 %v5437_v43  ;;  %v2896_v31 = vmul.f32 %v5676_v14, %v6624_v59  ;;  %v2790_v14 = vld [vmem:[%s7334_s2 + $0x298] sm:$0xff] }
 0xeb4   :  { %v5678_v56 = vpop.eup %5677  ;;  %v5449_v29 = vpack.c.bf16 %v2790_v14, %v2789_v55 }
 0xeb5   :  { %5154 = vmatmul.mubr.msk.f32.vlgmr.msra.gmra.mrb[40].mxu1 %vm958_vm5, %v2401_v13  ;;  %v2897_v34 = vmul.f32 %v5678_v56, %v6636_v25  ;;  %v2908_v41 = vmul.f32 %v4565_v45, %v2896_v31 }
 0xeb6   :  { %5440 = vmatpush3.bf16.msra.mxu1 %v5437_v43  ;;  %5156 = vmatprep.mubr.msk.f32.mxu1 %vm958_vm5, %v2402_v52  ;;  %v5680_v39 = vpop.eup %5679  ;;  %v2492_v43 = vpop.permute.xlu0 %2491 }
 0xeb7   :  { %5442 = vmatprep.subr.bf16.mxu1 %v5441_v60  ;;  %v2898_v17 = vmul.f32 %v5680_v39, %v6629_v12  ;;  %v2909_v16 = vmul.f32 %v4565_v45, %v2897_v34  ;;  %v2920_v59 = vadd.f32 %v4566_v0, %v2908_v41  ;;  %v2404_v12 = vld [vmem:[%s7334_s2 + $0x208] sm:$0xff]  ;;  %v2407_v34 = vld [vmem:[%s7334_s2 + $0x220] sm:$0xff] }
 0xeb8   :  { %5167 = vmatprep.mubr.msk.f32.mxu0 %vm958_vm5, %v2404_v12 }
 0xeb9   :  { %5157 = vmatmul.mubr.msk.f32.gmra.mrb[42].mxu1 %vm958_vm5, %v2403_v9  ;;  %v2910_v38 = vmul.f32 %v4565_v45, %v2898_v17  ;;  %v2921_v33 = vadd.f32 %v4566_v0, %v2909_v16  ;;  %v2504_v45 = vpop.permute.xlu1 %2503  ;;  %v2788_v9 = vld [vmem:[%s7334_s2 + $0x288] sm:$0xff]  ;;  %v2793_v16 = vld [vmem:[%s7334_s2 + $0x2b0] sm:$0xff] }
 0xeba   :  { %5444 = vmatpush3.bf16.msra.mxu1 %v5441_v60  ;;  %5183 = vmatprep.mubr.msk.f32.mxu1 %vm1088_vm6, %v2915_v51 }
 0xebb   :  { %5181 = vmatprep.subr.msk.mxu1 %vm1319_vm7, %v2786_v8  ;;  %v2922_v25 = vadd.f32 %v4566_v0, %v2910_v38 }
 0xebe   :  { %5182 = vmatpush3.msk.msra.mxu1 %vm1319_vm7, %v2786_v8  ;;  %v5445_v8 = vpack.c.bf16 %v2788_v9, %v2787_v30  ;;  %v4585_v9 = vld [vmem:[%s7334_s2 + $0x22e] ss:$0 sm:$0xff] }
 0xebf   :  { %5184 = vmatmul.mubr.msk.f32.vlgmr.msra.gmra.mrb[44].mxu1 %vm1088_vm6, %v2916_v50  ;;  %v2406_v50 = vld [vmem:[%s7334_s2 + $0x218] sm:$0xff] }
 0xec0   :  { %5186 = vmatprep.mubr.msk.f32.mxu1 %vm1088_vm6, %v2917_v21  ;;  %v2791_v21 = vld [vmem:[%s7334_s2 + $0x2a0] sm:$0xff] }
 0xec1   :  { %v5453_v41 = vpack.c.bf16 %v2792_v54, %v2791_v21 }
 0xec3   :  { %5187 = vmatmul.mubr.msk.f32.gmra.mrb[46].mxu1 %vm1088_vm6, %v2918_v37 }
 0xec4   :  { %5189 = vmatprep.mubr.msk.f32.mxu1 %vm1088_vm6, %v2919_v23 }
 0xec7   :  { %5190 = vmatmul.mubr.msk.f32.gmra.mrb[48].mxu1 %vm1088_vm6, %v2920_v59  ;;  %v2794_v59 = vld [vmem:[%s7334_s2 + $0x2b8] sm:$0xff] }
 0xec8   :  { %5192 = vmatprep.mubr.msk.f32.mxu1 %vm1088_vm6, %v2921_v33  ;;  %v5457_v33 = vpack.c.bf16 %v2794_v59, %v2793_v16 }
 0xecb   :  { %5193 = vmatmul.mubr.msk.f32.gmra.mrb[50].mxu1 %vm1088_vm6, %v2922_v25 }
 0xf88   :  { %v5155_v48 = vpop.f32.mrb[40].mxu1 }
 0xf89   :  { %v2590_v53 = vadd.f32 %v5155_v48, %v2496_v1  ;;  %v2584_v20 = vpop.f32.mrb[41].mxu1 }
 0xf8a   :  { %v2585_v15 = vadd.f32 %v2584_v20, %v2492_v43 }
 0xf8b   :  { %v2604_v26 = vmax.f32 %v2590_v53, 0.0 }
 0xf8c   :  { %v2603_v3 = vmax.f32 %v2585_v15, 0.0  ;;  %v5158_v13 = vpop.f32.mrb[42].mxu1 }
 0xf8d   :  { %v2600_v52 = vadd.f32 %v5158_v13, %v2504_v45  ;;  %v2594_v60 = vpop.f32.mrb[43].mxu1 }
 0xf8e   :  { %v5429_v4 = vpack.c.bf16 %v2604_v26, %v2603_v3  ;;  %v2595_v44 = vadd.f32 %v2594_v60, %v2500_v7 }
 0xf8f   :  { %v2606_v0 = vmax.f32 %v2600_v52, 0.0 }
 0xf90   :  { %v2605_v49 = vmax.f32 %v2595_v44, 0.0  ;;  %5430 = vmatprep.subr.bf16.mxu0 %v5429_v4 }
 0xf91   :  { %5432 = vmatpush3.bf16.msra.mxu0 %v5429_v4 }
 0xf92   :  { %v5433_v11 = vpack.c.bf16 %v2606_v0, %v2605_v49  ;;  %v5185_v51 = vpop.f32.mrb[44].mxu1 }
 0xf93   :  { %v3020_v6 = vpop.f32.mrb[45].mxu1  ;;  %v3026_v12 = vadd.f32 %v5185_v51, %v4567_v42 }
 0xf94   :  { %5434 = vmatprep.subr.bf16.mxu0 %v5433_v11  ;;  %v3021_v31 = vadd.f32 %v4567_v42, %v3020_v6 }
 0xf95   :  { %5436 = vmatpush3.bf16.msra.mxu0 %v5433_v11  ;;  %v3060_v7 = vmax.f32 %v3026_v12, 0.0 }
 0xf96   :  { %v5188_v56 = vpop.f32.mrb[46].mxu1  ;;  %5446 = vmatprep.subr.bf16.mxu0 %v5445_v8  ;;  %v3059_v17 = vmax.f32 %v3021_v31, 0.0 }
 0xf97   :  { %v3030_v39 = vpop.f32.mrb[47].mxu1  ;;  %v3036_v43 = vadd.f32 %v5188_v56, %v4567_v42 }
 0xf98   :  { %5168 = vmatmul.mubr.msk.f32.vlgmr.msra.gmra.mrb[30].mxu0 %vm958_vm5, %v2405_v5  ;;  %v3031_v1 = vadd.f32 %v4567_v42, %v3030_v39 }
 0xf99   :  { %5448 = vmatpush3.bf16.msra.mxu0 %v5445_v8  ;;  %5170 = vmatprep.mubr.msk.f32.mxu0 %vm958_vm5, %v2406_v50  ;;  %v3062_v20 = vmax.f32 %v3036_v43, 0.0 }
 0xf9a   :  { %v5191_v37 = vpop.f32.mrb[48].mxu1  ;;  %5450 = vmatprep.subr.bf16.mxu0 %v5449_v29  ;;  %v3061_v48 = vmax.f32 %v3031_v1, 0.0 }
 0xf9b   :  { %v3040_v23 = vpop.f32.mrb[49].mxu1  ;;  %v3046_v15 = vadd.f32 %v5191_v37, %v4567_v42 }
 0xf9c   :  { %5171 = vmatmul.mubr.msk.f32.gmra.mrb[32].mxu0 %vm958_vm5, %v2407_v34  ;;  %v3041_v53 = vadd.f32 %v4567_v42, %v3040_v23 }
 0xf9d   :  { %5452 = vmatpush3.bf16.msra.mxu0 %v5449_v29  ;;  %5211 = vmatprep.mubr.msk.f32.mxu0 %vm1436_vm8, %v3059_v17  ;;  %v3064_v3 = vmax.f32 %v3046_v15, 0.0 }
 0xf9e   :  { %v5194_v38 = vpop.f32.mrb[50].mxu1  ;;  %5454 = vmatprep.subr.bf16.mxu0 %v5453_v41  ;;  %v3063_v26 = vmax.f32 %v3041_v53, 0.0 }
 0xf9f   :  { %v3050_v25 = vpop.f32.mrb[51].mxu1  ;;  %v3056_v13 = vadd.f32 %v5194_v38, %v4567_v42 }
 0xfa0   :  { %v3051_v45 = vadd.f32 %v4567_v42, %v3050_v25 }
 0xfa1   :  { %5456 = vmatpush3.bf16.msra.mxu0 %v5453_v41  ;;  %v3066_v60 = vmax.f32 %v3056_v13, 0.0 }
 0xfa2   :  { %5458 = vmatprep.subr.bf16.mxu0 %v5457_v33  ;;  %v3065_v52 = vmax.f32 %v3051_v45, 0.0 }
 0xfa5   :  { %5460 = vmatpush3.bf16.msra.mxu0 %v5457_v33 }
 0xfa8   :  { %5212 = vmatmul.mubr.msk.f32.vlgmr.msra.gmra.mrb[34].mxu0 %vm1436_vm8, %v3060_v7 }
 0xfa9   :  { %5214 = vmatprep.mubr.msk.f32.mxu0 %vm1436_vm8, %v3061_v48 }
 0xfac   :  { %5215 = vmatmul.mubr.msk.f32.gmra.mrb[36].mxu0 %vm1436_vm8, %v3062_v20 }
 0xfad   :  { %5217 = vmatprep.mubr.msk.f32.mxu0 %vm1436_vm8, %v3063_v26 }
 0xfb0   :  { %5218 = vmatmul.mubr.msk.f32.gmra.mrb[38].mxu0 %vm1436_vm8, %v3064_v3 }
 0xfb1   :  { %5220 = vmatprep.mubr.msk.f32.mxu0 %vm1436_vm8, %v3065_v52 }
 0xfb4   :  { %5221 = vmatmul.mubr.msk.f32.gmra.mrb[40].mxu0 %vm1436_vm8, %v3066_v60 }
0x106b   :  { %v6802_v4 = vpop.f32.mrb[30].mxu0 }
0x106c   :  { %v6804_v44 = vpop.f32.mrb[31].mxu0 }
0x106f   :  { %v6806_v0 = vpop.f32.mrb[32].mxu0 }
0x1070   :  { %v6808_v30 = vpop.f32.mrb[33].mxu0 }
0x107b   :  { %v5213_v49 = vpop.f32.mrb[34].mxu0 }
0x107c   :  { %v3197_v11 = vadd.f32 %v5213_v49, %v6488_v19  ;;  %v3157_v51 = vpop.f32.mrb[35].mxu0 }
0x107d   :  { %v3196_v8 = vadd.f32 %v3157_v51, %v6465_v58 }
0x107e   :  { %v6815_v6 = vadd.f32 %v4585_v9, %v3197_v11 }
0x107f   :  { %v6817_v55 = vadd.f32 %v4585_v9, %v3196_v8  ;;  %v5216_v14 = vpop.f32.mrb[36].mxu0 }
0x1080   :  { %v3199_v42 = vadd.f32 %v5216_v14, %v6478_v62  ;;  %v3167_v5 = vpop.f32.mrb[37].mxu0  ;;  %v3236_v56 = vsel %vm1088_vm6, %v6815_v6, 0.0 }
0x1081   :  { %v3198_v50 = vadd.f32 %v3167_v5, %v6471_v61  ;;  %3237 = vadd.xlane.f32.xlu0 %v3236_v56  ;;  %v3233_v19 = vsel %vm1088_vm6, %v6817_v55, 0.0 }
0x1082   :  { %v6825_v29 = vadd.f32 %v4585_v9, %v3199_v42  ;;  %3234 = vadd.xlane.f32.xlu1 %v3233_v19 }
0x1083   :  { %v5219_v58 = vpop.f32.mrb[38].mxu0  ;;  %v6829_v21 = vadd.f32 %v4585_v9, %v3198_v50 }
0x1084   :  { %v3177_v31 = vpop.f32.mrb[39].mxu0  ;;  %v3242_v39 = vsel %vm1088_vm6, %v6825_v29, 0.0  ;;  %v3201_v61 = vadd.f32 %v5219_v58, %v6549_v35 }
0x1085   :  { %v3200_v62 = vadd.f32 %v3177_v31, %v6525_v27  ;;  %v3239_v17 = vsel %vm1088_vm6, %v6829_v21, 0.0 }
0x1086   :  { %3243 = vadd.xlane.f32.xlu1 %v3242_v39  ;;  %v6840_v16 = vadd.f32 %v4585_v9, %v3201_v61 }
0x1087   :  { %v5222_v54 = vpop.f32.mrb[40].mxu0  ;;  %v6833_v37 = vadd.f32 %v4585_v9, %v3200_v62 }
0x1088   :  { %v3187_v34 = vpop.f32.mrb[41].mxu0  ;;  %v3203_v59 = vadd.f32 %v5222_v54, %v6553_v36 }
0x1089   :  { %v3202_v41 = vadd.f32 %v3187_v34, %v6568_v63  ;;  %v3245_v27 = vsel %vm1088_vm6, %v6833_v37, 0.0  ;;  %v3248_v63 = vsel %vm1088_vm6, %v6840_v16, 0.0 }
0x108a   :  { %3240 = vadd.xlane.f32.xlu1 %v3239_v17  ;;  %v6847_v38 = vadd.f32 %v4585_v9, %v3203_v59 }
0x108b   :  { %v6838_v23 = vadd.f32 %v4585_v9, %v3202_v41 }
0x108c   :  { %v3254_v33 = vsel %vm1088_vm6, %v6847_v38, 0.0 }
0x108d   :  { %v3251_v35 = vsel %vm1088_vm6, %v6838_v23, 0.0 }
0x108e   :  { %3246 = vadd.xlane.f32.xlu1 %v3245_v27  ;;  %3252 = vadd.xlane.f32.xlu0 %v3251_v35 }
0x1092   :  { %3249 = vadd.xlane.f32.xlu1 %v3248_v63 }
0x1096   :  { %3255 = vadd.xlane.f32.xlu1 %v3254_v33  ;;  %v3220_v33 = vld [vmem:[%s7334_s2 + $0x258] sm:$0xff] }
0x110e   :  { %v3238_v25 = vpop.xlane.xlu0 %3237 }
0x110f   :  { %v3258_v36 = vmul.f32 0.027777778, %v3238_v25  ;;  %v3235_v12 = vpop.xlane.xlu1 %3234  ;;  %v3221_v25 = vld [vmem:[%s7334_s2 + $0x260] sm:$0xff] }
0x1110   :  { %v3257_v1 = vmul.f32 0.027777778, %v3235_v12  ;;  %v3222_v12 = vld [vmem:[%s7334_s2 + $0x268] sm:$0xff] }
0x1111   :  { %v6854_v7 = vsub.f32 %v6815_v6, %v3258_v36  ;;  %v5461_v36 = vpack.c.bf16 %v3221_v25, %v3220_v33 }
0x1112   :  { %v6857_v43 = vsub.f32 %v6817_v55, %v3257_v1  ;;  %v3223_v1 = vld [vmem:[%s7334_s2 + $0x270] sm:$0xff] }
0x1113   :  { %v3244_v48 = vpop.xlane.xlu1 %3243  ;;  %v3274_v53 = vmul.f32 %v6854_v7, %v6854_v7  ;;  %5462 = vmatprep.subr.bf16.mxu1 %v5461_v36 }
0x1114   :  { %v3260_v20 = vmul.f32 0.027777778, %v3244_v48  ;;  %v3273_v15 = vmul.f32 %v6857_v43, %v6857_v43  ;;  %5464 = vmatpush3.bf16.msra.mxu1 %v5461_v36  ;;  %v5465_v48 = vpack.c.bf16 %v3223_v1, %v3222_v12 }
0x1115   :  { %v3284_v26 = vsel %vm1088_vm6, %v3274_v53, 0.0  ;;  %v3224_v53 = vld [vmem:[%s7334_s2 + $0x278] sm:$0xf] }
0x1116   :  { %v6865_v45 = vsub.f32 %v6825_v29, %v3260_v20  ;;  %3285 = vadd.xlane.f32.xlu1 %v3284_v26  ;;  %v3281_v3 = vsel %vm1088_vm6, %v3273_v15, 0.0  ;;  %5466 = vmatprep.subr.bf16.mxu1 %v5465_v48  ;;  %v3225_v20 = vld [vmem:[%s7334_s2 + $0x2c0] sm:$0xff]  ;;  %v3226_v15 = vld [vmem:[%s7334_s2 + $0x2c8] sm:$0xff]  ;;  %v3227_v26 = vld [vmem:[%s7334_s2 + $0x2d0] sm:$0xff] }
0x1117   :  { %v3241_v13 = vpop.xlane.xlu1 %3240  ;;  %3282 = vadd.xlane.f32.xlu0 %v3281_v3  ;;  %v5469_v3 = vpack.c.bf16 %v3226_v15, %v3225_v20 }
0x1118   :  { %v3259_v52 = vmul.f32 0.027777778, %v3241_v13  ;;  %v3276_v60 = vmul.f32 %v6865_v45, %v6865_v45  ;;  %5468 = vmatpush3.bf16.msra.mxu1 %v5465_v48  ;;  %v3228_v13 = vld [vmem:[%s7334_s2 + $0x2d8] sm:$0xff]  ;;  %v4587_v48 = vld [vmem:[%s7334_s2 + $0x22b] ss:$0 sm:$0xff] }
0x1119   :  { %5231 = vmatprep.subr.msk.mxu1 %vm1319_vm7, %v3224_v53  ;;  %5470 = vmatprep.subr.bf16.mxu0 %v5469_v3 }
0x111a   :  { %v6871_v9 = vsub.f32 %v6829_v21, %v3259_v52  ;;  %v3290_v49 = vsel %vm1088_vm6, %v3276_v60, 0.0  ;;  %v5473_v52 = vpack.c.bf16 %v3228_v13, %v3227_v26  ;;  %v3229_v60 = vld [vmem:[%s7334_s2 + $0x2e0] sm:$0xff]  ;;  %5472 = vmatpush3.bf16.msra.mxu0 %v5469_v3 }
0x111b   :  { %v3247_v11 = vpop.xlane.xlu1 %3246  ;;  %3291 = vadd.xlane.f32.xlu1 %v3290_v49  ;;  %v3253_v51 = vpop.xlane.xlu0 %3252  ;;  %v3230_v49 = vld [vmem:[%s7334_s2 + $0x2e8] sm:$0xff] }
0x111c   :  { %v3261_v8 = vmul.f32 0.027777778, %v3247_v11  ;;  %v3263_v14 = vmul.f32 0.027777778, %v3253_v51  ;;  %v3275_v42 = vmul.f32 %v6871_v9, %v6871_v9  ;;  %5232 = vmatpush3.msk.msra.mxu1 %vm1319_vm7, %v3224_v53  ;;  %5474 = vmatprep.subr.bf16.mxu0 %v5473_v52  ;;  %v5477_v11 = vpack.c.bf16 %v3230_v49, %v3229_v60 }
0x111e   :  { %v6877_v5 = vsub.f32 %v6833_v37, %v3261_v8  ;;  %v6880_v56 = vsub.f32 %v6838_v23, %v3263_v14  ;;  %v3287_v50 = vsel %vm1088_vm6, %v3275_v42, 0.0  ;;  %5476 = vmatpush3.bf16.msra.mxu0 %v5473_v52 }
0x111f   :  { %v3250_v19 = vpop.xlane.xlu1 %3249  ;;  %3288 = vadd.xlane.f32.xlu0 %v3287_v50  ;;  %5478 = vmatprep.subr.bf16.mxu0 %v5477_v11 }
0x1120   :  { %v3262_v58 = vmul.f32 0.027777778, %v3250_v19  ;;  %v3277_v31 = vmul.f32 %v6877_v5, %v6877_v5  ;;  %v3279_v54 = vmul.f32 %v6880_v56, %v6880_v56 }
0x1122   :  { %v6886_v39 = vsub.f32 %v6840_v16, %v3262_v58  ;;  %v3293_v62 = vsel %vm1088_vm6, %v3277_v31, 0.0  ;;  %v3299_v27 = vsel %vm1088_vm6, %v3279_v54, 0.0  ;;  %5480 = vmatpush3.bf16.msra.mxu0 %v5477_v11 }
0x1123   :  { %v3256_v34 = vpop.xlane.xlu1 %3255  ;;  %3294 = vadd.xlane.f32.xlu0 %v3293_v62 }
0x1124   :  { %v3264_v61 = vmul.f32 0.027777778, %v3256_v34  ;;  %v3278_v41 = vmul.f32 %v6886_v39, %v6886_v39 }
0x1126   :  { %v6894_v17 = vsub.f32 %v6847_v38, %v3264_v61  ;;  %v3296_v59 = vsel %vm1088_vm6, %v3278_v41, 0.0 }
0x1127   :  { %3297 = vadd.xlane.f32.xlu1 %v3296_v59  ;;  %3300 = vadd.xlane.f32.xlu0 %v3299_v27 }
0x1128   :  { %v3280_v35 = vmul.f32 %v6894_v17, %v6894_v17 }
0x112a   :  { %v3302_v63 = vsel %vm1088_vm6, %v3280_v35, 0.0  ;;  %v4586_v35 = vld [vmem:[%s7334_s2 + $0x22a] ss:$0 sm:$0xff] }
0x112b   :  { %3303 = vadd.xlane.f32.xlu1 %v3302_v63 }
0x11a3   :  { %v3286_v51 = vpop.xlane.xlu1 %3285 }
0x11a4   :  { %v3306_v8 = vmul.f32 0.027777778, %v3286_v51  ;;  %v3283_v14 = vpop.xlane.xlu0 %3282 }
0x11a5   :  { %v3305_v42 = vmul.f32 0.027777778, %v3283_v14 }
0x11a6   :  { %v3314_v50 = vadd.f32 1e-05, %v3306_v8 }
0x11a7   :  { %v3313_v19 = vadd.f32 1e-05, %v3305_v42 }
0x11a8   :  { %5681 = vrsqrt.f32 %v3314_v50  ;;  %v3292_v58 = vpop.xlane.xlu1 %3291 }
0x11a9   :  { %5683 = vrsqrt.f32 %v3313_v19  ;;  %v3308_v31 = vmul.f32 0.027777778, %v3292_v58 }
0x11ab   :  { %v3316_v62 = vadd.f32 1e-05, %v3308_v31 }
0x11ac   :  { %v3289_v54 = vpop.xlane.xlu0 %3288 }
0x11ad   :  { %5685 = vrsqrt.f32 %v3316_v62  ;;  %v3307_v34 = vmul.f32 0.027777778, %v3289_v54 }
0x11af   :  { %v3315_v61 = vadd.f32 1e-05, %v3307_v34 }
0x11b0   :  { %v3295_v41 = vpop.xlane.xlu0 %3294 }
0x11b1   :  { %5687 = vrsqrt.f32 %v3315_v61  ;;  %v3309_v59 = vmul.f32 0.027777778, %v3295_v41 }
0x11b2   :  { %v5682_v27 = vpop.eup %5681 }
0x11b3   :  { %v5684_v63 = vpop.eup %5683  ;;  %v3330_v33 = vmul.f32 %v5682_v27, %v6854_v7  ;;  %v3317_v25 = vadd.f32 1e-05, %v3309_v59 }
0x11b4   :  { %v3298_v36 = vpop.xlane.xlu1 %3297  ;;  %v3301_v12 = vpop.xlane.xlu0 %3300  ;;  %v3329_v1 = vmul.f32 %v5684_v63, %v6857_v43 }
0x11b5   :  { %v3342_v53 = vmul.f32 %v4586_v35, %v3330_v33  ;;  %5689 = vrsqrt.f32 %v3317_v25  ;;  %v3310_v20 = vmul.f32 0.027777778, %v3298_v36  ;;  %v3311_v15 = vmul.f32 0.027777778, %v3301_v12 }
0x11b6   :  { %v3341_v26 = vmul.f32 %v4586_v35, %v3329_v1 }
0x11b7   :  { %v5686_v3 = vpop.eup %5685  ;;  %v3318_v13 = vadd.f32 1e-05, %v3310_v20  ;;  %v3319_v52 = vadd.f32 1e-05, %v3311_v15  ;;  %v3354_v7 = vadd.f32 %v4587_v48, %v3342_v53 }
0x11b8   :  { %v3304_v60 = vpop.xlane.xlu1 %3303  ;;  %v3353_v49 = vadd.f32 %v4587_v48, %v3341_v26  ;;  %v3332_v51 = vmul.f32 %v5686_v3, %v6865_v45 }
0x11b9   :  { %5691 = vrsqrt.f32 %v3318_v13  ;;  %v3312_v11 = vmul.f32 0.027777778, %v3304_v60 }
0x11ba   :  { %5693 = vrsqrt.f32 %v3319_v52  ;;  %5233 = vmatprep.mubr.msk.f32.mxu1 %vm1088_vm6, %v3353_v49  ;;  %v3344_v42 = vmul.f32 %v4586_v35, %v3332_v51 }
0x11bb   :  { %v5688_v43 = vpop.eup %5687  ;;  %v3320_v8 = vadd.f32 1e-05, %v3312_v11  ;;  %5234 = vmatmul.mubr.msk.f32.vlgmr.msra.gmra.mrb[52].mxu1 %vm1088_vm6, %v3354_v7 }
0x11bc   :  { %v3331_v14 = vmul.f32 %v5688_v43, %v6871_v9  ;;  %v3356_v62 = vadd.f32 %v4587_v48, %v3344_v42 }
0x11bd   :  { %5695 = vrsqrt.f32 %v3320_v8 }
0x11be   :  { %v3343_v50 = vmul.f32 %v4586_v35, %v3331_v14 }
0x11bf   :  { %v5690_v19 = vpop.eup %5689 }
0x11c0   :  { %v3355_v58 = vadd.f32 %v4587_v48, %v3343_v50  ;;  %v3333_v31 = vmul.f32 %v5690_v19, %v6877_v5 }
0x11c2   :  { %5236 = vmatprep.mubr.msk.f32.mxu1 %vm1088_vm6, %v3355_v58  ;;  %v3345_v45 = vmul.f32 %v4586_v35, %v3333_v31 }
0x11c3   :  { %v5692_v54 = vpop.eup %5691  ;;  %5237 = vmatmul.mubr.msk.f32.gmra.mrb[54].mxu1 %vm1088_vm6, %v3356_v62 }
0x11c4   :  { %v5694_v34 = vpop.eup %5693  ;;  %v3357_v61 = vadd.f32 %v4587_v48, %v3345_v45  ;;  %v3334_v41 = vmul.f32 %v5692_v54, %v6886_v39  ;;  %v3232_v39 = vld [vmem:[%s7334_s2 + $0x2f8] sm:$0xff]  ;;  %v4606_v54 = vld [vmem:[%s7334_s2 + $0x22f] ss:$0 sm:$0xff] }
0x11c5   :  { %v3335_v9 = vmul.f32 %v5694_v34, %v6880_v56  ;;  %v3231_v56 = vld [vmem:[%s7334_s2 + $0x2f0] sm:$0xff] }
0x11c6   :  { %5239 = vmatprep.mubr.msk.f32.mxu1 %vm1088_vm6, %v3357_v61  ;;  %v3346_v59 = vmul.f32 %v4586_v35, %v3334_v41  ;;  %v5481_v1 = vpack.c.bf16 %v3232_v39, %v3231_v56 }
0x11c7   :  { %v5696_v27 = vpop.eup %5695  ;;  %v3347_v63 = vmul.f32 %v4586_v35, %v3335_v9 }
0x11c8   :  { %v3358_v33 = vadd.f32 %v4587_v48, %v3346_v59  ;;  %v3336_v5 = vmul.f32 %v5696_v27, %v6894_v17  ;;  %5482 = vmatprep.subr.bf16.mxu0 %v5481_v1  ;;  %v4588_v17 = vld [vmem:[%s7334_s2 + $0x22d] ss:$0 sm:$0xff] }
0x11c9   :  { %v3359_v25 = vadd.f32 %v4587_v48, %v3347_v63  ;;  %5484 = vmatpush3.bf16.msra.mxu0 %v5481_v1 }
0x11ca   :  { %5240 = vmatmul.mubr.msk.f32.gmra.mrb[56].mxu1 %vm1088_vm6, %v3358_v33  ;;  %v3348_v36 = vmul.f32 %v4586_v35, %v3336_v5 }
0x11cb   :  { %5242 = vmatprep.mubr.msk.f32.mxu1 %vm1088_vm6, %v3359_v25 }
0x11cc   :  { %v3360_v12 = vadd.f32 %v4587_v48, %v3348_v36 }
0x11ce   :  { %5243 = vmatmul.mubr.msk.f32.gmra.mrb[58].mxu1 %vm1088_vm6, %v3360_v12 }
0x128e   :  { %v5235_v35 = vpop.f32.mrb[52].mxu1 }
0x128f   :  { %v3464_v53 = vadd.f32 %v5235_v35, %v4588_v17  ;;  %v3458_v48 = vpop.f32.mrb[53].mxu1 }
0x1290   :  { %v3459_v20 = vadd.f32 %v4588_v17, %v3458_v48 }
0x1291   :  { %v3498_v26 = vmax.f32 %v3464_v53, 0.0 }
0x1292   :  { %v3497_v15 = vmax.f32 %v3459_v20, 0.0 }
0x1294   :  { %5261 = vmatprep.mubr.msk.f32.mxu0 %vm1436_vm8, %v3497_v15 }
0x1295   :  { %5262 = vmatmul.mubr.msk.f32.vlgmr.msra.gmra.mrb[42].mxu0 %vm1436_vm8, %v3498_v26 }
0x1296   :  { %v5238_v3 = vpop.f32.mrb[54].mxu1 }
0x1297   :  { %v3474_v13 = vadd.f32 %v5238_v3, %v4588_v17  ;;  %v3468_v52 = vpop.f32.mrb[55].mxu1 }
0x1298   :  { %v3469_v60 = vadd.f32 %v4588_v17, %v3468_v52 }
0x1299   :  { %v3500_v7 = vmax.f32 %v3474_v13, 0.0 }
0x129a   :  { %v3499_v49 = vmax.f32 %v3469_v60, 0.0 }
0x129c   :  { %5264 = vmatprep.mubr.msk.f32.mxu0 %vm1436_vm8, %v3499_v49  ;;  %v7016_v49 = vld [vmem:[%s7334_s2 + $0x310] sm:$0xff] }
0x129d   :  { %v5241_v11 = vpop.f32.mrb[56].mxu1  ;;  %5265 = vmatmul.mubr.msk.f32.gmra.mrb[44].mxu0 %vm1436_vm8, %v3500_v7  ;;  %v7021_v7 = vld [vmem:[%s7334_s2 + $0x318] sm:$0xff] }
0x129e   :  { %v3484_v51 = vadd.f32 %v5241_v11, %v4588_v17  ;;  %v3478_v43 = vpop.f32.mrb[57].mxu1  ;;  %v5744_v11 = vmov 8  }
0x129f   :  { %v3479_v8 = vadd.f32 %v4588_v17, %v3478_v43  ;;  %v3694_v43 = vld [vmem:[%s7334_s2 + $0x320] sm:$0xff] }
0x12a0   :  { %v3502_v50 = vmax.f32 %v3484_v51, 0.0  ;;  %v5745_v51 = vmov 9   ;;  %5281 = vmatprep.mubr.msk.f32.mxu1 %vm958_vm5, %v3694_v43 }
0x12a1   :  { %v3501_v14 = vmax.f32 %v3479_v8, 0.0  ;;  %v5244_v42 = vpop.f32.mrb[58].mxu1 }
0x12a2   :  { %v3494_v19 = vadd.f32 %v5244_v42, %v4588_v17  ;;  %v3488_v58 = vpop.f32.mrb[59].mxu1 }
0x12a3   :  { %v3489_v31 = vadd.f32 %v4588_v17, %v3488_v58  ;;  %5267 = vmatprep.mubr.msk.f32.mxu0 %vm1436_vm8, %v3501_v14 }
0x12a4   :  { %5268 = vmatmul.mubr.msk.f32.gmra.mrb[46].mxu0 %vm1436_vm8, %v3502_v50  ;;  %v3504_v45 = vmax.f32 %v3494_v19, 0.0 }
0x12a5   :  { %v3503_v62 = vmax.f32 %v3489_v31, 0.0 }
0x12a7   :  { %5270 = vmatprep.mubr.msk.f32.mxu0 %vm1436_vm8, %v3503_v62 }
0x12a8   :  { %5271 = vmatmul.mubr.msk.f32.gmra.mrb[48].mxu0 %vm1436_vm8, %v3504_v45 }
0x1368   :  { %v5263_v34 = vpop.f32.mrb[42].mxu0 }
0x1369   :  { %v3635_v61 = vadd.f32 %v5263_v34, %v6815_v6  ;;  %v3595_v41 = vpop.f32.mrb[43].mxu0 }
0x136a   :  { %v3634_v9 = vadd.f32 %v3595_v41, %v6817_v55 }
0x136b   :  { %v3647_v59 = vadd.f32 %v4606_v54, %v3635_v61 }
0x136c   :  { %v3646_v27 = vadd.f32 %v4606_v54, %v3634_v9 }
0x136d   :  { %v3657_v63 = vsel %vm1088_vm6, %v3647_v59, -inf }
0x136e   :  { %3658 = vmax.xlane.f32.xlu1 %v3657_v63  ;;  %v3654_v33 = vsel %vm1088_vm6, %v3646_v27, -inf }
0x136f   :  { %3655 = vmax.xlane.f32.xlu0 %v3654_v33 }
0x1370   :  { %v5266_v5 = vpop.f32.mrb[44].mxu0 }
0x1371   :  { %v3605_v25 = vpop.f32.mrb[45].mxu0  ;;  %v3637_v1 = vadd.f32 %v5266_v5, %v6825_v29 }
0x1372   :  { %v3636_v36 = vadd.f32 %v3605_v25, %v6829_v21 }
0x1373   :  { %v3649_v26 = vadd.f32 %v4606_v54, %v3637_v1 }
0x1374   :  { %v3648_v12 = vadd.f32 %v4606_v54, %v3636_v36 }
0x1375   :  { %v3663_v29 = vsel %vm1088_vm6, %v3649_v26, -inf }
0x1376   :  { %v3660_v56 = vsel %vm1088_vm6, %v3648_v12, -inf }
0x1377   :  { %3661 = vmax.xlane.f32.xlu0 %v3660_v56  ;;  %v5269_v6 = vpop.f32.mrb[46].mxu0 }
0x1378   :  { %v3639_v39 = vadd.f32 %v5269_v6, %v6840_v16  ;;  %v3615_v55 = vpop.f32.mrb[47].mxu0 }
0x1379   :  { %v3638_v17 = vadd.f32 %v3615_v55, %v6833_v37 }
0x137a   :  { %v3651_v35 = vadd.f32 %v4606_v54, %v3639_v39 }
0x137b   :  { %v3650_v53 = vadd.f32 %v4606_v54, %v3638_v17  ;;  %v5272_v48 = vpop.f32.mrb[48].mxu0 }
0x137c   :  { %v3625_v20 = vpop.f32.mrb[49].mxu0  ;;  %v3669_v15 = vsel %vm1088_vm6, %v3651_v35, -inf  ;;  %v3641_v21 = vadd.f32 %v5272_v48, %v6847_v38  ;;  %v6997_v38 = vld [vmem:[%s7334_s2 + $0x308] sm:$0xff] }
0x137d   :  { %v3640_v3 = vadd.f32 %v3625_v20, %v6838_v23  ;;  %3670 = vmax.xlane.f32.xlu1 %v3669_v15  ;;  %v3666_v13 = vsel %vm1088_vm6, %v3650_v53, -inf  ;;  %v7002_v23 = vld [vmem:[%s7334_s2 + $0x300] sm:$0xff] }
0x137e   :  { %3667 = vmax.xlane.f32.xlu0 %v3666_v13  ;;  %v3653_v52 = vadd.f32 %v4606_v54, %v3641_v21 }
0x137f   :  { %v3652_v16 = vadd.f32 %v4606_v54, %v3640_v3 }
0x1380   :  { %v3675_v60 = vsel %vm1088_vm6, %v3653_v52, -inf }
0x1381   :  { %v3672_v37 = vsel %vm1088_vm6, %v3652_v16, -inf }
0x1382   :  { %3664 = vmax.xlane.f32.xlu0 %v3663_v29  ;;  %3673 = vmax.xlane.f32.xlu1 %v3672_v37 }
0x1386   :  { %3676 = vmax.xlane.f32.xlu1 %v3675_v60 }
0x1397   :  { %3751 = vperm.xlu1 %5575, %v6997_v38  }
0x1398   :  { %3746 = vperm.xlu0 %5574, %v7002_v23  }
0x139b   :  { %5576 = vset.pattern.permute.xlu1 %v5737_v46 }
0x139c   :  { %5580 = vset.pattern.permute.xlu0 %v5738_v47  ;;  %3769 = vperm.xlu1 %5576, %v7002_v23  }
0x139d   :  { %3793 = vperm.xlu0 %5580, %v6997_v38  }
0x13a0   :  { %3773 = vperm.xlu1 %5576, %v6997_v38  }
0x13a1   :  { %5581 = vset.pattern.permute.xlu0 %v5739_v10 }
0x13a2   :  { %4007 = vperm.xlu0 %5581, %v7002_v23  }
0x13a4   :  { %5577 = vset.pattern.permute.xlu1 %v5736_v22  ;;  %v5743_v22 = vmov 7  }
0x13a5   :  { %3756 = vperm.xlu1 %5577, %v7016_v49  }
0x13a6   :  { %4019 = vperm.xlu0 %5581, %v7021_v7  }
0x13a9   :  { %3761 = vperm.xlu1 %5577, %v7021_v7  }
0x13aa   :  { %5584 = vset.pattern.permute.xlu0 %v5741_v32 }
0x13ab   :  { %4081 = vperm.xlu0 %5584, %v6997_v38  }
0x13ad   :  { %5578 = vset.pattern.permute.xlu1 %v5737_v46  ;;  %v5701_v46 = vld [vmem:[%s7334_s2 + $0x188] sm:$0xff] }
0x13ae   :  { %3777 = vperm.xlu1 %5578, %v7016_v49  }
0x13af   :  { %4085 = vperm.xlu0 %5584, %v7016_v49  }
0x13b2   :  { %3781 = vperm.xlu1 %5578, %v7021_v7  }
0x13b3   :  { %5587 = vset.pattern.permute.xlu0 %v5740_v2 }
0x13b4   :  { %4105 = vperm.xlu0 %5587, %v7016_v49  }
0x13b6   :  { %5579 = vset.pattern.permute.xlu1 %v5738_v47  ;;  %v7050_v47 = vld [vmem:[%s7334_s2 + $0x1a0] sm:$0xff] }
0x13b7   :  { %3789 = vperm.xlu1 %5579, %v7002_v23  }
0x13b8   :  { %5590 = vset.pattern.permute.xlu0 %v5742_v24 }
0x13b9   :  { %4121 = vperm.xlu0 %5590, %v6997_v38  }
0x13bb   :  { %3797 = vperm.xlu1 %5579, %v7016_v49  }
0x13bd   :  { %5591 = vset.pattern.permute.xlu0 %v5743_v22 }
0x13be   :  { %2709 = vperm.xlu0 %5591, %v5701_v46  }
0x13bf   :  { %3801 = vperm.xlu1 %5579, %v7021_v7  }
0x13c2   :  { %4339 = vperm.xlu0 %5591, %v6997_v38  }
0x13c3   :  { %5582 = vset.pattern.permute.xlu1 %v5739_v10  ;;  %v2728_v10 = vld [vmem:[%s7334_s2 + $0x188] sm:$0x1] }
0x13c4   :  { %4011 = vperm.xlu1 %5582, %v6997_v38  }
0x13c6   :  { %2721 = vperm.xlu0 %5591, %v7050_v47  }
0x13c8   :  { %4015 = vperm.xlu1 %5582, %v7016_v49  }
0x13ca   :  { %5596 = vset.pattern.permute.xlu0 %v5744_v11 }
0x13cb   :  { %2730 = vperm.xlu0 %5596, %v5701_v46  }
0x13cc   :  { %5583 = vset.pattern.permute.xlu1 %v5741_v32 }
0x13cd   :  { %4077 = vperm.xlu1 %5583, %v7002_v23  }
0x13cf   :  { %4356 = vperm.xlu0 %5596, %v7002_v23  }
0x13d1   :  { %5585 = vset.pattern.permute.xlu1 %v5740_v2 }
0x13d2   :  { %4097 = vperm.xlu1 %5585, %v7002_v23  }
0x13d3   :  { %4364 = vperm.xlu0 %5596, %v7016_v49  }
0x13d6   :  { %4101 = vperm.xlu1 %5585, %v6997_v38  }
0x13d7   :  { %5599 = vset.pattern.permute.xlu0 %v5745_v51 }
0x13d8   :  { %2764 = vperm.xlu0 %5599, %v2728_v10  }
0x13da   :  { %5586 = vset.pattern.permute.xlu1 %v5741_v32  ;;  %v5704_v32 = vld [vmem:[%s7334_s2 + $0x198] sm:$0xff] }
0x13db   :  { %4089 = vperm.xlu1 %5586, %v7021_v7  }
0x13df   :  { %5588 = vset.pattern.permute.xlu1 %v5740_v2  ;;  %v5703_v2 = vld [vmem:[%s7334_s2 + $0x190] sm:$0xff] }
0x13e0   :  { %4109 = vperm.xlu1 %5588, %v7021_v7  }
0x13e4   :  { %5589 = vset.pattern.permute.xlu1 %v5742_v24 }
0x13e5   :  { %4117 = vperm.xlu1 %5589, %v7002_v23  }
0x13e9   :  { %4125 = vperm.xlu1 %5589, %v7016_v49  }
0x13ed   :  { %4129 = vperm.xlu1 %5589, %v7021_v7  }
0x13f1   :  { %5592 = vset.pattern.permute.xlu1 %v5743_v22 }
0x13f2   :  { %2713 = vperm.xlu1 %5592, %v5703_v2  }
0x13f6   :  { %4335 = vperm.xlu1 %5592, %v7002_v23  }
0x13fa   :  { %2717 = vperm.xlu1 %5592, %v5704_v32  }
0x13fb   :  { %v3659_v24 = vpop.xlane.xlu1 %3658 }
0x13fc   :  { %3679 = vst.msk [vmem:[#allocation3 + $0x28] sm:$0xff] %vm2048_vm9, %v3659_v24  ;;  %v3656_v8 = vpop.xlane.xlu0 %3655 }
0x13fd   :  { %3678 = vst.msk [vmem:[#allocation3 + $0x20] sm:$0xff] %vm2048_vm9, %v3656_v8 }
0x13fe   :  { %5593 = vset.pattern.permute.xlu1 %v5744_v11 }
0x13ff   :  { %2734 = vperm.xlu1 %5593, %v5703_v2  }
0x1403   :  { %5594 = vset.pattern.permute.xlu1 %v5743_v22 }
0x1404   :  { %4343 = vperm.xlu1 %5594, %v7016_v49   ;;  %v3662_v14 = vpop.xlane.xlu0 %3661 }
0x1405   :  { %3680 = vst.msk [vmem:[#allocation3 + $0x30] sm:$0xff] %vm2048_vm9, %v3662_v14 }
0x1408   :  { %5595 = vset.pattern.permute.xlu1 %v5744_v11 }
0x1409   :  { %4360 = vperm.xlu1 %5595, %v6997_v38  }
0x140a   :  { %v3671_v42 = vpop.xlane.xlu1 %3670 }
0x140b   :  { %3683 = vst.msk [vmem:[#allocation3 + $0x28] sm:$0xff] %vm2053_vm10, %v3671_v42  ;;  %v3668_v50 = vpop.xlane.xlu0 %3667 }
0x140c   :  { %3682 = vst.msk [vmem:[#allocation3 + $0x20] sm:$0xff] %vm2053_vm10, %v3668_v50 }
0x140d   :  { %2738 = vperm.xlu1 %5595, %v5704_v32  }
0x140f   :  { %v3674_v19 = vpop.xlane.xlu1 %3673  ;;  %v3665_v58 = vpop.xlane.xlu0 %3664 }
0x1410   :  { %3684 = vst.msk [vmem:[#allocation3 + $0x30] sm:$0xff] %vm2053_vm10, %v3674_v19 }
0x1411   :  { %3681 = vst.msk [vmem:[#allocation3 + $0x38] sm:$0xff] %vm2048_vm9, %v3665_v58  ;;  %5597 = vset.pattern.permute.xlu1 %v5743_v22 }
0x1412   :  { %4347 = vperm.xlu1 %5597, %v7021_v7   ;;  %v7093_v31 = vld [vmem:[#allocation3 + $0x28] sm:$0xff] }
0x1413   :  { %v7095_v62 = vld [vmem:[#allocation3 + $0x20] sm:$0xff]  ;;  %v3677_v45 = vpop.xlane.xlu1 %3676  ;;  %v3703_v54 = vsel %vm2074_vm11, %v7093_v31, 0.0 }
0x1414   :  { %3685 = vst.msk [vmem:[#allocation3 + $0x38] sm:$0xff] %vm2053_vm10, %v3677_v45  ;;  %v3702_v34 = vsel %vm2074_vm11, %v7095_v62, 0.0 }
0x1415   :  { %v3704_v59 = vadd.f32 %v3703_v54, %v3702_v34 }
0x1416   :  { %5598 = vset.pattern.permute.xlu1 %v5744_v11 }
0x1417   :  { %v7102_v61 = vld [vmem:[#allocation3 + $0x30] sm:$0xff]  ;;  %2742 = vperm.xlu1 %5598, %v7050_v47   ;;  %v7105_v41 = vpop.permute.xlu1 %3751  ;;  %v3747_v11 = vpop.permute.xlu0 %3746 }
0x1418   :  { %v3705_v9 = vsel %vm2074_vm11, %v7102_v61, 0.0 }
0x1419   :  { %v3706_v27 = vadd.f32 %v3705_v9, %v3704_v59 }
0x141b   :  { %v7109_v63 = vld [vmem:[#allocation3 + $0x38] sm:$0xff]  ;;  %v7111_v33 = vpop.permute.xlu1 %3769  ;;  %4368 = vperm.xlu1 %5598, %v7021_v7  }
0x141c   :  { %v3707_v5 = vsel %vm2074_vm11, %v7109_v63, 0.0  ;;  %v7128_v32 = vpop.permute.xlu0 %3793 }
0x141d   :  { %v3708_v25 = vadd.f32 %v3707_v5, %v3706_v27 }
0x141f   :  { %v3709_v36 = vrot.slane %v3708_v25, 4  ;;  %v3774_v12 = vpop.permute.xlu1 %3773  ;;  %5600 = vset.pattern.permute.xlu1 %v5745_v51 }
0x1421   :  { %v3710_v56 = vadd.f32 %v3709_v36, %v3708_v25  ;;  %v7134_v19 = vpop.permute.xlu0 %4007 }
0x1423   :  { %v3711_v6 = vrot.slane %v3710_v56, 2 }
0x1424   :  { %v3757_v39 = vpop.permute.xlu1 %3756 }
0x1425   :  { %v3712_v55 = vadd.f32 %v3711_v6, %v3710_v56  ;;  %v7138_v54 = vpop.permute.xlu0 %4019 }
0x1427   :  { %v3713_v1 = vrot.slane %v3712_v55, 1 }
0x1428   :  { %v3762_v17 = vpop.permute.xlu1 %3761 }
0x1429   :  { %v3714_v35 = vadd.f32 %v3713_v1, %v3712_v55 }
0x142a   :  { %v7142_v9 = vpop.permute.xlu0 %4081 }
0x142b   :  { %v3715_v53 = vmul.f32 0.03125, %v3714_v35 }
0x142d   :  { %v3717_v48 = vsub.f32 %v7093_v31, %v3715_v53  ;;  %v3718_v20 = vsub.f32 %v7102_v61, %v3715_v53  ;;  %v3719_v15 = vsub.f32 %v7109_v63, %v3715_v53  ;;  %v3716_v26 = vsub.f32 %v7095_v62, %v3715_v53  ;;  %v3778_v21 = vpop.permute.xlu1 %3777 }
0x142f   :  { %v3720_v3 = vmul.f32 %v3716_v26, %v3716_v26  ;;  %v3721_v13 = vmul.f32 %v3717_v48, %v3717_v48  ;;  %v3722_v16 = vmul.f32 %v3718_v20, %v3718_v20  ;;  %v3723_v52 = vmul.f32 %v3719_v15, %v3719_v15 }
0x1431   :  { %v3724_v29 = vsel %vm2074_vm11, %v3720_v3, 0.0  ;;  %v3725_v37 = vsel %vm2074_vm11, %v3721_v13, 0.0  ;;  %v3782_v60 = vpop.permute.xlu1 %3781  ;;  %v3727_v23 = vsel %vm2074_vm11, %v3722_v16, 0.0  ;;  %v3729_v7 = vsel %vm2074_vm11, %v3723_v52, 0.0  ;;  %v7149_v3 = vpop.permute.xlu0 %4085 }
0x1432   :  { %v3726_v38 = vadd.f32 %v3725_v37, %v3724_v29 }
0x1434   :  { %v3728_v49 = vadd.f32 %v3727_v23, %v3726_v38 }
0x1436   :  { %v3730_v22 = vadd.f32 %v3729_v7, %v3728_v49  ;;  %v7124_v46 = vpop.permute.xlu1 %3789 }
0x1438   :  { %v3731_v47 = vrot.slane %v3730_v22, 4 }
0x143a   :  { %v3732_v10 = vadd.f32 %v3731_v47, %v3730_v22  ;;  %v7126_v51 = vpop.permute.xlu1 %3797  ;;  %v2704_v47 = vadd.f32 %v6804_v44, %v6673_v40  ;;  %v2706_v40 = vadd.f32 %v6808_v30, %v6683_v57 }
0x143c   :  { %v3733_v43 = vrot.slane %v3732_v10, 2 }
0x143e   :  { %v3734_v2 = vadd.f32 %v3733_v43, %v3732_v10  ;;  %v7130_v24 = vpop.permute.xlu1 %3801  ;;  %v2705_v43 = vadd.f32 %v6802_v4, %v6671_v28 }
0x1440   :  { %v3735_v8 = vrot.slane %v3734_v2, 1 }
0x1442   :  { %v3736_v14 = vadd.f32 %v3735_v8, %v3734_v2 }
0x1443   :  { %v7132_v42 = vpop.permute.xlu1 %4011 }
0x1444   :  { %v3737_v50 = vmul.f32 0.03125, %v3736_v14 }
0x1446   :  { %v3738_v58 = vadd.f32 1e-05, %v3737_v50 }
0x1447   :  { %v7136_v45 = vpop.permute.xlu1 %4015 }
0x1448   :  { %5697 = vrsqrt.f32 %v3738_v58 }
0x144c   :  { %v7140_v34 = vpop.permute.xlu1 %4077 }
0x1451   :  { %v7144_v59 = vpop.permute.xlu1 %4097 }
0x1452   :  { %v5698_v27 = vpop.eup %5697 }
0x1453   :  { %v3740_v5 = vmul.f32 %v5698_v27, %v3716_v26  ;;  %v3741_v25 = vmul.f32 %v5698_v27, %v3717_v48  ;;  %v3742_v36 = vmul.f32 %v5698_v27, %v3718_v20  ;;  %v3743_v56 = vmul.f32 %v5698_v27, %v3719_v15  ;;  %v7154_v20 = vpop.permute.xlu0 %4105  ;;  %v3697_v15 = vld [vmem:[%s7334_s2 + $0x338] sm:$0xff] }
0x1455   :  { %v3764_v6 = vmul.f32 %v3747_v11, %v3740_v5  ;;  %v3765_v55 = vmul.f32 %v7105_v41, %v3741_v25  ;;  %v3766_v1 = vmul.f32 %v3757_v39, %v3742_v36  ;;  %v3767_v35 = vmul.f32 %v3762_v17, %v3743_v56  ;;  %v7147_v53 = vpop.permute.xlu1 %4101  ;;  %v3695_v39 = vld [vmem:[%s7334_s2 + $0x328] sm:$0xff] }
0x1457   :  { %v3784_v13 = vadd.f32 %v7111_v33, %v3764_v6  ;;  %v3785_v16 = vadd.f32 %v3774_v12, %v3765_v55  ;;  %v3786_v52 = vadd.f32 %v3778_v21, %v3766_v1  ;;  %v3787_v29 = vadd.f32 %v3782_v60, %v3767_v35  ;;  %v3696_v33 = vld [vmem:[%s7334_s2 + $0x330] sm:$0xff]  ;;  %v7164_v12 = vpop.permute.xlu0 %4121 }
0x1458   :  { %v2707_v35 = vadd.f32 %v6806_v0, %v6681_v18  ;;  %v3698_v18 = vld [vmem:[%s7334_s2 + $0x360] sm:$0xff] }
0x1459   :  { %v5485_v37 = vpack.c.bf16 %v3785_v16, %v3784_v13  ;;  %v5489_v48 = vpack.c.bf16 %v3787_v29, %v3786_v52 }
0x145a   :  { %v7152_v38 = vpop.permute.xlu1 %4089 }
0x145b   :  { %5486 = vmatprep.subr.bf16.mxu1 %v5485_v37  ;;  %v2710_v26 = vpop.permute.xlu0 %2709 }
0x145c   :  { %5488 = vmatpush3.bf16.msra.mxu1 %v5485_v37  ;;  %v2724_v2 = vadd.f32 %v2710_v26, %v2704_v47 }
0x145d   :  { %5490 = vmatprep.subr.bf16.mxu1 %v5489_v48 }
0x145f   :  { %v7156_v41 = vpop.permute.xlu1 %4109  ;;  %v7178_v23 = vpop.permute.xlu0 %4339 }
0x1460   :  { %5492 = vmatpush3.bf16.msra.mxu1 %v5489_v48 }
0x1463   :  { %5282 = vmatmul.mubr.msk.f32.vlgmr.msra.gmra.mrb[60].mxu1 %vm958_vm5, %v3695_v39  ;;  %v2722_v7 = vpop.permute.xlu0 %2721 }
0x1464   :  { %v7167_v17 = vpop.permute.xlu1 %4117  ;;  %5284 = vmatprep.mubr.msk.f32.mxu1 %vm958_vm5, %v3696_v33  ;;  %v2727_v13 = vadd.f32 %v2722_v7, %v2707_v35 }
0x1467   :  { %5285 = vmatmul.mubr.msk.f32.gmra.mrb[62].mxu1 %vm958_vm5, %v3697_v15  ;;  %v2731_v10 = vpop.permute.xlu0 %2730 }
0x1468   :  { %v7174_v21 = vpop.permute.xlu1 %4125  ;;  %v2745_v8 = vmul.f32 %v2731_v10, %v2724_v2  ;;  %5295 = vmatprep.mubr.msk.f32.mxu1 %vm958_vm5, %v3698_v18 }
0x146a   :  { %v2749_v27 = vsel %vm2074_vm11, %v2745_v8, 0.0 }
0x146b   :  { %v7200_v37 = vpop.permute.xlu0 %4356 }
0x146c   :  { %v7176_v60 = vpop.permute.xlu1 %4129 }
0x146f   :  { %v7202_v39 = vpop.permute.xlu0 %4364 }
0x1471   :  { %v2714_v49 = vpop.permute.xlu1 %2713 }
0x1472   :  { %v2725_v14 = vadd.f32 %v2714_v49, %v2705_v43 }
0x1473   :  { %v2765_v49 = vpop.permute.xlu0 %2764 }
0x1475   :  { %v7180_v22 = vpop.permute.xlu1 %4335 }
0x1479   :  { %v2718_v11 = vpop.permute.xlu1 %2717 }
0x147a   :  { %v2726_v44 = vadd.f32 %v2718_v11, %v2706_v40 }
0x147e   :  { %v2735_v50 = vpop.permute.xlu1 %2734 }
0x147f   :  { %v2746_v58 = vmul.f32 %v2735_v50, %v2725_v14 }
0x1481   :  { %v2750_v5 = vsel %vm2074_vm11, %v2746_v58, 0.0 }
0x1482   :  { %v2751_v25 = vadd.f32 %v2750_v5, %v2749_v27 }
0x1483   :  { %v7188_v36 = vpop.permute.xlu1 %4343 }
0x1488   :  { %v7190_v56 = vpop.permute.xlu1 %4360 }
0x148c   :  { %v2739_v6 = vpop.permute.xlu1 %2738 }
0x148d   :  { %v2747_v28 = vmul.f32 %v2739_v6, %v2726_v44 }
0x148f   :  { %v2752_v4 = vsel %vm2074_vm11, %v2747_v28, 0.0 }
0x1490   :  { %v2753_v55 = vadd.f32 %v2752_v4, %v2751_v25 }
0x1491   :  { %v7195_v1 = vpop.permute.xlu1 %4347 }
0x1496   :  { %v2743_v16 = vpop.permute.xlu1 %2742 }
0x1497   :  { %v2748_v52 = vmul.f32 %v2743_v16, %v2727_v13 }
0x1499   :  { %v2754_v29 = vsel %vm2074_vm11, %v2748_v52, 0.0 }
0x149a   :  { %v2755_v48 = vadd.f32 %v2754_v29, %v2753_v55 }
0x149c   :  { %v2756_v57 = vrot.slane %v2755_v48, 4 }
0x149e   :  { %v2757_v30 = vadd.f32 %v2756_v57, %v2755_v48 }
0x14a0   :  { %v2758_v33 = vrot.slane %v2757_v30, 2 }
0x14a2   :  { %v2759_v15 = vadd.f32 %v2758_v33, %v2757_v30 }
0x14a4   :  { %v2760_v26 = vrot.slane %v2759_v15, 1 }
0x14a6   :  { %v2761_v47 = vadd.f32 %v2760_v26, %v2759_v15 }
0x14a8   :  { %v2767_v11 = vadd.f32 %v2765_v49, %v2761_v47 }
0x14aa   :  { %2769 = vst.msk [vmem:[#allocation4] sm:$0x1] %vm2768_vm12, %v2767_v11 }
0x1536   :  { %v5283_v0 = vpop.f32.mrb[60].mxu1 }
0x1537   :  { %v3888_v7 = vadd.f32 %v5283_v0, %v7128_v32  ;;  %v3882_v10 = vpop.f32.mrb[61].mxu1  ;;  %v3700_v32 = vld [vmem:[%s7334_s2 + $0x370] sm:$0xff] }
0x1538   :  { %v3883_v43 = vadd.f32 %v3882_v10, %v7124_v46  ;;  %v3699_v46 = vld [vmem:[%s7334_s2 + $0x368] sm:$0xff] }
0x1539   :  { %v3902_v2 = vmax.f32 %v3888_v7, 0.0 }
0x153a   :  { %v3901_v8 = vmax.f32 %v3883_v43, 0.0  ;;  %v5286_v14 = vpop.f32.mrb[62].mxu1 }
0x153b   :  { %v3898_v50 = vadd.f32 %v5286_v14, %v7130_v24  ;;  %v3892_v58 = vpop.f32.mrb[63].mxu1  ;;  %v4026_v24 = vld [vmem:[%s7334_s2 + $0x340] sm:$0xff] }
0x153c   :  { %v5493_v27 = vpack.c.bf16 %v3902_v2, %v3901_v8  ;;  %v3893_v5 = vadd.f32 %v3892_v58, %v7126_v51  ;;  %v3701_v51 = vld [vmem:[%s7334_s2 + $0x378] sm:$0xff]  ;;  %5309 = vmatprep.mubr.msk.f32.mxu0 %vm958_vm5, %v4026_v24 }
0x153d   :  { %v3904_v25 = vmax.f32 %v3898_v50, 0.0 }
0x153e   :  { %v3903_v40 = vmax.f32 %v3893_v5, 0.0  ;;  %5494 = vmatprep.subr.bf16.mxu1 %v5493_v27 }
0x153f   :  { %5496 = vmatpush3.bf16.msra.mxu1 %v5493_v27 }
0x1540   :  { %v5497_v44 = vpack.c.bf16 %v3904_v25, %v3903_v40 }
0x1542   :  { %5498 = vmatprep.subr.bf16.mxu1 %v5497_v44 }
0x1543   :  { %5500 = vmatpush3.bf16.msra.mxu1 %v5497_v44 }
0x1546   :  { %5296 = vmatmul.mubr.msk.f32.vlgmr.msra.gmra.mrb[64].mxu1 %vm958_vm5, %v3699_v46 }
0x1547   :  { %5298 = vmatprep.mubr.msk.f32.mxu1 %vm958_vm5, %v3700_v32 }
0x154a   :  { %5299 = vmatmul.mubr.msk.f32.gmra.mrb[66].mxu1 %vm958_vm5, %v3701_v51 }
0x1619   :  { %v5297_v6 = vpop.f32.mrb[64].mxu1 }
0x161a   :  { %v4003_v28 = vadd.f32 %v5297_v6, %v7093_v31  ;;  %v3983_v4 = vpop.f32.mrb[65].mxu1 }
0x161b   :  { %v4002_v55 = vadd.f32 %v3983_v4, %v7095_v62 }
0x161c   :  { %v7232_v35 = vadd.f32 %v7132_v42, %v4003_v28 }
0x161d   :  { %v7235_v13 = vadd.f32 %v7134_v19, %v4002_v55  ;;  %v5300_v16 = vpop.f32.mrb[66].mxu1 }
0x161e   :  { %v4005_v52 = vadd.f32 %v5300_v16, %v7109_v63  ;;  %v3993_v29 = vpop.f32.mrb[67].mxu1  ;;  %v4035_v48 = vsel %vm2074_vm11, %v7232_v35, 0.0 }
0x161f   :  { %v4034_v57 = vsel %vm2074_vm11, %v7235_v13, 0.0  ;;  %v4004_v31 = vadd.f32 %v3993_v29, %v7102_v61 }
0x1620   :  { %v7244_v62 = vadd.f32 %v7138_v54, %v4005_v52  ;;  %v4036_v19 = vadd.f32 %v4035_v48, %v4034_v57 }
0x1621   :  { %v7247_v42 = vadd.f32 %v7136_v45, %v4004_v31 }
0x1622   :  { %v4039_v33 = vsel %vm2074_vm11, %v7244_v62, 0.0 }
0x1623   :  { %v4037_v30 = vsel %vm2074_vm11, %v7247_v42, 0.0 }
0x1624   :  { %v4038_v63 = vadd.f32 %v4037_v30, %v4036_v19 }
0x1626   :  { %v4040_v15 = vadd.f32 %v4039_v33, %v4038_v63 }
0x1628   :  { %v4041_v26 = vrot.slane %v4040_v15, 4 }
0x162a   :  { %v4042_v49 = vadd.f32 %v4041_v26, %v4040_v15 }
0x162c   :  { %v4043_v47 = vrot.slane %v4042_v49, 2 }
0x162e   :  { %v4044_v11 = vadd.f32 %v4043_v47, %v4042_v49 }
0x1630   :  { %v4045_v61 = vrot.slane %v4044_v11, 1 }
0x1632   :  { %v4046_v18 = vadd.f32 %v4045_v61, %v4044_v11 }
0x1634   :  { %v4047_v54 = vmul.f32 0.03125, %v4046_v18 }
0x1636   :  { %v4048_v0 = vsub.f32 %v7235_v13, %v4047_v54  ;;  %v4049_v45 = vsub.f32 %v7232_v35, %v4047_v54  ;;  %v4050_v7 = vsub.f32 %v7247_v42, %v4047_v54  ;;  %v4051_v10 = vsub.f32 %v7244_v62, %v4047_v54 }
0x1638   :  { %v4052_v43 = vmul.f32 %v4048_v0, %v4048_v0  ;;  %v4053_v2 = vmul.f32 %v4049_v45, %v4049_v45  ;;  %v4054_v8 = vmul.f32 %v4050_v7, %v4050_v7  ;;  %v4055_v14 = vmul.f32 %v4051_v10, %v4051_v10 }
0x163a   :  { %v4056_v50 = vsel %vm2074_vm11, %v4052_v43, 0.0  ;;  %v4057_v58 = vsel %vm2074_vm11, %v4053_v2, 0.0  ;;  %v4059_v5 = vsel %vm2074_vm11, %v4054_v8, 0.0  ;;  %v4061_v40 = vsel %vm2074_vm11, %v4055_v14, 0.0 }
0x163b   :  { %v4058_v27 = vadd.f32 %v4057_v58, %v4056_v50 }
0x163d   :  { %v4060_v25 = vadd.f32 %v4059_v5, %v4058_v27 }
0x163f   :  { %v4062_v44 = vadd.f32 %v4061_v40, %v4060_v25 }
0x1641   :  { %v4063_v46 = vrot.slane %v4062_v44, 4 }
0x1643   :  { %v4064_v32 = vadd.f32 %v4063_v46, %v4062_v44 }
0x1645   :  { %v4065_v51 = vrot.slane %v4064_v32, 2 }
0x1647   :  { %v4066_v24 = vadd.f32 %v4065_v51, %v4064_v32 }
0x1649   :  { %v4067_v6 = vrot.slane %v4066_v24, 1 }
0x164b   :  { %v4068_v28 = vadd.f32 %v4067_v6, %v4066_v24 }
0x164d   :  { %v4069_v4 = vmul.f32 0.03125, %v4068_v28  ;;  %v4369_v28 = vpop.permute.xlu1 %4368 }
0x164f   :  { %v4070_v55 = vadd.f32 1e-05, %v4069_v4 }
0x1651   :  { %5699 = vrsqrt.f32 %v4070_v55 }
0x165b   :  { %v5700_v16 = vpop.eup %5699 }
0x165c   :  { %v4074_v52 = vmul.f32 %v5700_v16, %v4050_v7  ;;  %v4072_v29 = vmul.f32 %v5700_v16, %v4048_v0  ;;  %v4073_v48 = vmul.f32 %v5700_v16, %v4049_v45  ;;  %v4075_v57 = vmul.f32 %v5700_v16, %v4051_v10 }
0x165e   :  { %v4092_v31 = vmul.f32 %v7140_v34, %v4072_v29  ;;  %v4093_v19 = vmul.f32 %v7142_v9, %v4073_v48  ;;  %v4094_v30 = vmul.f32 %v7149_v3, %v4074_v52  ;;  %v4095_v63 = vmul.f32 %v7152_v38, %v4075_v57  ;;  %v4027_v34 = vld [vmem:[%s7334_s2 + $0x348] sm:$0xff]  ;;  %v4028_v9 = vld [vmem:[%s7334_s2 + $0x350] sm:$0xff]  ;;  %v4354_v38 = vld [vmem:[%s7334_s2 + $0x300] sm:$0x1] }
0x165f   :  { %v4032_v3 = vld [vmem:[%s7334_s2 + $0x390] sm:$0xff]  ;;  %4390 = vperm.xlu1 %5600, %v4354_v38  }
0x1660   :  { %v4112_v33 = vadd.f32 %v7144_v59, %v4092_v31  ;;  %v4113_v15 = vadd.f32 %v7147_v53, %v4093_v19  ;;  %v4114_v26 = vadd.f32 %v7154_v20, %v4094_v30  ;;  %v4115_v49 = vadd.f32 %v7156_v41, %v4095_v63  ;;  %v4029_v59 = vld [vmem:[%s7334_s2 + $0x358] sm:$0xff]  ;;  %v4030_v53 = vld [vmem:[%s7334_s2 + $0x380] sm:$0xff]  ;;  %5326 = vmatprep.mubr.msk.f32.mxu1 %vm958_vm5, %v4032_v3 }
0x1662   :  { %v5501_v47 = vpack.c.bf16 %v4113_v15, %v4112_v33  ;;  %v5505_v11 = vpack.c.bf16 %v4115_v49, %v4114_v26 }
0x1664   :  { %5502 = vmatprep.subr.bf16.mxu0 %v5501_v47 }
0x1665   :  { %5504 = vmatpush3.bf16.msra.mxu0 %v5501_v47 }
0x1666   :  { %5506 = vmatprep.subr.bf16.mxu0 %v5505_v11 }
0x1669   :  { %5508 = vmatpush3.bf16.msra.mxu0 %v5505_v11 }
0x166c   :  { %5310 = vmatmul.mubr.msk.f32.vlgmr.msra.gmra.mrb[50].mxu0 %vm958_vm5, %v4027_v34 }
0x166d   :  { %5312 = vmatprep.mubr.msk.f32.mxu0 %vm958_vm5, %v4028_v9 }
0x1670   :  { %5313 = vmatmul.mubr.msk.f32.gmra.mrb[52].mxu0 %vm958_vm5, %v4029_v59 }
0x1671   :  { %5323 = vmatprep.mubr.msk.f32.mxu0 %vm958_vm5, %v4030_v53 }
0x173f   :  { %v5311_v20 = vpop.f32.mrb[50].mxu0 }
0x1740   :  { %v4216_v41 = vadd.f32 %v5311_v20, %v7164_v12  ;;  %v4210_v61 = vpop.f32.mrb[51].mxu0  ;;  %v4031_v12 = vld [vmem:[%s7334_s2 + $0x388] sm:$0xff] }
0x1741   :  { %v4211_v18 = vadd.f32 %v4210_v61, %v7167_v17  ;;  %v4033_v17 = vld [vmem:[%s7334_s2 + $0x398] sm:$0xff]  ;;  %s5746_s2 = smov [#allocation4]  }
0x1742   :  { %v4230_v54 = vmax.f32 %v4216_v41, 0.0  ;;  %s4401_s6 = sshll.u32 %s5746_s2, 4  ;;  %s4402_s6 = int_to_ptr.vmem [resolvable:$true] %s4401_s6 }
0x1743   :  { %v4229_v0 = vmax.f32 %v4211_v18, 0.0  ;;  %v5314_v45 = vpop.f32.mrb[52].mxu0  ;;  %s5705_s7 = scalar_lea.vmem %s4402_s6, 32  ;;  %p5710_p1 = scmp.lt.s32.totalorder %s4402_s6, %s4402_s6 }
0x1744   :  { %v4226_v7 = vadd.f32 %v5314_v45, %v7176_v60  ;;  %v4220_v10 = vpop.f32.mrb[53].mxu0  ;;  %p5706_p0 = scmp.ne.s32.totalorder %s4402_s6, %s5705_s7  ;;  %p5711_p2 = scmp.lt.s32.totalorder %s5705_s7, %s5705_s7 }
0x1745   :  { %v5509_v43 = vpack.c.bf16 %v4230_v54, %v4229_v0  ;;  %v4221_v2 = vadd.f32 %v4220_v10, %v7174_v21 }
0x1746   :  { %v4232_v8 = vmax.f32 %v4226_v7, 0.0  ;;  %p5712_p3 = por %p5711_p2, %p5710_p1 }
0x1747   :  { %v4231_v14 = vmax.f32 %v4221_v2, 0.0  ;;  %5510 = vmatprep.subr.bf16.mxu0 %v5509_v43  ;;  %5517 = vmatprep.subr.bf16.mxu1 %v5509_v43 }
0x1748   :  { %5512 = vmatpush3.bf16.msra.mxu0 %v5509_v43  ;;  %5519 = vmatpush3.bf16.msra.mxu1 %v5509_v43  ;;  %p5713_p4 = pnand %p5712_p3, %p5706_p0 }
0x1749   :  { %v5513_v50 = vpack.c.bf16 %v4232_v8, %v4231_v14 }
0x174b   :  { %5514 = vmatprep.subr.bf16.mxu0 %v5513_v50  ;;  %5518 = vmatprep.subr.bf16.mxu1 %v5513_v50 }
0x174c   :  { %5516 = vmatpush3.bf16.msra.mxu0 %v5513_v50  ;;  %5520 = vmatpush3.bf16.msra.mxu1 %v5513_v50 }
0x174f   :  { %5324 = vmatmul.mubr.msk.f32.vlgmr.msra.gmra.mrb[54].mxu0 %vm958_vm5, %v4031_v12  ;;  %5327 = vmatmul.mubr.msk.f32.vlgmr.msra.gmra.mrb[68].mxu1 %vm958_vm5, %v4033_v17 }
0x1822   :  { %v5325_v21 = vpop.f32.mrb[54].mxu0  ;;  %v5328_v60 = vpop.f32.mrb[68].mxu1 }
0x1823   :  { %v4331_v58 = vadd.f32 %v5325_v21, %v7232_v35  ;;  %v4333_v27 = vadd.f32 %v5328_v60, %v7244_v62  ;;  %v4311_v5 = vpop.f32.mrb[55].mxu0  ;;  %v4321_v25 = vpop.f32.mrb[69].mxu1 }
0x1824   :  { %v4330_v40 = vadd.f32 %v4311_v5, %v7235_v13  ;;  %v4332_v44 = vadd.f32 %v4321_v25, %v7247_v42 }
0x1825   :  { %v4351_v46 = vadd.f32 %v7178_v23, %v4331_v58  ;;  %v4353_v24 = vadd.f32 %v7195_v1, %v4333_v27 }
0x1826   :  { %v4350_v32 = vadd.f32 %v7180_v22, %v4330_v40  ;;  %v4352_v51 = vadd.f32 %v7188_v36, %v4332_v44 }
0x1827   :  { %v4372_v6 = vmul.f32 %v7190_v56, %v4351_v46  ;;  %v4374_v42 = vmul.f32 %v4369_v28, %v4353_v24 }
0x1828   :  { %v4371_v35 = vmul.f32 %v7200_v37, %v4350_v32  ;;  %v4373_v62 = vmul.f32 %v7202_v39, %v4352_v51  ;;  %v4391_v37 = vpop.permute.xlu1 %4390 }
0x1829   :  { %v4376_v4 = vsel %vm2074_vm11, %v4372_v6, 0.0  ;;  %v4380_v36 = vsel %vm2074_vm11, %v4374_v42, 0.0 }
0x182a   :  { %v4375_v13 = vsel %vm2074_vm11, %v4371_v35, 0.0  ;;  %v4378_v23 = vsel %vm2074_vm11, %v4373_v62, 0.0 }
0x182b   :  { %v4377_v55 = vadd.f32 %v4376_v4, %v4375_v13 }
0x182d   :  { %v4379_v22 = vadd.f32 %v4378_v23, %v4377_v55 }
0x182f   :  { %v4381_v16 = vadd.f32 %v4380_v36, %v4379_v22 }
0x1831   :  { %v4382_v1 = vrot.slane %v4381_v16, 4 }
0x1833   :  { %v4383_v52 = vadd.f32 %v4382_v1, %v4381_v16 }
0x1835   :  { %v4384_v56 = vrot.slane %v4383_v52, 2 }
0x1837   :  { %v4385_v29 = vadd.f32 %v4384_v56, %v4383_v52 }
0x1839   :  { %v4386_v48 = vrot.slane %v4385_v29, 1 }
0x183b   :  { %v4387_v39 = vadd.f32 %v4386_v48, %v4385_v29 }
0x183d   :  { %v4393_v57 = vadd.f32 %v4391_v37, %v4387_v39 }
0x183f   :  { %4394 = vst.msk [vmem:[#allocation4 + $0x1] sm:$0x1] %vm2768_vm12, %v4393_v57 }
0x1840   :  { %5716 = shalt.err (!%p5713_p4)
}
0x1841   :  { %s5717_s10 = scalar_lea.hbm %s7335_s3, 32 }
0x1842   :  { %p5718_p5 = scmp.ne.s32.totalorder %s7335_s3, %s5717_s10  ;;  %p5721_p6 = scmp.lt.u32.totalorder %s5717_s10, %s7335_s3 }
0x1844   :  { %p5723_p7 = pnand %p5721_p6, %p5718_p5 }
0x1846   :  { %5726 = shalt.err (!%p5723_p7)
}
0x1847   :  { %4404 = dma.vmem_to_hbm [thread:$0]  %s4402_s6, 32, %s7335_s3, [#allocation5]  }
0x1848   :  { %5727 = dma.done.wait [#allocation5], 32  }
0x1849   :  { %5728 = vsyncadd [#allocation5], 4294967264 }
0x184a   :  { %4408 = vsyncpa [#allocation5], 1 }

</bundles_post_ra>
